<compile_context>
chip_gen: v7x
topology: tpu7x:2x2x1
jax: 0.10.0
libtpu: 0.0.40
codegen_flags: <defaults>
</compile_context>

<pallas_src>
import functools

import jax
import jax.numpy as jnp
from jax import lax
from jax.experimental import pallas as pl
from jax.experimental.pallas import tpu as pltpu

n_embd = 384                       # embedding dim (fixed by the module)
num_heads = 6
head_size = n_embd // num_heads    # 64
block_size = 256                   # causal-mask capacity (T must be <= block_size)


# ---------------------------------------------------------------------------
# Fully fused MHA kernel.  Grid = (batch, q-blocks).
# ---------------------------------------------------------------------------
def _mha_kernel(x_ref, wqkv_ref, wproj_ref, bproj_ref, o_ref, qkv_ref,
                *, approx_recip):
    qb = pl.program_id(1)
    nq = pl.num_programs(1)

    T = x_ref.shape[1]                    # full sequence length
    t_q = o_ref.shape[1]                  # query-block rows
    H, hs, C = wproj_ref.shape            # (heads, head_size, n_embd)
    compute_dtype = wqkv_ref.dtype

    # --- fused QKV projection for ALL heads, once per batch element --------
    # (T, C) @ (C, 3C) single lane-dense MXU matmul; scale already folded
    # into the q columns of Wqkv at pack time.
    @pl.when(qb == 0)
    def _():
        x = x_ref[0].astype(compute_dtype)                       # (T, C)
        qkv = jnp.dot(x, wqkv_ref[...],
                      preferred_element_type=jnp.float32)        # (T, 3C) f32
        qkv_ref[...] = qkv.astype(compute_dtype).reshape(nq, t_q, 3 * C)

    # K/V need all T rows; Q only needs this q-block's rows.
    qkv_all = qkv_ref[...].reshape(T, 3 * C)      # (T, 3C)  compute dtype
    q_blk = qkv_ref[qb]                           # (t_q, 3C) (q columns used)

    # Causal mask for this q-block: small iotas, broadcast on compare.
    row = qb * t_q + lax.broadcasted_iota(jnp.int32, (t_q, 1), 0)
    col = lax.broadcasted_iota(jnp.int32, (1, T), 1)
    causal = col <= row                            # (t_q, T) bool

    # Output-projection accumulator (K-split over heads), f32.
    y = jnp.zeros((t_q, C), jnp.float32)

    for h in range(H):                             # static 6-way loop
        q = q_blk[:, h * hs:(h + 1) * hs]                      # (t_q, hs)
        k = qkv_all[:, C + h * hs:C + (h + 1) * hs]            # (T, hs)
        v = qkv_all[:, 2 * C + h * hs:2 * C + (h + 1) * hs]    # (T, hs)

        # Contract last dims -> no k.T materialization before the MXU.
        s = lax.dot_general(q, k, (((1,), (1,)), ((), ())),
                            preferred_element_type=jnp.float32)  # (t_q, T)
        s = jnp.where(causal, s, -jnp.inf)

        # Softmax in f32 (every causal row has >=1 unmasked column -> no NaN).
        s = s - jnp.max(s, axis=-1, keepdims=True)
        p = jnp.exp(s)
        p = p * pl.reciprocal(jnp.sum(p, axis=-1, keepdims=True),
                              approx=approx_recip)
        # TODO(synk): attention-weight dropout (training mode) not implemented.

        att = jnp.dot(p.astype(compute_dtype), v,
                      preferred_element_type=jnp.float32)        # (t_q, hs)

        # K-split of the output projection: accumulate att_h @ Wproj[h].
        y = y + jnp.dot(att.astype(compute_dtype), wproj_ref[h],
                        preferred_element_type=jnp.float32)      # (t_q, C)

    y = y + bproj_ref[...].astype(jnp.float32)     # (1, C) broadcast
    o_ref[0] = y.astype(o_ref.dtype)               # lane-dense (t_q, 384) store
    # TODO(synk): final residual-path dropout (training mode) not implemented.


# ---------------------------------------------------------------------------
# One-time parameter packing (hoisted OUT of the per-call path).
# ---------------------------------------------------------------------------
def pack_mha_params(params, compute_dtype=jnp.float32):
    """Pack per-head weights into kernel-friendly layout.  Call once."""
    C, H, hs = n_embd, num_heads, head_size
    scale = float(C) ** -0.5   # module semantics: C**-0.5 (n_embd), not hs**-0.5

    # [ Wq_allheads*scale | Wk_allheads | Wv_allheads ]  -> (C, 3C), head h in
    # columns [h*hs:(h+1)*hs] of each C-block (matches torch.cat head order).
    wq = jnp.transpose(params["wq"], (1, 0, 2)).reshape(C, H * hs) * scale
    wk = jnp.transpose(params["wk"], (1, 0, 2)).reshape(C, H * hs)
    wv = jnp.transpose(params["wv"], (1, 0, 2)).reshape(C, H * hs)
    wqkv = jnp.concatenate([wq, wk, wv], axis=1).astype(compute_dtype)  # (C,3C)

    # Output projection split per head for the K-split accumulation.
    wproj = params["w_proj"].reshape(H, hs, C).astype(compute_dtype)    # (H,hs,C)
    bproj = params["b_proj"].reshape(1, C).astype(jnp.float32)          # (1,C)
    return {"wqkv": wqkv, "wproj": wproj, "bproj": bproj}


def multi_head_attention(x, packed):
    """x: (B, T, C) -> (B, T, C).  Single fused Pallas kernel."""
    B, T, C = x.shape
    assert C == n_embd, (C, n_embd)
    assert T <= block_size, (T, block_size)
    H, hs = num_heads, head_size

    # Query-block size: flash-style blocking over query rows.
    t_q = 128 if (T % 128 == 0) else T
    t_q = min(t_q, T)
    nq = T // t_q

    approx = packed["wqkv"].dtype != jnp.float32
    kernel = functools.partial(_mha_kernel, approx_recip=approx)

    return pl.pallas_call(
        kernel,
        out_shape=jax.ShapeDtypeStruct((B, T, C), x.dtype),
        grid_spec=pltpu.PrefetchScalarGridSpec(
            num_scalar_prefetch=0,
            grid=(B, nq),
            in_specs=[
                pl.BlockSpec((1, T, C), lambda b, qb: (b, 0, 0)),      # x (resident over qb)
                pl.BlockSpec((C, 3 * C), lambda b, qb: (0, 0)),        # Wqkv (resident)
                pl.BlockSpec((H, hs, C), lambda b, qb: (0, 0, 0)),     # Wproj per-head blocks
                pl.BlockSpec((1, C), lambda b, qb: (0, 0)),            # bias
            ],
            out_specs=pl.BlockSpec((1, t_q, C), lambda b, qb: (b, qb, 0)),
            scratch_shapes=[
                # fused QKV activations, persistent across q-blocks of a batch
                pltpu.VMEM((nq, t_q, 3 * C), packed["wqkv"].dtype),
            ],
        ),
        compiler_params=pltpu.CompilerParams(
            dimension_semantics=("parallel", "arbitrary"),
            vmem_limit_bytes=32 * 1024 * 1024,
        ),
    )(x, packed["wqkv"], packed["wproj"], packed["bproj"])


# ---------------------------------------------------------------------------
# Pure-JAX reference for sanity checking
# ---------------------------------------------------------------------------
def reference(x, params):
    B, T, C = x.shape
    outs = []
    for h in range(num_heads):
        q = x @ params["wq"][h]
        k = x @ params["wk"][h]
        v = x @ params["wv"][h]
        s = (q @ jnp.swapaxes(k, -1, -2)) * (C ** -0.5)
        mask = jnp.tril(jnp.ones((T, T), bool))
        s = jnp.where(mask, s, -jnp.inf)
        p = jax.nn.softmax(s, axis=-1)
        outs.append(p @ v)
    cat = jnp.concatenate(outs, axis=-1)
    return cat @ params["w_proj"] + params["b_proj"][0]


# ---------------------------------------------------------------------------
if __name__ == "__main__":
    key = jax.random.PRNGKey(0)
    kx, kq, kk, kv, kw, kb = jax.random.split(key, 6)

    B, T = 2, 16
    x = jax.random.normal(kx, (B, T, n_embd), dtype=jnp.float32)

    params = {
        "wq": jax.random.normal(kq, (num_heads, n_embd, head_size),
                                dtype=jnp.float32) * 0.02,
        "wk": jax.random.normal(kk, (num_heads, n_embd, head_size),
                                dtype=jnp.float32) * 0.02,
        "wv": jax.random.normal(kv, (num_heads, n_embd, head_size),
                                dtype=jnp.float32) * 0.02,
        "w_proj": jax.random.normal(kw, (n_embd, n_embd),
                                    dtype=jnp.float32) * 0.02,
        "b_proj": jax.random.normal(kb, (1, n_embd), dtype=jnp.float32) * 0.02,
    }

    # --- f32 path, T=16 (single q-block): strict correctness check ---------
    packed_f32 = pack_mha_params(params, jnp.float32)   # packed ONCE per param set
    out = jax.block_until_ready(multi_head_attention(x, packed_f32))
    ref = jax.block_until_ready(reference(x, params))
    assert out.shape == (B, T, n_embd), out.shape
    assert jnp.allclose(out, ref, atol=1e-4, rtol=1e-4), \
        float(jnp.max(jnp.abs(out - ref)))

    # --- f32 path, T=256 (two q-blocks): exercises q-block grid axis -------
    T2 = 256
    x2 = jax.random.normal(jax.random.PRNGKey(1), (B, T2, n_embd),
                           dtype=jnp.float32)
    out2 = jax.block_until_ready(multi_head_attention(x2, packed_f32))
    ref2 = jax.block_until_ready(reference(x2, params))
    assert out2.shape == (B, T2, n_embd), out2.shape
    assert jnp.allclose(out2, ref2, atol=1e-4, rtol=1e-4), \
        float(jnp.max(jnp.abs(out2 - ref2)))

    # --- bf16 fast MXU path (weights/activations bf16, f32 accumulation) ---
    packed_bf16 = pack_mha_params(params, jnp.bfloat16)
    out_bf16 = jax.block_until_ready(multi_head_attention(x, packed_bf16))
    assert out_bf16.shape == (B, T, n_embd), out_bf16.shape
    assert jnp.allclose(out_bf16.astype(jnp.float32), ref,
                        atol=5e-2, rtol=5e-2), \
        float(jnp.max(jnp.abs(out_bf16.astype(jnp.float32) - ref)))

    print("KERNEL_OK")
</pallas_src>

<mosaic_0001>
module attributes {stable_mosaic.version = 11 : i64} {
  func.func @_mha_kernel(%arg0: i32, %arg1: i32, %arg2: memref<1x16x384xf32, #tpu.memory_space<vmem>>, %arg3: memref<384x1152xf32, #tpu.memory_space<vmem>>, %arg4: memref<6x64x384xf32, #tpu.memory_space<vmem>>, %arg5: memref<1x384xf32, #tpu.memory_space<vmem>>, %arg6: memref<1x16x384xf32, #tpu.memory_space<vmem>>, %arg7: memref<1x16x1152xf32, #tpu.memory_space<vmem>>) attributes {dimension_semantics = [#tpu.dimension_semantics<parallel>, #tpu.dimension_semantics<arbitrary>], iteration_bounds = array<i64: 2, 1>, scalar_prefetch = 0 : i64, scratch_operands = 1 : i64, tpu.core_type = #tpu.core_type<tc>, window_params = [{transform_indices = @transform_0, window_bounds = array<i64: 1, 16, 384>}, {pipeline_mode = #tpu.pipeline_mode<synchronous>, transform_indices = @transform_1, window_bounds = array<i64: 384, 1152>}, {pipeline_mode = #tpu.pipeline_mode<synchronous>, transform_indices = @transform_2, window_bounds = array<i64: 6, 64, 384>}, {pipeline_mode = #tpu.pipeline_mode<synchronous>, transform_indices = @transform_3, window_bounds = array<i64: 1, 384>}, {transform_indices = @transform_4, window_bounds = array<i64: 1, 16, 384>}]} {
    %c0_i32 = arith.constant 0 : i32
    %0 = arith.cmpi eq, %arg1, %c0_i32 : i32
    %1 = arith.extui %0 : i1 to i32
    %c0_i32_0 = arith.constant 0 : i32
    %2 = arith.cmpi ne, %1, %c0_i32_0 : i32
    scf.if %2 {
      %c0_59 = arith.constant 0 : index
      %c0_60 = arith.constant 0 : index
      %c0_61 = arith.constant 0 : index
      %149 = vector.load %arg2[%c0_59, %c0_60, %c0_61] : memref<1x16x384xf32, #tpu.memory_space<vmem>>, vector<1x16x384xf32>
      %150 = vector.shape_cast %149 : vector<1x16x384xf32> to vector<16x384xf32>
      %c0_62 = arith.constant 0 : index
      %c0_63 = arith.constant 0 : index
      %151 = vector.load %arg3[%c0_62, %c0_63] : memref<384x1152xf32, #tpu.memory_space<vmem>>, vector<384x1152xf32>
      %cst_64 = arith.constant dense<0.000000e+00> : vector<16x1152xf32>
      %152 = tpu.matmul %150, %151, %cst_64 {dimension_numbers = #tpu.dot_dimension_numbers<[1], [0], [0], [1], [0, 0, 1, 1], [], []>} : vector<16x384xf32>, vector<384x1152xf32>, vector<16x1152xf32> -> vector<16x1152xf32>
      %153 = vector.shape_cast %152 : vector<16x1152xf32> to vector<1x16x1152xf32>
      %c0_65 = arith.constant 0 : index
      %c0_66 = arith.constant 0 : index
      %c0_67 = arith.constant 0 : index
      %154 = vector.load %arg7[%c0_65, %c0_66, %c0_67] : memref<1x16x1152xf32, #tpu.memory_space<vmem>>, vector<1x16x1152xf32>
      tpu.vector_store %arg7[%c0_65, %c0_66, %c0_67], %153 {strides = array<i32>} : memref<1x16x1152xf32, #tpu.memory_space<vmem>>, vector<1x16x1152xf32>,
    } else {
    }
    %c0 = arith.constant 0 : index
    %c0_1 = arith.constant 0 : index
    %c0_2 = arith.constant 0 : index
    %3 = vector.load %arg7[%c0, %c0_1, %c0_2] : memref<1x16x1152xf32, #tpu.memory_space<vmem>>, vector<1x16x1152xf32>
    %4 = vector.shape_cast %3 : vector<1x16x1152xf32> to vector<16x1152xf32>
    %5 = arith.index_cast %arg1 : i32 to index
    %c0_3 = arith.constant 0 : index
    %c0_4 = arith.constant 0 : index
    %6 = vector.load %arg7[%5, %c0_3, %c0_4] : memref<1x16x1152xf32, #tpu.memory_space<vmem>>, vector<1x16x1152xf32>
    %7 = vector.shape_cast %6 : vector<1x16x1152xf32> to vector<16x1152xf32>
    %c16_i32 = arith.constant 16 : i32
    %8 = arith.muli %arg1, %c16_i32 : i32
    %9 = tpu.iota {dimensions = array<i32: 0>} : vector<16x1xi32>
    %10 = vector.broadcast %8 : i32 to vector<16x1xi32>
    %11 = arith.addi %10, %9 : vector<16x1xi32>
    %12 = tpu.iota {dimensions = array<i32: 1>} : vector<1x16xi32>
    %13 = vector.broadcast %12 : vector<1x16xi32> to vector<16x16xi32>
    %14 = vector.broadcast %11 : vector<16x1xi32> to vector<16x16xi32>
    %15 = arith.cmpi sle, %13, %14 : vector<16x16xi32>
    %cst = arith.constant 0.000000e+00 : f32
    %16 = vector.broadcast %cst : f32 to vector<16x384xf32>
    %17 = vector.extract_strided_slice %7 {offsets = [0, 0], sizes = [16, 64], strides = [1, 1]} : vector<16x1152xf32> to vector<16x64xf32>
    %18 = vector.extract_strided_slice %4 {offsets = [0, 384], sizes = [16, 64], strides = [1, 1]} : vector<16x1152xf32> to vector<16x64xf32>
    %19 = vector.extract_strided_slice %4 {offsets = [0, 768], sizes = [16, 64], strides = [1, 1]} : vector<16x1152xf32> to vector<16x64xf32>
    %cst_5 = arith.constant dense<0.000000e+00> : vector<16x16xf32>
    %20 = tpu.matmul %17, %18, %cst_5 {dimension_numbers = #tpu.dot_dimension_numbers<[1], [1], [0], [0], [0, 0, 1, 0], [], []>} : vector<16x64xf32>, vector<16x64xf32>, vector<16x16xf32> -> vector<16x16xf32>
    %cst_6 = arith.constant 0xFF800000 : f32
    %21 = vector.broadcast %cst_6 : f32 to vector<16x16xf32>
    %22 = arith.select %15, %20, %21 : vector<16x16xi1>, vector<16x16xf32>
    %cst_7 = arith.constant dense<0xFF800000> : vector<16xf32>
    %23 = vector.multi_reduction <maximumf>, %22, %cst_7 [1] : vector<16x16xf32> to vector<16xf32>
    %24 = vector.shape_cast %23 : vector<16xf32> to vector<16x1xf32>
    %25 = vector.broadcast %24 : vector<16x1xf32> to vector<16x16xf32>
    %26 = arith.subf %22, %25 : vector<16x16xf32>
    %27 = math.exp %26 : vector<16x16xf32>
    %cst_8 = arith.constant dense<0.000000e+00> : vector<16xf32>
    %28 = vector.multi_reduction <add>, %27, %cst_8 [1] : vector<16x16xf32> to vector<16xf32>
    %29 = vector.shape_cast %28 : vector<16xf32> to vector<16x1xf32>
    %30 = tpu.reciprocal %29 : vector<16x1xf32> -> vector<16x1xf32>
    %31 = vector.broadcast %30 : vector<16x1xf32> to vector<16x16xf32>
    %32 = arith.mulf %27, %31 : vector<16x16xf32>
    %cst_9 = arith.constant dense<0.000000e+00> : vector<16x64xf32>
    %33 = tpu.matmul %32, %19, %cst_9 {dimension_numbers = #tpu.dot_dimension_numbers<[1], [0], [0], [1], [0, 0, 1, 1], [], []>} : vector<16x16xf32>, vector<16x64xf32>, vector<16x64xf32> -> vector<16x64xf32>
    %c0_10 = arith.constant 0 : index
    %c0_11 = arith.constant 0 : index
    %c0_12 = arith.constant 0 : index
    %34 = vector.load %arg4[%c0_10, %c0_11, %c0_12] : memref<6x64x384xf32, #tpu.memory_space<vmem>>, vector<1x64x384xf32>
    %35 = vector.shape_cast %34 : vector<1x64x384xf32> to vector<64x384xf32>
    %cst_13 = arith.constant dense<0.000000e+00> : vector<16x384xf32>
    %36 = tpu.matmul %33, %35, %cst_13 {dimension_numbers = #tpu.dot_dimension_numbers<[1], [0], [0], [1], [0, 0, 1, 1], [], []>} : vector<16x64xf32>, vector<64x384xf32>, vector<16x384xf32> -> vector<16x384xf32>
    %37 = arith.addf %16, %36 : vector<16x384xf32>
    %38 = vector.extract_strided_slice %7 {offsets = [0, 64], sizes = [16, 64], strides = [1, 1]} : vector<16x1152xf32> to vector<16x64xf32>
    %39 = vector.extract_strided_slice %4 {offsets = [0, 448], sizes = [16, 64], strides = [1, 1]} : vector<16x1152xf32> to vector<16x64xf32>
    %40 = vector.extract_strided_slice %4 {offsets = [0, 832], sizes = [16, 64], strides = [1, 1]} : vector<16x1152xf32> to vector<16x64xf32>
    %cst_14 = arith.constant dense<0.000000e+00> : vector<16x16xf32>
    %41 = tpu.matmul %38, %39, %cst_14 {dimension_numbers = #tpu.dot_dimension_numbers<[1], [1], [0], [0], [0, 0, 1, 0], [], []>} : vector<16x64xf32>, vector<16x64xf32>, vector<16x16xf32> -> vector<16x16xf32>
    %cst_15 = arith.constant 0xFF800000 : f32
    %42 = vector.broadcast %cst_15 : f32 to vector<16x16xf32>
    %43 = arith.select %15, %41, %42 : vector<16x16xi1>, vector<16x16xf32>
    %cst_16 = arith.constant dense<0xFF800000> : vector<16xf32>
    %44 = vector.multi_reduction <maximumf>, %43, %cst_16 [1] : vector<16x16xf32> to vector<16xf32>
    %45 = vector.shape_cast %44 : vector<16xf32> to vector<16x1xf32>
    %46 = vector.broadcast %45 : vector<16x1xf32> to vector<16x16xf32>
    %47 = arith.subf %43, %46 : vector<16x16xf32>
    %48 = math.exp %47 : vector<16x16xf32>
    %cst_17 = arith.constant dense<0.000000e+00> : vector<16xf32>
    %49 = vector.multi_reduction <add>, %48, %cst_17 [1] : vector<16x16xf32> to vector<16xf32>
    %50 = vector.shape_cast %49 : vector<16xf32> to vector<16x1xf32>
    %51 = tpu.reciprocal %50 : vector<16x1xf32> -> vector<16x1xf32>
    %52 = vector.broadcast %51 : vector<16x1xf32> to vector<16x16xf32>
    %53 = arith.mulf %48, %52 : vector<16x16xf32>
    %cst_18 = arith.constant dense<0.000000e+00> : vector<16x64xf32>
    %54 = tpu.matmul %53, %40, %cst_18 {dimension_numbers = #tpu.dot_dimension_numbers<[1], [0], [0], [1], [0, 0, 1, 1], [], []>} : vector<16x16xf32>, vector<16x64xf32>, vector<16x64xf32> -> vector<16x64xf32>
    %c1 = arith.constant 1 : index
    %c0_19 = arith.constant 0 : index
    %c0_20 = arith.constant 0 : index
    %55 = vector.load %arg4[%c1, %c0_19, %c0_20] : memref<6x64x384xf32, #tpu.memory_space<vmem>>, vector<1x64x384xf32>
    %56 = vector.shape_cast %55 : vector<1x64x384xf32> to vector<64x384xf32>
    %cst_21 = arith.constant dense<0.000000e+00> : vector<16x384xf32>
    %57 = tpu.matmul %54, %56, %cst_21 {dimension_numbers = #tpu.dot_dimension_numbers<[1], [0], [0], [1], [0, 0, 1, 1], [], []>} : vector<16x64xf32>, vector<64x384xf32>, vector<16x384xf32> -> vector<16x384xf32>
    %58 = arith.addf %37, %57 : vector<16x384xf32>
    %59 = vector.extract_strided_slice %7 {offsets = [0, 128], sizes = [16, 64], strides = [1, 1]} : vector<16x1152xf32> to vector<16x64xf32>
    %60 = vector.extract_strided_slice %4 {offsets = [0, 512], sizes = [16, 64], strides = [1, 1]} : vector<16x1152xf32> to vector<16x64xf32>
    %61 = vector.extract_strided_slice %4 {offsets = [0, 896], sizes = [16, 64], strides = [1, 1]} : vector<16x1152xf32> to vector<16x64xf32>
    %cst_22 = arith.constant dense<0.000000e+00> : vector<16x16xf32>
    %62 = tpu.matmul %59, %60, %cst_22 {dimension_numbers = #tpu.dot_dimension_numbers<[1], [1], [0], [0], [0, 0, 1, 0], [], []>} : vector<16x64xf32>, vector<16x64xf32>, vector<16x16xf32> -> vector<16x16xf32>
    %cst_23 = arith.constant 0xFF800000 : f32
    %63 = vector.broadcast %cst_23 : f32 to vector<16x16xf32>
    %64 = arith.select %15, %62, %63 : vector<16x16xi1>, vector<16x16xf32>
    %cst_24 = arith.constant dense<0xFF800000> : vector<16xf32>
    %65 = vector.multi_reduction <maximumf>, %64, %cst_24 [1] : vector<16x16xf32> to vector<16xf32>
    %66 = vector.shape_cast %65 : vector<16xf32> to vector<16x1xf32>
    %67 = vector.broadcast %66 : vector<16x1xf32> to vector<16x16xf32>
    %68 = arith.subf %64, %67 : vector<16x16xf32>
    %69 = math.exp %68 : vector<16x16xf32>
    %cst_25 = arith.constant dense<0.000000e+00> : vector<16xf32>
    %70 = vector.multi_reduction <add>, %69, %cst_25 [1] : vector<16x16xf32> to vector<16xf32>
    %71 = vector.shape_cast %70 : vector<16xf32> to vector<16x1xf32>
    %72 = tpu.reciprocal %71 : vector<16x1xf32> -> vector<16x1xf32>
    %73 = vector.broadcast %72 : vector<16x1xf32> to vector<16x16xf32>
    %74 = arith.mulf %69, %73 : vector<16x16xf32>
    %cst_26 = arith.constant dense<0.000000e+00> : vector<16x64xf32>
    %75 = tpu.matmul %74, %61, %cst_26 {dimension_numbers = #tpu.dot_dimension_numbers<[1], [0], [0], [1], [0, 0, 1, 1], [], []>} : vector<16x16xf32>, vector<16x64xf32>, vector<16x64xf32> -> vector<16x64xf32>
    %c2 = arith.constant 2 : index
    %c0_27 = arith.constant 0 : index
    %c0_28 = arith.constant 0 : index
    %76 = vector.load %arg4[%c2, %c0_27, %c0_28] : memref<6x64x384xf32, #tpu.memory_space<vmem>>, vector<1x64x384xf32>
    %77 = vector.shape_cast %76 : vector<1x64x384xf32> to vector<64x384xf32>
    %cst_29 = arith.constant dense<0.000000e+00> : vector<16x384xf32>
    %78 = tpu.matmul %75, %77, %cst_29 {dimension_numbers = #tpu.dot_dimension_numbers<[1], [0], [0], [1], [0, 0, 1, 1], [], []>} : vector<16x64xf32>, vector<64x384xf32>, vector<16x384xf32> -> vector<16x384xf32>
    %79 = arith.addf %58, %78 : vector<16x384xf32>
    %80 = vector.extract_strided_slice %7 {offsets = [0, 192], sizes = [16, 64], strides = [1, 1]} : vector<16x1152xf32> to vector<16x64xf32>
    %81 = vector.extract_strided_slice %4 {offsets = [0, 576], sizes = [16, 64], strides = [1, 1]} : vector<16x1152xf32> to vector<16x64xf32>
    %82 = vector.extract_strided_slice %4 {offsets = [0, 960], sizes = [16, 64], strides = [1, 1]} : vector<16x1152xf32> to vector<16x64xf32>
    %cst_30 = arith.constant dense<0.000000e+00> : vector<16x16xf32>
    %83 = tpu.matmul %80, %81, %cst_30 {dimension_numbers = #tpu.dot_dimension_numbers<[1], [1], [0], [0], [0, 0, 1, 0], [], []>} : vector<16x64xf32>, vector<16x64xf32>, vector<16x16xf32> -> vector<16x16xf32>
    %cst_31 = arith.constant 0xFF800000 : f32
    %84 = vector.broadcast %cst_31 : f32 to vector<16x16xf32>
    %85 = arith.select %15, %83, %84 : vector<16x16xi1>, vector<16x16xf32>
    %cst_32 = arith.constant dense<0xFF800000> : vector<16xf32>
    %86 = vector.multi_reduction <maximumf>, %85, %cst_32 [1] : vector<16x16xf32> to vector<16xf32>
    %87 = vector.shape_cast %86 : vector<16xf32> to vector<16x1xf32>
    %88 = vector.broadcast %87 : vector<16x1xf32> to vector<16x16xf32>
    %89 = arith.subf %85, %88 : vector<16x16xf32>
    %90 = math.exp %89 : vector<16x16xf32>
    %cst_33 = arith.constant dense<0.000000e+00> : vector<16xf32>
    %91 = vector.multi_reduction <add>, %90, %cst_33 [1] : vector<16x16xf32> to vector<16xf32>
    %92 = vector.shape_cast %91 : vector<16xf32> to vector<16x1xf32>
    %93 = tpu.reciprocal %92 : vector<16x1xf32> -> vector<16x1xf32>
    %94 = vector.broadcast %93 : vector<16x1xf32> to vector<16x16xf32>
    %95 = arith.mulf %90, %94 : vector<16x16xf32>
    %cst_34 = arith.constant dense<0.000000e+00> : vector<16x64xf32>
    %96 = tpu.matmul %95, %82, %cst_34 {dimension_numbers = #tpu.dot_dimension_numbers<[1], [0], [0], [1], [0, 0, 1, 1], [], []>} : vector<16x16xf32>, vector<16x64xf32>, vector<16x64xf32> -> vector<16x64xf32>
    %c3 = arith.constant 3 : index
    %c0_35 = arith.constant 0 : index
    %c0_36 = arith.constant 0 : index
    %97 = vector.load %arg4[%c3, %c0_35, %c0_36] : memref<6x64x384xf32, #tpu.memory_space<vmem>>, vector<1x64x384xf32>
    %98 = vector.shape_cast %97 : vector<1x64x384xf32> to vector<64x384xf32>
    %cst_37 = arith.constant dense<0.000000e+00> : vector<16x384xf32>
    %99 = tpu.matmul %96, %98, %cst_37 {dimension_numbers = #tpu.dot_dimension_numbers<[1], [0], [0], [1], [0, 0, 1, 1], [], []>} : vector<16x64xf32>, vector<64x384xf32>, vector<16x384xf32> -> vector<16x384xf32>
    %100 = arith.addf %79, %99 : vector<16x384xf32>
    %101 = vector.extract_strided_slice %7 {offsets = [0, 256], sizes = [16, 64], strides = [1, 1]} : vector<16x1152xf32> to vector<16x64xf32>
    %102 = vector.extract_strided_slice %4 {offsets = [0, 640], sizes = [16, 64], strides = [1, 1]} : vector<16x1152xf32> to vector<16x64xf32>
    %103 = vector.extract_strided_slice %4 {offsets = [0, 1024], sizes = [16, 64], strides = [1, 1]} : vector<16x1152xf32> to vector<16x64xf32>
    %cst_38 = arith.constant dense<0.000000e+00> : vector<16x16xf32>
    %104 = tpu.matmul %101, %102, %cst_38 {dimension_numbers = #tpu.dot_dimension_numbers<[1], [1], [0], [0], [0, 0, 1, 0], [], []>} : vector<16x64xf32>, vector<16x64xf32>, vector<16x16xf32> -> vector<16x16xf32>
    %cst_39 = arith.constant 0xFF800000 : f32
    %105 = vector.broadcast %cst_39 : f32 to vector<16x16xf32>
    %106 = arith.select %15, %104, %105 : vector<16x16xi1>, vector<16x16xf32>
    %cst_40 = arith.constant dense<0xFF800000> : vector<16xf32>
    %107 = vector.multi_reduction <maximumf>, %106, %cst_40 [1] : vector<16x16xf32> to vector<16xf32>
    %108 = vector.shape_cast %107 : vector<16xf32> to vector<16x1xf32>
    %109 = vector.broadcast %108 : vector<16x1xf32> to vector<16x16xf32>
    %110 = arith.subf %106, %109 : vector<16x16xf32>
    %111 = math.exp %110 : vector<16x16xf32>
    %cst_41 = arith.constant dense<0.000000e+00> : vector<16xf32>
    %112 = vector.multi_reduction <add>, %111, %cst_41 [1] : vector<16x16xf32> to vector<16xf32>
    %113 = vector.shape_cast %112 : vector<16xf32> to vector<16x1xf32>
    %114 = tpu.reciprocal %113 : vector<16x1xf32> -> vector<16x1xf32>
    %115 = vector.broadcast %114 : vector<16x1xf32> to vector<16x16xf32>
    %116 = arith.mulf %111, %115 : vector<16x16xf32>
    %cst_42 = arith.constant dense<0.000000e+00> : vector<16x64xf32>
    %117 = tpu.matmul %116, %103, %cst_42 {dimension_numbers = #tpu.dot_dimension_numbers<[1], [0], [0], [1], [0, 0, 1, 1], [], []>} : vector<16x16xf32>, vector<16x64xf32>, vector<16x64xf32> -> vector<16x64xf32>
    %c4 = arith.constant 4 : index
    %c0_43 = arith.constant 0 : index
    %c0_44 = arith.constant 0 : index
    %118 = vector.load %arg4[%c4, %c0_43, %c0_44] : memref<6x64x384xf32, #tpu.memory_space<vmem>>, vector<1x64x384xf32>
    %119 = vector.shape_cast %118 : vector<1x64x384xf32> to vector<64x384xf32>
    %cst_45 = arith.constant dense<0.000000e+00> : vector<16x384xf32>
    %120 = tpu.matmul %117, %119, %cst_45 {dimension_numbers = #tpu.dot_dimension_numbers<[1], [0], [0], [1], [0, 0, 1, 1], [], []>} : vector<16x64xf32>, vector<64x384xf32>, vector<16x384xf32> -> vector<16x384xf32>
    %121 = arith.addf %100, %120 : vector<16x384xf32>
    %122 = vector.extract_strided_slice %7 {offsets = [0, 320], sizes = [16, 64], strides = [1, 1]} : vector<16x1152xf32> to vector<16x64xf32>
    %123 = vector.extract_strided_slice %4 {offsets = [0, 704], sizes = [16, 64], strides = [1, 1]} : vector<16x1152xf32> to vector<16x64xf32>
    %124 = vector.extract_strided_slice %4 {offsets = [0, 1088], sizes = [16, 64], strides = [1, 1]} : vector<16x1152xf32> to vector<16x64xf32>
    %cst_46 = arith.constant dense<0.000000e+00> : vector<16x16xf32>
    %125 = tpu.matmul %122, %123, %cst_46 {dimension_numbers = #tpu.dot_dimension_numbers<[1], [1], [0], [0], [0, 0, 1, 0], [], []>} : vector<16x64xf32>, vector<16x64xf32>, vector<16x16xf32> -> vector<16x16xf32>
    %cst_47 = arith.constant 0xFF800000 : f32
    %126 = vector.broadcast %cst_47 : f32 to vector<16x16xf32>
    %127 = arith.select %15, %125, %126 : vector<16x16xi1>, vector<16x16xf32>
    %cst_48 = arith.constant dense<0xFF800000> : vector<16xf32>
    %128 = vector.multi_reduction <maximumf>, %127, %cst_48 [1] : vector<16x16xf32> to vector<16xf32>
    %129 = vector.shape_cast %128 : vector<16xf32> to vector<16x1xf32>
    %130 = vector.broadcast %129 : vector<16x1xf32> to vector<16x16xf32>
    %131 = arith.subf %127, %130 : vector<16x16xf32>
    %132 = math.exp %131 : vector<16x16xf32>
    %cst_49 = arith.constant dense<0.000000e+00> : vector<16xf32>
    %133 = vector.multi_reduction <add>, %132, %cst_49 [1] : vector<16x16xf32> to vector<16xf32>
    %134 = vector.shape_cast %133 : vector<16xf32> to vector<16x1xf32>
    %135 = tpu.reciprocal %134 : vector<16x1xf32> -> vector<16x1xf32>
    %136 = vector.broadcast %135 : vector<16x1xf32> to vector<16x16xf32>
    %137 = arith.mulf %132, %136 : vector<16x16xf32>
    %cst_50 = arith.constant dense<0.000000e+00> : vector<16x64xf32>
    %138 = tpu.matmul %137, %124, %cst_50 {dimension_numbers = #tpu.dot_dimension_numbers<[1], [0], [0], [1], [0, 0, 1, 1], [], []>} : vector<16x16xf32>, vector<16x64xf32>, vector<16x64xf32> -> vector<16x64xf32>
    %c5 = arith.constant 5 : index
    %c0_51 = arith.constant 0 : index
    %c0_52 = arith.constant 0 : index
    %139 = vector.load %arg4[%c5, %c0_51, %c0_52] : memref<6x64x384xf32, #tpu.memory_space<vmem>>, vector<1x64x384xf32>
    %140 = vector.shape_cast %139 : vector<1x64x384xf32> to vector<64x384xf32>
    %cst_53 = arith.constant dense<0.000000e+00> : vector<16x384xf32>
    %141 = tpu.matmul %138, %140, %cst_53 {dimension_numbers = #tpu.dot_dimension_numbers<[1], [0], [0], [1], [0, 0, 1, 1], [], []>} : vector<16x64xf32>, vector<64x384xf32>, vector<16x384xf32> -> vector<16x384xf32>
    %142 = arith.addf %121, %141 : vector<16x384xf32>
    %c0_54 = arith.constant 0 : index
    %c0_55 = arith.constant 0 : index
    %143 = vector.load %arg5[%c0_54, %c0_55] : memref<1x384xf32, #tpu.memory_space<vmem>>, vector<1x384xf32>
    %144 = vector.broadcast %143 : vector<1x384xf32> to vector<16x384xf32>
    %145 = arith.addf %142, %144 : vector<16x384xf32>
    %c0_56 = arith.constant 0 : index
    %c0_57 = arith.constant 0 : index
    %c0_58 = arith.constant 0 : index
    %146 = vector.load %arg6[%c0_56, %c0_57, %c0_58] : memref<1x16x384xf32, #tpu.memory_space<vmem>>, vector<1x16x384xf32>
    %147 = vector.shape_cast %146 : vector<1x16x384xf32> to vector<16x384xf32>
    %148 = vector.shape_cast %145 : vector<16x384xf32> to vector<1x16x384xf32>
    tpu.vector_store %arg6[%c0_56, %c0_57, %c0_58], %148 {strides = array<i32>} : memref<1x16x384xf32, #tpu.memory_space<vmem>>, vector<1x16x384xf32>,
    return
  }
  func.func @transform_0(%arg0: i32, %arg1: i32) -> (i32, i32, i32) {
    %c0_i32 = arith.constant 0 : i32
    %c0_i32_0 = arith.constant 0 : i32
    %c0_i32_1 = arith.constant 0 : i32
    return %arg0, %c0_i32, %c0_i32_0 : i32, i32, i32
  }
  func.func @transform_1(%arg0: i32, %arg1: i32) -> (i32, i32) {
    %c0_i32 = arith.constant 0 : i32
    %c0_i32_0 = arith.constant 0 : i32
    %c0_i32_1 = arith.constant 0 : i32
    return %c0_i32, %c0_i32_0 : i32, i32
  }
  func.func @transform_2(%arg0: i32, %arg1: i32) -> (i32, i32, i32) {
    %c0_i32 = arith.constant 0 : i32
    %c0_i32_0 = arith.constant 0 : i32
    %c0_i32_1 = arith.constant 0 : i32
    %c0_i32_2 = arith.constant 0 : i32
    return %c0_i32, %c0_i32_0, %c0_i32_1 : i32, i32, i32
  }
  func.func @transform_3(%arg0: i32, %arg1: i32) -> (i32, i32) {
    %c0_i32 = arith.constant 0 : i32
    %c0_i32_0 = arith.constant 0 : i32
    %c0_i32_1 = arith.constant 0 : i32
    return %c0_i32, %c0_i32_0 : i32, i32
  }
  func.func @transform_4(%arg0: i32, %arg1: i32) -> (i32, i32, i32) {
    %c0_i32 = arith.constant 0 : i32
    %c0_i32_0 = arith.constant 0 : i32
    return %arg0, %arg1, %c0_i32 : i32, i32, i32
  }
}

</mosaic_0001>

<bundles_post_ra>
// kernel: tpu_custom_call.1
= control target key start
LH: loop header
LB: loop body
LE: loop exit
PB: predicated region body
PF: predicated region fallthrough
CT: control target
= control target key end

     0   :  { %s6263_s0 = inlined_call_operand.hbm [shape: f32[2,16,384], index: 0, kind: input, shape index: {}]   ;;  %s6264_s1 = inlined_call_operand.hbm [shape: f32[384,1152], index: 1, kind: input, shape index: {}]   ;;  %s6265_s2 = inlined_call_operand.hbm [shape: f32[6,64,384], index: 2, kind: input, shape index: {}]   ;;  %s6266_s3 = inlined_call_operand.hbm [shape: f32[1,384], index: 3, kind: input, shape index: {}]   ;;  %s6267_s4 = inlined_call_operand.hbm [shape: f32[2,16,384], index: 4, kind: output, shape index: {}]  }
   0x1   :  { %6272 = sst [smem:[#allocation16_spill]] %s6264_s1 }
   0x2   :  { %9 = vsyncpa [#allocation4], 0 }
   0x3   :  { %11 = vsyncpa [#allocation4 + $0x1], 0 }
   0x4   :  { %12 = vsyncpa [#allocation7], 0 }
   0x5   :  { %13 = vsyncpa [#allocation10], 0 }
   0x6   :  { %14 = vsyncpa [#allocation5], 0 }
   0x7   :  { %16 = vsyncpa [#allocation5 + $0x1], 0  ;;  %s5652_s15 = smov 0   ;;  %s5654_s16 = smov 0  }
   0x8   :  { %s5656_s17 = smov 0   ;;  %s5658_s18 = smov 0  }
   0x9   :  { %s5660_s19 = smov 0   ;;  %s5662_s20 = smov 0  }
   0xa LB: > { %s4003_s21 = sadd.s32 4294967295, %s5612_s20   ;;  %s4004_s22 = sadd.s32 4294967294, %s5612_s20   ;;  %s5612_s20 = sphi %s5662_s20, %s22_s20   ;;  %s5608_s19 = sphi %s5660_s19, %s6299_s19   ;;  %s5604_s18 = sphi %s5658_s18, %s6298_s18   ;;  %s5600_s17 = sphi %s5656_s17, %s6297_s17   ;;  %s5596_s16 = sphi %s5654_s16, %s6296_s16   ;;  %s5592_s15 = sphi %s5652_s15, %s6295_s15  }
   0xb   : > { %p54_p0 = scmp.ne.s32.totalorder %s5596_s16, %s5592_s15  ;;  %p5686_p1 = scmp.eq.s32.totalorder %s4003_s21, 0 }
   0xc   : > { %p5690_p2 = scmp.eq.s32.totalorder %s4003_s21, 1  ;;  %p149_p3 = scmp.eq.s32.totalorder %s4004_s22, 1 }
   0xd   : > { %s6273_s23 = scalar_select %p5686_p1, 1, 0 }
   0xe   : > { %s6274_s24 = scalar_select %p5690_p2, 1, 0 }
   0xf   : > { %p5696_p4 = por %p5686_p1, %p54_p0  ;;  %p4005_p5 = scmp.ge.s32.totalorder %s5612_s20, 1 }
  0x10   : > { %p5701_p6 = por %p149_p3, %p54_p0  ;;  %p156_p7 = scmp.lt.s32.totalorder %s5612_s20, 3 }
  0x11   : > { %s6275_s25 = scalar_select %p5696_p4, 1, 0 }
  0x12   : > { %s6276_s26 = scalar_select %p5701_p6, 1, 0 }
  0x13   : > { %p5706_p8 = pnand %p4005_p5, %p156_p7  ;;  %s5614_s28 = smov [#allocation6]  }
  0x14   : > { %s168_s29 = sshll.u32 %s5614_s28, 4  ;;  %s5615_s5 = smov [#allocation8]   ;;  %s5710_s29 = int_to_ptr.vmem [resolvable:$true] %s168_s29 }
  0x15   : > { %s6277_s27 = scalar_select %p5706_p8, 1, 0 }
  0x16   : > { %p5241_p9 = pneg %p5706_p8  ;;  %s181_s6 = sshll.u32 %s5615_s5, 4  ;;  %s5721_s6 = int_to_ptr.vmem [resolvable:$true] %s181_s6 }
  0x17   : > { %s6279_s1 = sld [smem:[#allocation16_spill]] }
  0x18   : > { %p5717_p11 = pnand %p5241_p9, %p5686_p1 }
  0x1a   : > { %p5731_p13 = pneg %p5717_p11 }
  0x1d   : > { %s5408_s9 = scalar_lea.hbm %s6279_s1, 55296 }
  0x1e   : > { %p5409_p12 = scmp.ne.s32.totalorder %s6279_s1, %s5408_s9  ;;  %p5415_p5 = scmp.lt.u32.totalorder %s5408_s9, %s6279_s1 }
  0x20   : > { %p5411_p0 = pnand %p5731_p13, %p5409_p12 }
  0x22   : > { %p5412_p3 = pneg %p5411_p0 }
  0x24   : > { %p5417_p7 = pnand %p5415_p5, %p5412_p3 }
  0x26   : > { %5420 = shalt.err (!%p5417_p7)
}
  0x27   : > { %s5421_s21 = scalar_lea.vmem %s5710_s29, 55296  ;;  %p5429_p1 = scmp.lt.s32.totalorder %s5710_s29, %s5710_s29 }
  0x28   : > { %p5422_p9 = scmp.ne.s32.totalorder %s5710_s29, %s5421_s21  ;;  %p5430_p4 = scmp.lt.s32.totalorder %s5421_s21, %s5421_s21 }
  0x2a   : > { %p5424_p10 = pnand %p5422_p9, %p5731_p13  ;;  %p5431_p12 = por %p5430_p4, %p5429_p1 }
  0x2c   : > { %p5425_p6 = pneg %p5424_p10 }
  0x2e   : > { %p5432_p0 = pnand %p5431_p12, %p5425_p6 }
  0x30   : > { %5435 = shalt.err (!%p5432_p0)
}
  0x31   : > { %s5616_s22 = smov 1152   ;;  %s5617_s28 = smov 72  }
  0x32   : > { %5244 = dma.hbm_to_vmem [thread:$0]  (!%p5717_p11), %s6279_s1, 55296, %s5710_s29, [#allocation7], %s5616_s22, %s5616_s22, %s5617_s28  }
  0x33   : > { %s5436_s10 = scalar_lea.hbm %s6265_s2, 18432 }
  0x34   : > { %p5437_p1 = scmp.ne.s32.totalorder %s6265_s2, %s5436_s10  ;;  %p5443_p10 = scmp.lt.u32.totalorder %s5436_s10, %s6265_s2 }
  0x36   : > { %p5439_p4 = pnand %p5437_p1, %p5731_p13 }
  0x38   : > { %p5440_p6 = pneg %p5439_p4 }
  0x3a   : > { %p5445_p3 = pnand %p5443_p10, %p5440_p6 }
  0x3c   : > { %5448 = shalt.err (!%p5445_p3)
}
  0x3d   : > { %s5449_s29 = scalar_lea.vmem %s5721_s6, 18432  ;;  %p5457_p12 = scmp.lt.s32.totalorder %s5721_s6, %s5721_s6 }
  0x3e   : > { %p5450_p5 = scmp.ne.s32.totalorder %s5721_s6, %s5449_s29  ;;  %p5458_p0 = scmp.lt.s32.totalorder %s5449_s29, %s5449_s29 }
  0x40   : > { %p5452_p7 = pnand %p5450_p5, %p5731_p13  ;;  %p5459_p1 = por %p5458_p0, %p5457_p12 }
  0x42   : > { %p5453_p9 = pneg %p5452_p7 }
  0x44   : > { %p5460_p4 = pnand %p5459_p1, %p5453_p9 }
  0x46   : > { %5463 = shalt.err (!%p5460_p4)
}
  0x47   : > { %s5618_s22 = smov 384   ;;  %s5619_s28 = smov 24  }
  0x48   : > { %5247 = dma.hbm_to_vmem [thread:$0]  (!%p5717_p11), %s6265_s2, 18432, %s5721_s6, [#allocation7], %s5618_s22, %s5618_s22, %s5619_s28  }
  0x49   : > { %s5620_s8 = smov [#allocation9]   ;;  %s5464_s13 = scalar_lea.hbm %s6266_s3, 48 }
  0x4a   : > { %s195_s9 = sshll.u32 %s5620_s8, 4  ;;  %p5465_p6 = scmp.ne.s32.totalorder %s6266_s3, %s5464_s13  ;;  %s196_s9 = int_to_ptr.vmem [resolvable:$true] %s195_s9 }
  0x4b   : > { %p5471_p5 = scmp.lt.u32.totalorder %s5464_s13, %s6266_s3 }
  0x4c   : > { %p5467_p10 = pnand %p5465_p6, %p5731_p13 }
  0x4e   : > { %p5468_p3 = pneg %p5467_p10 }
  0x50   : > { %p5473_p7 = pnand %p5471_p5, %p5468_p3 }
  0x52   : > { %5476 = shalt.err (!%p5473_p7)
}
  0x53   : > { %s5477_s6 = scalar_lea.vmem %s196_s9, 48  ;;  %s5484_s5 = scalar_lea.vmem %s196_s9, 64 }
  0x54   : > { %p5478_p9 = scmp.ne.s32.totalorder %s196_s9, %s5477_s6  ;;  %p5485_p1 = scmp.lt.s32.totalorder %s196_s9, %s196_s9 }
  0x55   : > { %p5486_p4 = scmp.lt.s32.totalorder %s5484_s5, %s5477_s6 }
  0x56   : > { %p5480_p12 = pnand %p5478_p9, %p5731_p13 }
  0x57   : > { %p5487_p8 = por %p5486_p4, %p5485_p1 }
  0x58   : > { %p5481_p0 = pneg %p5480_p12 }
  0x5a   : > { %p5488_p2 = pnand %p5487_p8, %p5481_p0 }
  0x5c   : > { %5491 = shalt.err (!%p5488_p2)
}
  0x5d   : > { %5250 = dma.hbm_to_vmem [thread:$0]  (!%p5717_p11), %s6266_s3, 48, %s196_s9, [#allocation10]  }
  0x5e   : > { %s34_s1 = sadd.s32 1, %s5608_s19  ;;  %s41_s12 = sadd.s32 1, %s5600_s17 }
  0x5f   : > { %p36_p8 = scmp.ge.s32.totalorder %s34_s1, 2  ;;  %p48_p2 = scmp.ne.s32.totalorder %s5600_s17, %s5596_s16 }
  0x60   : > { %p49_p13 = scmp.eq.s32.totalorder %s5612_s20, 0  ;;  %p6281_p10 = scmp.ne.s32.totalorder %s6274_s24, 0 }
  0x61   : > { %s6301_s1 = smov (%p36_p8, %s34_s1), 0  ;;  %p5262_p5 = scmp.lt.s32.totalorder %s5612_s20, 2 }
  0x62   : > { %p50_p6 = por %p49_p13, %p48_p2  ;;  %p5805_p3 = por %p6281_p10, %p48_p2 }
  0x63   : > { %s38_s10 = ssub.s32 %s5608_s19, %s6301_s1  ;;  %s206_s11 = sand.u32 1, %s5600_s17  }
  0x64   : > { %p39_p7 = scmp.eq.s32.totalorder %s38_s10, 0  ;;  %s5221_s13 = smul.u32 48, %s206_s11 }
  0x65   : > { %s5222_s14 = smul.u32 768, %s5608_s19  ;;  %p5817_p11 = pnand %p5262_p5, %p50_p6 }
  0x66   : > { %s5814_s9 = scalar_select %p39_p7, %s5600_s17, %s41_s12  }
  0x67   : > { %s210_s21 = scalar_lea.vmem [#allocation3], %s5221_s13  ;;  %s5824_s7 = scalar_lea.hbm %s6263_s0, %s5222_s14 }
  0x68   : > { %s217_s29 = sshll.u32 %s210_s21, 4  ;;  %s5828_s8 = scalar_lea.sflag [#allocation4], %s206_s11  ;;  %s5826_s29 = int_to_ptr.vmem [resolvable:$true] %s217_s29 }
  0x69   : > { %s5492_s12 = scalar_lea.hbm %s5824_s7, 768  ;;  %p5494_p12 = pneg %p5817_p11 }
  0x6a   : > { %p5493_p9 = scmp.ne.s32.totalorder %s5824_s7, %s5492_s12  ;;  %s5497_s14 = scalar_lea.hbm %s6263_s0, 1536 }
  0x6b   : > { %p5498_p4 = scmp.lt.u32.totalorder %s5824_s7, %s6263_s0  ;;  %p5499_p8 = scmp.lt.u32.totalorder %s5497_s14, %s5492_s12 }
  0x6c   : > { %p5495_p0 = pnand %p5494_p12, %p5493_p9  ;;  %p5501_p13 = scmp.lt.u32.totalorder %s5492_s12, %s5824_s7 }
  0x6d   : > { %p5500_p2 = por %p5499_p8, %p5498_p4 }
  0x6e   : > { %p5496_p1 = pneg %p5495_p0 }
  0x6f   : > { %p5502_p6 = por %p5501_p13, %p5500_p2 }
  0x71   : > { %p5503_p10 = pnand %p5502_p6, %p5496_p1 }
  0x73   : > { %5506 = shalt.err (!%p5503_p10)
}
  0x74   : > { %s5507_s11 = scalar_lea.vmem %s5826_s29, 768  ;;  %s5621_s24 = smov [#allocation3]  }
  0x75   : > { %p5508_p5 = scmp.ne.s32.totalorder %s5826_s29, %s5507_s11  ;;  %s5512_s10 = sshll.u32 %s5621_s24, 4  ;;  %s5513_s10 = int_to_ptr.vmem [resolvable:$false] %s5512_s10 }
  0x76   : > { %s5514_s13 = scalar_lea.vmem %s5513_s10, 1536  ;;  %p5515_p0 = scmp.lt.s32.totalorder %s5826_s29, %s5513_s10 }
  0x77   : > { %p5510_p7 = pnand %p5508_p5, %p5494_p12  ;;  %p5516_p4 = scmp.lt.s32.totalorder %s5514_s13, %s5507_s11 }
  0x79   : > { %p5511_p9 = pneg %p5510_p7  ;;  %p5517_p8 = por %p5516_p4, %p5515_p0 }
  0x7b   : > { %p5518_p2 = pnand %p5517_p8, %p5511_p9 }
  0x7d   : > { %5521 = shalt.err (!%p5518_p2)
}
  0x7e   : > { %5254 = dma.hbm_to_vmem [thread:$0]  (!%p5817_p11), %s5824_s7, 768, %s5826_s29, %s5828_s8, %s5618_s22, %s5618_s22, %s5619_s28  }
  0x7f   : > { %p6284_p12 = scmp.ne.s32.totalorder %s6277_s27, 0 }
  0x80   : > { %s5862_s12 = sand.u32 (!%p6284_p12), 1, %s5596_s16   ;;  %p6285_p1 = scmp.ne.s32.totalorder (!%p6284_p12), %s6275_s25, 0 }
  0x81   : > { %229 = sbr.rel (%p6284_p12) target bundleno = 5029 (0x13a5), region = 36  ;;  %s232_s21 = scalar_lea.sflag (!%p6284_p12), [#allocation4], %s5862_s12 }
  0x82   : > { %s5223_s14 = smul.u32 (!%p6284_p12), 48, %s5862_s12 }
  0x84   : > { %s5868_s6 = scalar_lea.vmem (!%p6284_p12), [#allocation3], %s5223_s14 }
  0x88   : > { %5575 = dma.done.wait (%p6285_p1), %s232_s21, 768  }
  0x89   : > { %5577 = vsyncadd (%p6285_p1), %s232_s21, 4294966528  ;;  %p6286_p11 = scmp.ne.s32.totalorder %s6273_s23, 0 }
  0x8b   : > { %5579 = dma.done.wait (%p6286_p11), [#allocation7], 73728  }
  0x8c   : > { %5581 = vsyncadd (%p6286_p11), [#allocation7], 4294893568 }
  0x8d   : > { %5583 = dma.done.wait (%p6286_p11), [#allocation10], 48  }
  0x8e   : > { %5585 = vsyncadd (%p6286_p11), [#allocation10], 4294967248  ;;  %v284_v0 = vld [vmem:[#allocation6 + $0x8] sm:$0xff]  ;;  %v293_v1 = vld [vmem:[#allocation6 + $0x50] sm:$0xff]  ;;  %vm1531_vm0 = vcmask 523264   ;;  %s5623_s23 = smov 64  }
  0x8f   : > { %v286_v2 = vld [vmem:[#allocation6 + $0x18] sm:$0xff]  ;;  %v4475_v3 = vpack.c.bf16 %v293_v1, %v284_v0  ;;  %v295_v4 = vld [vmem:[#allocation6 + $0x60] sm:$0xff]  ;;  %v292_v6 = vld [vmem:[#allocation6 + $0x48] sm:$0xff]  ;;  %vm1621_vm3 = vcmask 130048   ;;  %s271_s25 = scalar_lea.vmem [#allocation11], %s5223_s14  ;;  %s5224_s22 = smul.u32 768, %s5604_s18 }
  0x90   : > { %v283_v5 = vld [vmem:[#allocation6] sm:$0xff]  ;;  %v4571_v7 = vpack.c.bf16 %v295_v4, %v286_v2  ;;  %v285_v9 = vld [vmem:[#allocation6 + $0x10] sm:$0xff]  ;;  %v294_v10 = vld [vmem:[#allocation6 + $0x58] sm:$0xff]  ;;  %s3888_s27 = sshll.u32 %s271_s25, 4  ;;  %s3872_s7 = scalar_lea.sflag [#allocation5], %s5862_s12  ;;  %s6209_s27 = int_to_ptr.vmem [resolvable:$true] %s3888_s27 }
  0x91   : > { %v4477_v8 = vpack.c.bf16 %v292_v6, %v283_v5  ;;  %v302_v11 = vld [vmem:[#allocation6 + $0x98] sm:$0xff]  ;;  %4476 = vmatprep.subr.bf16.mxu0 %v4475_v3  ;;  %v4573_v12 = vpack.c.bf16 %v294_v10, %v285_v9  ;;  %v311_v13 = vld [vmem:[#allocation6 + $0xe0] sm:$0xff]  ;;  %v304_v14 = vld [vmem:[#allocation6 + $0xa8] sm:$0xff]  ;;  %s6214_s29 = scalar_lea.hbm %s6267_s4, %s5224_s22  ;;  %s5522_s8 = scalar_lea.vmem %s6209_s27, 768 }
  0x92   : > { %v313_v15 = vld [vmem:[#allocation6 + $0xf0] sm:$0xff]  ;;  %4572 = vmatprep.subr.bf16.mxu1 %v4571_v7  ;;  %v4479_v16 = vpack.c.bf16 %v311_v13, %v302_v11  ;;  %v310_v19 = vld [vmem:[#allocation6 + $0xd8] sm:$0xff]  ;;  %v303_v20 = vld [vmem:[#allocation6 + $0xa0] sm:$0xff]  ;;  %p5523_p13 = scmp.ne.s32.totalorder %s6209_s27, %s5522_s8  ;;  %s5624_s5 = smov [#allocation11]  }
  0x93   : > { %4478 = vmatpush1.bf16.msra.mxu0 %v4477_v8  ;;  %v4575_v17 = vpack.c.bf16 %v313_v15, %v304_v14  ;;  %v301_v18 = vld [vmem:[#allocation6 + $0x90] sm:$0xff]  ;;  %4574 = vmatpush1.bf16.msra.mxu1 %v4573_v12  ;;  %v312_v22 = vld [vmem:[#allocation6 + $0xe8] sm:$0xff]  ;;  %v322_v27 = vld [vmem:[#allocation6 + $0x138] sm:$0xff]  ;;  %s5526_s11 = sshll.u32 %s5624_s5, 4  ;;  %s5527_s11 = int_to_ptr.vmem [resolvable:$false] %s5526_s11 }
  0x94   : > { %v4481_v21 = vpack.c.bf16 %v310_v19, %v301_v18  ;;  %v320_v23 = vld [vmem:[#allocation6 + $0x128] sm:$0xff]  ;;  %v329_v24 = vld [vmem:[#allocation6 + $0x170] sm:$0xff]  ;;  %4480 = vmatprep.subr.bf16.mxu0 %v4479_v16  ;;  %v4577_v25 = vpack.c.bf16 %v312_v22, %v303_v20  ;;  %v331_v28 = vld [vmem:[#allocation6 + $0x180] sm:$0xff]  ;;  %p5524_p6 = pnand %p5523_p13, %p5805_p3  ;;  %s5528_s24 = scalar_lea.vmem %s5527_s11, 1536 }
  0x95   : > { %4576 = vmatprep.subr.bf16.mxu1 %v4575_v17  ;;  %v4483_v26 = vpack.c.bf16 %v329_v24, %v320_v23  ;;  %v319_v29 = vld [vmem:[#allocation6 + $0x120] sm:$0xff]  ;;  %v4579_v30 = vpack.c.bf16 %v331_v28, %v322_v27  ;;  %v328_v31 = vld [vmem:[#allocation6 + $0x168] sm:$0xff]  ;;  %v321_v32 = vld [vmem:[#allocation6 + $0x130] sm:$0xff]  ;;  %p5529_p5 = scmp.lt.s32.totalorder %s6209_s27, %s5527_s11  ;;  %p5530_p7 = scmp.lt.s32.totalorder %s5528_s24, %s5522_s8 }
  0x96   : > { %v330_v33 = vld [vmem:[#allocation6 + $0x178] sm:$0xff]  ;;  %v4485_v34 = vpack.c.bf16 %v328_v31, %v319_v29  ;;  %v347_v36 = vld [vmem:[#allocation6 + $0x200] sm:$0xff]  ;;  %v340_v37 = vld [vmem:[#allocation6 + $0x1c8] sm:$0xff]  ;;  %p5525_p10 = pneg %p5524_p6 }
  0x97   : > { %4482 = vmatpush1.bf16.msra.mxu0 %v4481_v21  ;;  %v338_v35 = vld [vmem:[#allocation6 + $0x1b8] sm:$0xff]  ;;  %4578 = vmatpush1.bf16.msra.mxu1 %v4577_v25  ;;  %v4581_v38 = vpack.c.bf16 %v330_v33, %v321_v32  ;;  %v349_v40 = vld [vmem:[#allocation6 + $0x210] sm:$0xff]  ;;  %v339_v44 = vld [vmem:[#allocation6 + $0x1c0] sm:$0xff]  ;;  %p5531_p9 = por %p5530_p7, %p5529_p5 }
  0x98   : > { %4484 = vmatprep.subr.bf16.mxu0 %v4483_v26  ;;  %v4487_v39 = vpack.c.bf16 %v347_v36, %v338_v35  ;;  %v337_v41 = vld [vmem:[#allocation6 + $0x1b0] sm:$0xff]  ;;  %v346_v42 = vld [vmem:[#allocation6 + $0x1f8] sm:$0xff]  ;;  %4580 = vmatprep.subr.bf16.mxu1 %v4579_v30  ;;  %v4583_v43 = vpack.c.bf16 %v349_v40, %v340_v37  ;;  %v348_v45 = vld [vmem:[#allocation6 + $0x208] sm:$0xff] }
  0x99   : > { %v356_v46 = vld [vmem:[#allocation6 + $0x248] sm:$0xff]  ;;  %v365_v47 = vld [vmem:[#allocation6 + $0x290] sm:$0xff]  ;;  %v358_v48 = vld [vmem:[#allocation6 + $0x258] sm:$0xff]  ;;  %v4489_v50 = vpack.c.bf16 %v346_v42, %v337_v41  ;;  %v4585_v51 = vpack.c.bf16 %v348_v45, %v339_v44  ;;  %p5532_p0 = pnand %p5531_p9, %p5525_p10 }
  0x9a   : > { %v367_v49 = vld [vmem:[#allocation6 + $0x2a0] sm:$0xff]  ;;  %v4491_v52 = vpack.c.bf16 %v365_v47, %v356_v46  ;;  %v364_v54 = vld [vmem:[#allocation6 + $0x288] sm:$0xff]  ;;  %v357_v55 = vld [vmem:[#allocation6 + $0x250] sm:$0xff] }
  0x9b   : > { %4486 = vmatpush1.bf16.msra.mxu0 %v4485_v34  ;;  %4582 = vmatpush1.bf16.msra.mxu1 %v4581_v38  ;;  %v355_v53 = vld [vmem:[#allocation6 + $0x240] sm:$0xff]  ;;  %v4587_v56 = vpack.c.bf16 %v367_v49, %v358_v48  ;;  %v366_v57 = vld [vmem:[#allocation6 + $0x298] sm:$0xff]  ;;  %v376_v60 = vld [vmem:[#allocation6 + $0x2e8] sm:$0xff] }
  0x9c   : > { %4488 = vmatprep.subr.bf16.mxu0 %v4487_v39  ;;  %4584 = vmatprep.subr.bf16.mxu1 %v4583_v43  ;;  %v374_v58 = vld [vmem:[#allocation6 + $0x2d8] sm:$0xff]  ;;  %v383_v59 = vld [vmem:[#allocation6 + $0x320] sm:$0xff]  ;;  %v385_v61 = vld [vmem:[#allocation6 + $0x330] sm:$0xff]  ;;  %v4493_v62 = vpack.c.bf16 %v364_v54, %v355_v53  ;;  %v4589_v63 = vpack.c.bf16 %v366_v57, %v357_v55 }
  0x9d   : > { %v4495_v0 = vpack.c.bf16 %v383_v59, %v374_v58  ;;  %v373_v1 = vld [vmem:[#allocation6 + $0x2d0] sm:$0xff]  ;;  %v382_v2 = vld [vmem:[#allocation6 + $0x318] sm:$0xff]  ;;  %v375_v3 = vld [vmem:[#allocation6 + $0x2e0] sm:$0xff]  ;;  %v4591_v4 = vpack.c.bf16 %v385_v61, %v376_v60 }
  0x9e   : > { %v384_v5 = vld [vmem:[#allocation6 + $0x328] sm:$0xff]  ;;  %v401_v7 = vld [vmem:[#allocation6 + $0x3b0] sm:$0xff]  ;;  %v394_v8 = vld [vmem:[#allocation6 + $0x378] sm:$0xff]  ;;  %v4497_v10 = vpack.c.bf16 %v382_v2, %v373_v1 }
  0x9f   : > { %4490 = vmatpush1.bf16.msra.mxu0 %v4489_v50  ;;  %4586 = vmatpush1.bf16.msra.mxu1 %v4585_v51  ;;  %v392_v6 = vld [vmem:[#allocation6 + $0x368] sm:$0xff]  ;;  %v403_v9 = vld [vmem:[#allocation6 + $0x3c0] sm:$0xff]  ;;  %v4593_v11 = vpack.c.bf16 %v384_v5, %v375_v3  ;;  %v393_v15 = vld [vmem:[#allocation6 + $0x370] sm:$0xff] }
  0xa0   : > { %4492 = vmatprep.subr.bf16.mxu0 %v4491_v52  ;;  %4588 = vmatprep.subr.bf16.mxu1 %v4587_v56  ;;  %v4499_v12 = vpack.c.bf16 %v401_v7, %v392_v6  ;;  %v391_v13 = vld [vmem:[#allocation6 + $0x360] sm:$0xff]  ;;  %v400_v14 = vld [vmem:[#allocation6 + $0x3a8] sm:$0xff]  ;;  %v4595_v16 = vpack.c.bf16 %v403_v9, %v394_v8  ;;  %v402_v17 = vld [vmem:[#allocation6 + $0x3b8] sm:$0xff] }
  0xa1   : > { %v410_v18 = vld [vmem:[#allocation6 + $0x3f8] sm:$0xff]  ;;  %v419_v19 = vld [vmem:[#allocation6 + $0x440] sm:$0xff]  ;;  %v412_v20 = vld [vmem:[#allocation6 + $0x408] sm:$0xff]  ;;  %v4501_v22 = vpack.c.bf16 %v400_v14, %v391_v13  ;;  %v4597_v23 = vpack.c.bf16 %v402_v17, %v393_v15 }
  0xa2   : > { %v421_v21 = vld [vmem:[#allocation6 + $0x450] sm:$0xff]  ;;  %v4503_v24 = vpack.c.bf16 %v419_v19, %v410_v18  ;;  %v418_v26 = vld [vmem:[#allocation6 + $0x438] sm:$0xff]  ;;  %v411_v27 = vld [vmem:[#allocation6 + $0x400] sm:$0xff] }
  0xa3   : > { %4494 = vmatpush1.bf16.msra.mxu0 %v4493_v62  ;;  %4590 = vmatpush1.bf16.msra.mxu1 %v4589_v63  ;;  %v409_v25 = vld [vmem:[#allocation6 + $0x3f0] sm:$0xff]  ;;  %v4599_v28 = vpack.c.bf16 %v421_v21, %v412_v20  ;;  %v420_v29 = vld [vmem:[#allocation6 + $0x448] sm:$0xff]  ;;  %v430_v32 = vld [vmem:[#allocation6 + $0x498] sm:$0xff] }
  0xa4   : > { %4496 = vmatprep.subr.bf16.mxu0 %v4495_v0  ;;  %4592 = vmatprep.subr.bf16.mxu1 %v4591_v4  ;;  %v428_v30 = vld [vmem:[#allocation6 + $0x488] sm:$0xff]  ;;  %v437_v31 = vld [vmem:[#allocation6 + $0x4d0] sm:$0xff]  ;;  %v439_v33 = vld [vmem:[#allocation6 + $0x4e0] sm:$0xff]  ;;  %v4505_v34 = vpack.c.bf16 %v418_v26, %v409_v25  ;;  %v4601_v35 = vpack.c.bf16 %v420_v29, %v411_v27 }
  0xa5   : > { %v4507_v36 = vpack.c.bf16 %v437_v31, %v428_v30  ;;  %v427_v37 = vld [vmem:[#allocation6 + $0x480] sm:$0xff]  ;;  %v436_v38 = vld [vmem:[#allocation6 + $0x4c8] sm:$0xff]  ;;  %v429_v39 = vld [vmem:[#allocation6 + $0x490] sm:$0xff]  ;;  %v4603_v40 = vpack.c.bf16 %v439_v33, %v430_v32 }
  0xa6   : > { %v438_v41 = vld [vmem:[#allocation6 + $0x4d8] sm:$0xff]  ;;  %v455_v43 = vld [vmem:[#allocation6 + $0x560] sm:$0xff]  ;;  %v448_v44 = vld [vmem:[#allocation6 + $0x528] sm:$0xff]  ;;  %v4509_v46 = vpack.c.bf16 %v436_v38, %v427_v37 }
  0xa7   : > { %4498 = vmatpush1.bf16.msra.mxu0 %v4497_v10  ;;  %4594 = vmatpush1.bf16.msra.mxu1 %v4593_v11  ;;  %v446_v42 = vld [vmem:[#allocation6 + $0x518] sm:$0xff]  ;;  %v457_v45 = vld [vmem:[#allocation6 + $0x570] sm:$0xff]  ;;  %v4605_v47 = vpack.c.bf16 %v438_v41, %v429_v39  ;;  %v447_v51 = vld [vmem:[#allocation6 + $0x520] sm:$0xff] }
  0xa8   : > { %4500 = vmatprep.subr.bf16.mxu0 %v4499_v12  ;;  %4596 = vmatprep.subr.bf16.mxu1 %v4595_v16  ;;  %v4511_v48 = vpack.c.bf16 %v455_v43, %v446_v42  ;;  %v445_v49 = vld [vmem:[#allocation6 + $0x510] sm:$0xff]  ;;  %v454_v50 = vld [vmem:[#allocation6 + $0x558] sm:$0xff]  ;;  %v4607_v52 = vpack.c.bf16 %v457_v45, %v448_v44  ;;  %v456_v53 = vld [vmem:[#allocation6 + $0x568] sm:$0xff] }
  0xa9   : > { %v464_v54 = vld [vmem:[#allocation6 + $0x5a8] sm:$0xff]  ;;  %v473_v55 = vld [vmem:[#allocation6 + $0x5f0] sm:$0xff]  ;;  %v466_v56 = vld [vmem:[#allocation6 + $0x5b8] sm:$0xff]  ;;  %v4513_v58 = vpack.c.bf16 %v454_v50, %v445_v49  ;;  %v4609_v59 = vpack.c.bf16 %v456_v53, %v447_v51 }
  0xaa   : > { %v475_v57 = vld [vmem:[#allocation6 + $0x600] sm:$0xff]  ;;  %v4515_v60 = vpack.c.bf16 %v473_v55, %v464_v54  ;;  %v472_v62 = vld [vmem:[#allocation6 + $0x5e8] sm:$0xff]  ;;  %v465_v63 = vld [vmem:[#allocation6 + $0x5b0] sm:$0xff] }
  0xab   : > { %4502 = vmatpush1.bf16.msra.mxu0 %v4501_v22  ;;  %4598 = vmatpush1.bf16.msra.mxu1 %v4597_v23  ;;  %v463_v61 = vld [vmem:[#allocation6 + $0x5a0] sm:$0xff]  ;;  %v4611_v0 = vpack.c.bf16 %v475_v57, %v466_v56  ;;  %v474_v1 = vld [vmem:[#allocation6 + $0x5f8] sm:$0xff]  ;;  %v484_v4 = vld [vmem:[#allocation6 + $0x648] sm:$0xff] }
  0xac   : > { %4504 = vmatprep.subr.bf16.mxu0 %v4503_v24  ;;  %4600 = vmatprep.subr.bf16.mxu1 %v4599_v28  ;;  %v482_v2 = vld [vmem:[#allocation6 + $0x638] sm:$0xff]  ;;  %v491_v3 = vld [vmem:[#allocation6 + $0x680] sm:$0xff]  ;;  %v493_v5 = vld [vmem:[#allocation6 + $0x690] sm:$0xff]  ;;  %v4517_v6 = vpack.c.bf16 %v472_v62, %v463_v61  ;;  %v4613_v8 = vpack.c.bf16 %v474_v1, %v465_v63 }
  0xad   : > { %v481_v7 = vld [vmem:[#allocation6 + $0x630] sm:$0xff]  ;;  %v4519_v9 = vpack.c.bf16 %v491_v3, %v482_v2  ;;  %v490_v10 = vld [vmem:[#allocation6 + $0x678] sm:$0xff]  ;;  %v483_v11 = vld [vmem:[#allocation6 + $0x640] sm:$0xff]  ;;  %v4615_v13 = vpack.c.bf16 %v493_v5, %v484_v4 }
  0xae   : > { %v492_v12 = vld [vmem:[#allocation6 + $0x688] sm:$0xff]  ;;  %v509_v15 = vld [vmem:[#allocation6 + $0x710] sm:$0xff]  ;;  %v502_v17 = vld [vmem:[#allocation6 + $0x6d8] sm:$0xff]  ;;  %v4521_v19 = vpack.c.bf16 %v490_v10, %v481_v7 }
  0xaf   : > { %4506 = vmatpush1.bf16.msra.mxu0 %v4505_v34  ;;  %4602 = vmatpush1.bf16.msra.mxu1 %v4601_v35  ;;  %v500_v14 = vld [vmem:[#allocation6 + $0x6c8] sm:$0xff]  ;;  %v511_v18 = vld [vmem:[#allocation6 + $0x720] sm:$0xff]  ;;  %v4617_v20 = vpack.c.bf16 %v492_v12, %v483_v11  ;;  %v501_v24 = vld [vmem:[#allocation6 + $0x6d0] sm:$0xff] }
  0xb0   : > { %4508 = vmatprep.subr.bf16.mxu0 %v4507_v36  ;;  %4604 = vmatprep.subr.bf16.mxu1 %v4603_v40  ;;  %v5883_v16 = vld [vmem:[%s5868_s6 + $0x8] sm:$0xff]  ;;  %v4523_v21 = vpack.c.bf16 %v509_v15, %v500_v14  ;;  %v499_v22 = vld [vmem:[#allocation6 + $0x6c0] sm:$0xff]  ;;  %v4619_v25 = vpack.c.bf16 %v511_v18, %v502_v17  ;;  %v529_v30 = vld [vmem:[#allocation6 + $0x7b0] sm:$0xff] }
  0xb1   : > { %779 = vmatprep.mubr.f32.mxu0 %v5883_v16  ;;  %933 = vmatprep.mubr.f32.mxu1 %v5883_v16  ;;  %v508_v23 = vld [vmem:[#allocation6 + $0x708] sm:$0xff]  ;;  %v510_v26 = vld [vmem:[#allocation6 + $0x718] sm:$0xff]  ;;  %v527_v28 = vld [vmem:[#allocation6 + $0x7a0] sm:$0xff] }
  0xb2   : > { %v518_v27 = vld [vmem:[#allocation6 + $0x758] sm:$0xff]  ;;  %v520_v29 = vld [vmem:[#allocation6 + $0x768] sm:$0xff]  ;;  %v4525_v31 = vpack.c.bf16 %v508_v23, %v499_v22  ;;  %v4621_v32 = vpack.c.bf16 %v510_v26, %v501_v24  ;;  %v517_v34 = vld [vmem:[#allocation6 + $0x750] sm:$0xff] }
  0xb3   : > { %4510 = vmatpush1.bf16.msra.mxu0 %v4509_v46  ;;  %4606 = vmatpush1.bf16.msra.mxu1 %v4605_v47  ;;  %v4527_v33 = vpack.c.bf16 %v527_v28, %v518_v27  ;;  %v526_v35 = vld [vmem:[#allocation6 + $0x798] sm:$0xff]  ;;  %v519_v36 = vld [vmem:[#allocation6 + $0x760] sm:$0xff]  ;;  %v4623_v37 = vpack.c.bf16 %v529_v30, %v520_v29  ;;  %v528_v38 = vld [vmem:[#allocation6 + $0x7a8] sm:$0xff] }
  0xb4   : > { %4512 = vmatprep.subr.bf16.mxu0 %v4511_v48  ;;  %4608 = vmatprep.subr.bf16.mxu1 %v4607_v52  ;;  %v536_v39 = vld [vmem:[#allocation6 + $0x7e8] sm:$0xff]  ;;  %v545_v40 = vld [vmem:[#allocation6 + $0x830] sm:$0xff]  ;;  %v538_v41 = vld [vmem:[#allocation6 + $0x7f8] sm:$0xff]  ;;  %v4529_v43 = vpack.c.bf16 %v526_v35, %v517_v34  ;;  %v4625_v44 = vpack.c.bf16 %v528_v38, %v519_v36 }
  0xb5   : > { %v547_v42 = vld [vmem:[#allocation6 + $0x840] sm:$0xff]  ;;  %v4531_v45 = vpack.c.bf16 %v545_v40, %v536_v39  ;;  %v544_v47 = vld [vmem:[#allocation6 + $0x828] sm:$0xff]  ;;  %v537_v48 = vld [vmem:[#allocation6 + $0x7f0] sm:$0xff] }
  0xb6   : > { %v535_v46 = vld [vmem:[#allocation6 + $0x7e0] sm:$0xff]  ;;  %v4627_v49 = vpack.c.bf16 %v547_v42, %v538_v41  ;;  %v546_v50 = vld [vmem:[#allocation6 + $0x838] sm:$0xff]  ;;  %v556_v53 = vld [vmem:[#allocation6 + $0x888] sm:$0xff] }
  0xb7   : > { %4514 = vmatpush1.bf16.msra.mxu0 %v4513_v58  ;;  %4610 = vmatpush1.bf16.msra.mxu1 %v4609_v59  ;;  %v554_v51 = vld [vmem:[#allocation6 + $0x878] sm:$0xff]  ;;  %v563_v52 = vld [vmem:[#allocation6 + $0x8c0] sm:$0xff]  ;;  %v565_v54 = vld [vmem:[#allocation6 + $0x8d0] sm:$0xff]  ;;  %v4533_v55 = vpack.c.bf16 %v544_v47, %v535_v46  ;;  %v4629_v56 = vpack.c.bf16 %v546_v50, %v537_v48 }
  0xb8   : > { %4516 = vmatprep.subr.bf16.mxu0 %v4515_v60  ;;  %4612 = vmatprep.subr.bf16.mxu1 %v4611_v0  ;;  %v4535_v57 = vpack.c.bf16 %v563_v52, %v554_v51  ;;  %v553_v58 = vld [vmem:[#allocation6 + $0x870] sm:$0xff]  ;;  %v562_v59 = vld [vmem:[#allocation6 + $0x8b8] sm:$0xff]  ;;  %v555_v60 = vld [vmem:[#allocation6 + $0x880] sm:$0xff]  ;;  %v4631_v61 = vpack.c.bf16 %v565_v54, %v556_v53  ;;  %v5622_v53 = vmov 0.0  }
  0xb9   : > { %v564_v62 = vld [vmem:[#allocation6 + $0x8c8] sm:$0xff]  ;;  %v581_v0 = vld [vmem:[#allocation6 + $0x950] sm:$0xff]  ;;  %v574_v1 = vld [vmem:[#allocation6 + $0x918] sm:$0xff]  ;;  %v4537_v3 = vpack.c.bf16 %v562_v59, %v553_v58 }
  0xba   : > { %v572_v63 = vld [vmem:[#allocation6 + $0x908] sm:$0xff]  ;;  %v583_v2 = vld [vmem:[#allocation6 + $0x960] sm:$0xff]  ;;  %v4633_v4 = vpack.c.bf16 %v564_v62, %v555_v60  ;;  %v582_v10 = vld [vmem:[#allocation6 + $0x958] sm:$0xff] }
  0xbb   : > { %4518 = vmatpush1.bf16.msra.mxu0 %v4517_v6  ;;  %4614 = vmatpush1.bf16.msra.mxu1 %v4613_v8  ;;  %v4539_v5 = vpack.c.bf16 %v581_v0, %v572_v63  ;;  %v571_v6 = vld [vmem:[#allocation6 + $0x900] sm:$0xff]  ;;  %v580_v7 = vld [vmem:[#allocation6 + $0x948] sm:$0xff]  ;;  %v573_v8 = vld [vmem:[#allocation6 + $0x910] sm:$0xff] }
  0xbc   : > { %4520 = vmatprep.subr.bf16.mxu0 %v4519_v9  ;;  %4616 = vmatprep.subr.bf16.mxu1 %v4615_v13  ;;  %v4635_v9 = vpack.c.bf16 %v583_v2, %v574_v1  ;;  %v590_v11 = vld [vmem:[#allocation6 + $0x998] sm:$0xff]  ;;  %v599_v12 = vld [vmem:[#allocation6 + $0x9e0] sm:$0xff]  ;;  %v592_v13 = vld [vmem:[#allocation6 + $0x9a8] sm:$0xff]  ;;  %v4541_v17 = vpack.c.bf16 %v580_v7, %v571_v6  ;;  %v4637_v18 = vpack.c.bf16 %v582_v10, %v573_v8 }
  0xbd   : > { %v601_v14 = vld [vmem:[#allocation6 + $0x9f0] sm:$0xff]  ;;  %v591_v22 = vld [vmem:[#allocation6 + $0x9a0] sm:$0xff]  ;;  %v600_v24 = vld [vmem:[#allocation6 + $0x9e8] sm:$0xff] }
  0xbe   : > { %v5888_v15 = vld [vmem:[%s5868_s6] sm:$0xff]  ;;  %v4639_v23 = vpack.c.bf16 %v601_v14, %v592_v13  ;;  %v610_v27 = vld [vmem:[#allocation6 + $0xa38] sm:$0xff]  ;;  %v616_v35 = vld [vmem:[#allocation6 + $0xa68] sm:$0xff] }
  0xbf   : > { %4522 = vmatpush1.bf16.msra.mxu0 %v4521_v19  ;;  %4618 = vmatpush1.bf16.msra.mxu1 %v4617_v20  ;;  %v4543_v19 = vpack.c.bf16 %v599_v12, %v590_v11  ;;  %v589_v20 = vld [vmem:[#allocation6 + $0x990] sm:$0xff]  ;;  %v619_v28 = vld [vmem:[#allocation6 + $0xa80] sm:$0xff]  ;;  %v618_v38 = vld [vmem:[#allocation6 + $0xa78] sm:$0xff] }
  0xc0   : > { %4524 = vmatprep.subr.bf16.mxu0 %v4523_v21  ;;  %4620 = vmatprep.subr.bf16.mxu1 %v4619_v25  ;;  %v598_v21 = vld [vmem:[#allocation6 + $0x9d8] sm:$0xff]  ;;  %v608_v25 = vld [vmem:[#allocation6 + $0xa28] sm:$0xff]  ;;  %v617_v26 = vld [vmem:[#allocation6 + $0xa70] sm:$0xff] }
  0xc1   : > { %v5892_v29 = vld [vmem:[%s5868_s6 + $0x20] sm:$0xff]  ;;  %v4545_v30 = vpack.c.bf16 %v598_v21, %v589_v20  ;;  %v626_v39 = vld [vmem:[#allocation6 + $0xab8] sm:$0xff]  ;;  %v628_v41 = vld [vmem:[#allocation6 + $0xac8] sm:$0xff] }
  0xc2   : > { %v607_v34 = vld [vmem:[#allocation6 + $0xa20] sm:$0xff]  ;;  %v609_v36 = vld [vmem:[#allocation6 + $0xa30] sm:$0xff]  ;;  %v634_v47 = vld [vmem:[#allocation6 + $0xaf8] sm:$0xff] }
  0xc3   : > { %4526 = vmatpush1.bf16.msra.mxu0 %v4525_v31  ;;  %4622 = vmatpush1.bf16.msra.mxu1 %v4621_v32  ;;  %v5896_v31 = vld [vmem:[%s5868_s6 + $0x18] sm:$0xff]  ;;  %v4641_v32 = vpack.c.bf16 %v600_v24, %v591_v22  ;;  %v635_v40 = vld [vmem:[#allocation6 + $0xb00] sm:$0xff]  ;;  %v637_v42 = vld [vmem:[#allocation6 + $0xb10] sm:$0xff] }
  0xc4   : > { %4528 = vmatprep.subr.bf16.mxu0 %v4527_v33  ;;  %4624 = vmatprep.subr.bf16.mxu1 %v4623_v37  ;;  %v4547_v33 = vpack.c.bf16 %v617_v26, %v608_v25  ;;  %v4643_v37 = vpack.c.bf16 %v619_v28, %v610_v27  ;;  %v625_v46 = vld [vmem:[#allocation6 + $0xab0] sm:$0xff]  ;;  %v627_v48 = vld [vmem:[#allocation6 + $0xac0] sm:$0xff]  ;;  %v636_v50 = vld [vmem:[#allocation6 + $0xb08] sm:$0xff] }
  0xc5   : > { %v644_v51 = vld [vmem:[#allocation6 + $0xb48] sm:$0xff]  ;;  %v653_v52 = vld [vmem:[#allocation6 + $0xb90] sm:$0xff]  ;;  %v646_v54 = vld [vmem:[#allocation6 + $0xb58] sm:$0xff] }
  0xc6   : > { %v4555_v58 = vpack.c.bf16 %v653_v52, %v644_v51  ;;  %v643_v59 = vld [vmem:[#allocation6 + $0xb40] sm:$0xff]  ;;  %v652_v60 = vld [vmem:[#allocation6 + $0xb88] sm:$0xff]  ;;  %v654_v63 = vld [vmem:[#allocation6 + $0xb98] sm:$0xff] }
  0xc7   : > { %4530 = vmatpush1.bf16.msra.mxu0 %v4529_v43  ;;  %4626 = vmatpush1.bf16.msra.mxu1 %v4625_v44  ;;  %v4549_v43 = vpack.c.bf16 %v616_v35, %v607_v34  ;;  %v4645_v44 = vpack.c.bf16 %v618_v38, %v609_v36  ;;  %v662_v0 = vld [vmem:[#allocation6 + $0xbd8] sm:$0xff]  ;;  %v671_v1 = vld [vmem:[#allocation6 + $0xc20] sm:$0xff]  ;;  %v664_v2 = vld [vmem:[#allocation6 + $0xbe8] sm:$0xff] }
  0xc8   : > { %4532 = vmatprep.subr.bf16.mxu0 %v4531_v45  ;;  %4628 = vmatprep.subr.bf16.mxu1 %v4627_v49  ;;  %v4551_v45 = vpack.c.bf16 %v635_v40, %v626_v39  ;;  %v4647_v49 = vpack.c.bf16 %v637_v42, %v628_v41  ;;  %v4559_v6 = vpack.c.bf16 %v671_v1, %v662_v0  ;;  %v661_v7 = vld [vmem:[#allocation6 + $0xbd0] sm:$0xff]  ;;  %v670_v8 = vld [vmem:[#allocation6 + $0xc18] sm:$0xff]  ;;  %v672_v11 = vld [vmem:[#allocation6 + $0xc28] sm:$0xff] }
  0xc9   : > { %v680_v12 = vld [vmem:[#allocation6 + $0xc68] sm:$0xff]  ;;  %v689_v13 = vld [vmem:[#allocation6 + $0xcb0] sm:$0xff]  ;;  %v682_v14 = vld [vmem:[#allocation6 + $0xc78] sm:$0xff] }
  0xca   : > { %v4563_v20 = vpack.c.bf16 %v689_v13, %v680_v12  ;;  %v679_v21 = vld [vmem:[#allocation6 + $0xc60] sm:$0xff]  ;;  %v688_v22 = vld [vmem:[#allocation6 + $0xca8] sm:$0xff]  ;;  %v690_v25 = vld [vmem:[#allocation6 + $0xcb8] sm:$0xff] }
  0xcb   : > { %4534 = vmatpush1.bf16.msra.mxu0 %v4533_v55  ;;  %4630 = vmatpush1.bf16.msra.mxu1 %v4629_v56  ;;  %v655_v55 = vld [vmem:[#allocation6 + $0xba0] sm:$0xff]  ;;  %v4553_v56 = vpack.c.bf16 %v634_v47, %v625_v46  ;;  %v698_v26 = vld [vmem:[#allocation6 + $0xcf8] sm:$0xff]  ;;  %v700_v28 = vld [vmem:[#allocation6 + $0xd08] sm:$0xff] }
  0xcc   : > { %4536 = vmatprep.subr.bf16.mxu0 %v4535_v57  ;;  %4632 = vmatprep.subr.bf16.mxu1 %v4631_v61  ;;  %v4649_v57 = vpack.c.bf16 %v636_v50, %v627_v48  ;;  %v645_v61 = vld [vmem:[#allocation6 + $0xb50] sm:$0xff]  ;;  %v4651_v62 = vpack.c.bf16 %v655_v55, %v646_v54  ;;  %v707_v27 = vld [vmem:[#allocation6 + $0xd40] sm:$0xff]  ;;  %v706_v36 = vld [vmem:[#allocation6 + $0xd38] sm:$0xff] }
  0xcd   : > { %v4567_v34 = vpack.c.bf16 %v707_v27, %v698_v26  ;;  %v697_v35 = vld [vmem:[#allocation6 + $0xcf0] sm:$0xff]  ;;  %v708_v39 = vld [vmem:[#allocation6 + $0xd48] sm:$0xff]  ;;  %v290_v42 = vld [vmem:[#allocation6 + $0x38] sm:$0xff] }
  0xce   : > { %v288_v40 = vld [vmem:[#allocation6 + $0x28] sm:$0xff]  ;;  %v297_v41 = vld [vmem:[#allocation6 + $0x70] sm:$0xff]  ;;  %v287_v47 = vld [vmem:[#allocation6 + $0x20] sm:$0xff] }
  0xcf   : > { %4538 = vmatpush1.bf16.msra.mxu0 %v4537_v3  ;;  %4634 = vmatpush1.bf16.msra.mxu1 %v4633_v4  ;;  %v673_v3 = vld [vmem:[#allocation6 + $0xc30] sm:$0xff]  ;;  %v4557_v4 = vpack.c.bf16 %v652_v60, %v643_v59  ;;  %v4667_v46 = vpack.c.bf16 %v297_v41, %v288_v40  ;;  %v296_v48 = vld [vmem:[#allocation6 + $0x68] sm:$0xff]  ;;  %v315_v51 = vld [vmem:[#allocation6 + $0x100] sm:$0xff] }
  0xd0   : > { %4540 = vmatprep.subr.bf16.mxu0 %v4539_v5  ;;  %4636 = vmatprep.subr.bf16.mxu1 %v4635_v9  ;;  %v4653_v5 = vpack.c.bf16 %v654_v63, %v645_v61  ;;  %v663_v9 = vld [vmem:[#allocation6 + $0xbe0] sm:$0xff]  ;;  %v4655_v10 = vpack.c.bf16 %v673_v3, %v664_v2  ;;  %v289_v52 = vld [vmem:[#allocation6 + $0x30] sm:$0xff]  ;;  %v298_v54 = vld [vmem:[#allocation6 + $0x78] sm:$0xff] }
  0xd1   : > { %v5905_v55 = vld [vmem:[%s5868_s6 + $0x10] sm:$0xff]  ;;  %v314_v61 = vld [vmem:[#allocation6 + $0xf8] sm:$0xff]  ;;  %v4765_v63 = vpack.c.bf16 %v298_v54, %v289_v52  ;;  %v316_v3 = vld [vmem:[#allocation6 + $0x108] sm:$0xff] }
  0xd2   : > { %780 = vmatmul.mubr.f32.vlgmr.msra.gmra.mrb[0].mxu0 %v5888_v15  ;;  %934 = vmatmul.mubr.f32.vlgmr.msra.gmra.mrb[0].mxu1 %v5888_v15  ;;  %v305_v60 = vld [vmem:[#allocation6 + $0xb0] sm:$0xff]  ;;  %v307_v2 = vld [vmem:[#allocation6 + $0xc0] sm:$0xff]  ;;  %vm5952_vm1 = vmpackc.low %vm1531_vm0, %vm1531_vm0 }
  0xd3   : > { %4542 = vmatpush1.bf16.msra.mxu0 %v4541_v17  ;;  %4638 = vmatpush1.bf16.msra.mxu1 %v4637_v18  ;;  %v691_v17 = vld [vmem:[#allocation6 + $0xcc0] sm:$0xff]  ;;  %v4561_v18 = vpack.c.bf16 %v670_v8, %v661_v7  ;;  %v333_v0 = vld [vmem:[#allocation6 + $0x190] sm:$0xff]  ;;  %v4673_v7 = vpack.c.bf16 %v314_v61, %v305_v60  ;;  %v4769_v12 = vpack.c.bf16 %v316_v3, %v307_v2 }
  0xd4   : > { %4544 = vmatprep.subr.bf16.mxu0 %v4543_v19  ;;  %4640 = vmatprep.subr.bf16.mxu1 %v4639_v23  ;;  %v4657_v19 = vpack.c.bf16 %v672_v11, %v663_v9  ;;  %v681_v23 = vld [vmem:[#allocation6 + $0xc70] sm:$0xff]  ;;  %v4659_v24 = vpack.c.bf16 %v691_v17, %v682_v14  ;;  %v323_v9 = vld [vmem:[#allocation6 + $0x140] sm:$0xff]  ;;  %v342_v11 = vld [vmem:[#allocation6 + $0x1d8] sm:$0xff] }
  0xd5   : > { %785 = vmatprep.mubr.f32.mxu0 %v5892_v29  ;;  %939 = vmatprep.mubr.f32.mxu1 %v5892_v29  ;;  %v351_v13 = vld [vmem:[#allocation6 + $0x220] sm:$0xff]  ;;  %v325_v17 = vld [vmem:[#allocation6 + $0x150] sm:$0xff] }
  0xd6   : > { %786 = vmatmul.mubr.f32.gmra.mrb[2].mxu0 %v5896_v31  ;;  %940 = vmatmul.mubr.f32.gmra.mrb[2].mxu1 %v5896_v31  ;;  %v369_v27 = vld [vmem:[#allocation6 + $0x2b0] sm:$0xff]  ;;  %v387_v40 = vld [vmem:[#allocation6 + $0x340] sm:$0xff] }
  0xd7   : > { %4546 = vmatpush1.bf16.msra.mxu0 %v4545_v30  ;;  %4642 = vmatpush1.bf16.msra.mxu1 %v4641_v32  ;;  %v709_v30 = vld [vmem:[#allocation6 + $0xd50] sm:$0xff]  ;;  %v4565_v32 = vpack.c.bf16 %v688_v22, %v679_v21  ;;  %v4679_v22 = vpack.c.bf16 %v351_v13, %v342_v11  ;;  %v423_v2 = vld [vmem:[#allocation6 + $0x460] sm:$0xff]  ;;  %v432_v13 = vld [vmem:[#allocation6 + $0x4a8] sm:$0xff] }
  0xd8   : > { %4548 = vmatprep.subr.bf16.mxu0 %v4547_v33  ;;  %4644 = vmatprep.subr.bf16.mxu1 %v4643_v37  ;;  %v4661_v33 = vpack.c.bf16 %v690_v25, %v681_v23  ;;  %v699_v37 = vld [vmem:[#allocation6 + $0xd00] sm:$0xff]  ;;  %v4663_v38 = vpack.c.bf16 %v709_v30, %v700_v28  ;;  %v341_v23 = vld [vmem:[#allocation6 + $0x1d0] sm:$0xff]  ;;  %v360_v25 = vld [vmem:[#allocation6 + $0x268] sm:$0xff] }
  0xd9   : > { %856 = vmatprep.mubr.f32.mxu0 %v5622_v53  ;;  %1010 = vmatprep.mubr.f32.mxu1 %v5622_v53  ;;  %v343_v30 = vld [vmem:[#allocation6 + $0x1e0] sm:$0xff]  ;;  %v405_v52 = vld [vmem:[#allocation6 + $0x3d0] sm:$0xff] }
  0xda   : > { %v413_v11 = vld [vmem:[#allocation6 + $0x410] sm:$0xff] }
  0xdb   : > { %4550 = vmatpush1.bf16.msra.mxu0 %v4549_v43  ;;  %4646 = vmatpush1.bf16.msra.mxu1 %v4645_v44  ;;  %v299_v43 = vld [vmem:[#allocation6 + $0x80] sm:$0xff]  ;;  %v4569_v44 = vpack.c.bf16 %v706_v36, %v697_v35  ;;  %v4683_v36 = vpack.c.bf16 %v369_v27, %v360_v25  ;;  %v450_v27 = vld [vmem:[#allocation6 + $0x538] sm:$0xff] }
  0xdc   : > { %4552 = vmatprep.subr.bf16.mxu0 %v4551_v45  ;;  %4648 = vmatprep.subr.bf16.mxu1 %v4647_v49  ;;  %v4665_v45 = vpack.c.bf16 %v708_v39, %v699_v37  ;;  %v306_v49 = vld [vmem:[#allocation6 + $0xb8] sm:$0xff]  ;;  %v4763_v50 = vpack.c.bf16 %v299_v43, %v290_v42  ;;  %v359_v37 = vld [vmem:[#allocation6 + $0x260] sm:$0xff]  ;;  %v361_v42 = vld [vmem:[#allocation6 + $0x270] sm:$0xff] }
  0xdd   : > { %v4671_v59 = vpack.c.bf16 %v315_v51, %v306_v49  ;;  %v370_v43 = vld [vmem:[#allocation6 + $0x2b8] sm:$0xff]  ;;  %v431_v25 = vld [vmem:[#allocation6 + $0x4a0] sm:$0xff] }
  0xde   : > { %v386_v49 = vld [vmem:[#allocation6 + $0x338] sm:$0xff]  ;;  %v4781_v51 = vpack.c.bf16 %v370_v43, %v361_v42  ;;  %v477_v42 = vld [vmem:[#allocation6 + $0x610] sm:$0xff] }
  0xdf   : > { %4554 = vmatpush1.bf16.msra.mxu0 %v4553_v56  ;;  %4650 = vmatpush1.bf16.msra.mxu1 %v4649_v57  ;;  %v308_v56 = vld [vmem:[#allocation6 + $0xc8] sm:$0xff]  ;;  %v317_v57 = vld [vmem:[#allocation6 + $0x110] sm:$0xff] }
  0xe0   : > { %4556 = vmatprep.subr.bf16.mxu0 %v4555_v58  ;;  %4652 = vmatprep.subr.bf16.mxu1 %v4651_v62  ;;  %v4669_v58 = vpack.c.bf16 %v296_v48, %v287_v47  ;;  %v324_v62 = vld [vmem:[#allocation6 + $0x148] sm:$0xff]  ;;  %v4767_v1 = vpack.c.bf16 %v317_v57, %v308_v56  ;;  %v377_v48 = vld [vmem:[#allocation6 + $0x2f0] sm:$0xff]  ;;  %v379_v56 = vld [vmem:[#allocation6 + $0x300] sm:$0xff] }
  0xe1   : > { %v4675_v8 = vpack.c.bf16 %v333_v0, %v324_v62  ;;  %v388_v57 = vld [vmem:[#allocation6 + $0x348] sm:$0xff]  ;;  %v4689_v60 = vpack.c.bf16 %v386_v49, %v377_v48  ;;  %v395_v62 = vld [vmem:[#allocation6 + $0x380] sm:$0xff]  ;;  %v414_v0 = vld [vmem:[#allocation6 + $0x418] sm:$0xff] }
  0xe3   : > { %4558 = vmatpush1.bf16.msra.mxu0 %v4557_v4  ;;  %4654 = vmatpush1.bf16.msra.mxu1 %v4653_v5  ;;  %v326_v4 = vld [vmem:[#allocation6 + $0x158] sm:$0xff]  ;;  %v335_v5 = vld [vmem:[#allocation6 + $0x1a0] sm:$0xff] }
  0xe4   : > { %4560 = vmatprep.subr.bf16.mxu0 %v4559_v6  ;;  %4656 = vmatprep.subr.bf16.mxu1 %v4655_v10  ;;  %v5912_v6 = vld [vmem:[%s5868_s6 + $0x28] sm:$0xff]  ;;  %v4771_v14 = vpack.c.bf16 %v335_v5, %v326_v4  ;;  %v397_v4 = vld [vmem:[#allocation6 + $0x390] sm:$0xff] }
  0xe5   : > { %v332_v10 = vld [vmem:[#allocation6 + $0x188] sm:$0xff]  ;;  %v406_v5 = vld [vmem:[#allocation6 + $0x3d8] sm:$0xff] }
  0xe6   : > { %v4677_v21 = vpack.c.bf16 %v332_v10, %v323_v9  ;;  %v4695_v10 = vpack.c.bf16 %v423_v2, %v414_v0  ;;  %v485_v0 = vld [vmem:[#allocation6 + $0x650] sm:$0xff]  ;;  %v504_v2 = vld [vmem:[#allocation6 + $0x6e8] sm:$0xff] }
  0xe7   : > { %4562 = vmatpush1.bf16.msra.mxu0 %v4561_v18  ;;  %4658 = vmatpush1.bf16.msra.mxu1 %v4657_v19  ;;  %v334_v18 = vld [vmem:[#allocation6 + $0x198] sm:$0xff]  ;;  %v344_v19 = vld [vmem:[#allocation6 + $0x1e8] sm:$0xff] }
  0xe8   : > { %4564 = vmatprep.subr.bf16.mxu0 %v4563_v20  ;;  %4660 = vmatprep.subr.bf16.mxu1 %v4659_v24  ;;  %v353_v20 = vld [vmem:[#allocation6 + $0x230] sm:$0xff]  ;;  %v350_v24 = vld [vmem:[#allocation6 + $0x218] sm:$0xff]  ;;  %v4773_v26 = vpack.c.bf16 %v334_v18, %v325_v17 }
  0xe9   : > { %v4775_v28 = vpack.c.bf16 %v353_v20, %v344_v19  ;;  %v4681_v35 = vpack.c.bf16 %v350_v24, %v341_v23  ;;  %v441_v17 = vld [vmem:[#allocation6 + $0x4f0] sm:$0xff]  ;;  %v415_v19 = vld [vmem:[#allocation6 + $0x420] sm:$0xff]  ;;  %v424_v20 = vld [vmem:[#allocation6 + $0x468] sm:$0xff] }
  0xea   : > { %v4699_v24 = vpack.c.bf16 %v441_v17, %v432_v13  ;;  %v503_v13 = vld [vmem:[#allocation6 + $0x6e0] sm:$0xff]  ;;  %v522_v17 = vld [vmem:[#allocation6 + $0x778] sm:$0xff] }
  0xeb   : > { %4566 = vmatpush1.bf16.msra.mxu0 %v4565_v32  ;;  %4662 = vmatpush1.bf16.msra.mxu1 %v4661_v33  ;;  %v352_v32 = vld [vmem:[#allocation6 + $0x228] sm:$0xff]  ;;  %v362_v33 = vld [vmem:[#allocation6 + $0x278] sm:$0xff] }
  0xec   : > { %4568 = vmatprep.subr.bf16.mxu0 %v4567_v34  ;;  %4664 = vmatprep.subr.bf16.mxu1 %v4663_v38  ;;  %v371_v34 = vld [vmem:[#allocation6 + $0x2c0] sm:$0xff]  ;;  %v378_v38 = vld [vmem:[#allocation6 + $0x2f8] sm:$0xff]  ;;  %v4777_v39 = vpack.c.bf16 %v352_v32, %v343_v30 }
  0xed   : > { %v4779_v41 = vpack.c.bf16 %v371_v34, %v362_v33  ;;  %v4687_v47 = vpack.c.bf16 %v387_v40, %v378_v38  ;;  %v459_v30 = vld [vmem:[#allocation6 + $0x580] sm:$0xff]  ;;  %v433_v33 = vld [vmem:[#allocation6 + $0x4b0] sm:$0xff]  ;;  %v442_v34 = vld [vmem:[#allocation6 + $0x4f8] sm:$0xff] }
  0xee   : > { %v449_v38 = vld [vmem:[#allocation6 + $0x530] sm:$0xff]  ;;  %v468_v40 = vld [vmem:[#allocation6 + $0x5c8] sm:$0xff] }
  0xef   : > { %4570 = vmatpush1.bf16.msra.mxu0 %v4569_v44  ;;  %4666 = vmatpush1.bf16.msra.mxu1 %v4665_v45  ;;  %v380_v44 = vld [vmem:[#allocation6 + $0x308] sm:$0xff]  ;;  %v389_v45 = vld [vmem:[#allocation6 + $0x350] sm:$0xff]  ;;  %v4707_v49 = vpack.c.bf16 %v477_v42, %v468_v40  ;;  %v539_v40 = vld [vmem:[#allocation6 + $0x800] sm:$0xff] }
  0xf0   : > { %4668 = vmatprep.subr.bf16.mxu0 %v4667_v46  ;;  %4764 = vmatprep.subr.bf16.mxu1 %v4763_v50  ;;  %v396_v50 = vld [vmem:[#allocation6 + $0x388] sm:$0xff]  ;;  %v4783_v54 = vpack.c.bf16 %v389_v45, %v380_v44  ;;  %v451_v44 = vld [vmem:[#allocation6 + $0x540] sm:$0xff]  ;;  %v558_v42 = vld [vmem:[#allocation6 + $0x898] sm:$0xff] }
  0xf1   : > { %v4691_v61 = vpack.c.bf16 %v405_v52, %v396_v50  ;;  %v460_v45 = vld [vmem:[#allocation6 + $0x588] sm:$0xff]  ;;  %v467_v50 = vld [vmem:[#allocation6 + $0x5c0] sm:$0xff]  ;;  %v486_v52 = vld [vmem:[#allocation6 + $0x658] sm:$0xff] }
  0xf2   : > { %857 = vmatmul.mubr.f32.vlgmr.msra.gmra.mrb[0].mxu0 %v5905_v55  ;;  %1011 = vmatmul.mubr.f32.vlgmr.msra.gmra.mrb[0].mxu1 %v5905_v55 }
  0xf3   : > { %862 = vmatprep.mubr.f32.mxu0 %v5622_v53  ;;  %1016 = vmatprep.mubr.f32.mxu1 %v5622_v53 }
  0xf4   : > { %4670 = vmatpush1.bf16.msra.mxu0 %v4669_v58  ;;  %4766 = vmatpush1.bf16.msra.mxu1 %v4765_v63  ;;  %v398_v58 = vld [vmem:[#allocation6 + $0x398] sm:$0xff]  ;;  %v404_v63 = vld [vmem:[#allocation6 + $0x3c8] sm:$0xff] }
  0xf5   : > { %4672 = vmatprep.subr.bf16.mxu0 %v4671_v59  ;;  %4768 = vmatprep.subr.bf16.mxu1 %v4767_v1  ;;  %v407_v59 = vld [vmem:[#allocation6 + $0x3e0] sm:$0xff]  ;;  %v4785_v1 = vpack.c.bf16 %v388_v57, %v379_v56  ;;  %v4693_v9 = vpack.c.bf16 %v404_v63, %v395_v62 }
  0xf6   : > { %863 = vmatmul.mubr.f32.gmra.mrb[2].mxu0 %v5912_v6  ;;  %1017 = vmatmul.mubr.f32.gmra.mrb[2].mxu1 %v5912_v6  ;;  %v4787_v3 = vpack.c.bf16 %v407_v59, %v398_v58  ;;  %v495_v56 = vld [vmem:[#allocation6 + $0x6a0] sm:$0xff]  ;;  %v469_v58 = vld [vmem:[#allocation6 + $0x5d0] sm:$0xff]  ;;  %v478_v59 = vld [vmem:[#allocation6 + $0x618] sm:$0xff] }
  0xf7   : > { %1087 = vmatprep.mubr.f32.mxu0 %v5883_v16  ;;  %1241 = vmatprep.mubr.f32.mxu1 %v5883_v16  ;;  %v368_v16 = vld [vmem:[#allocation6 + $0x2a8] sm:$0xff]  ;;  %v4711_v63 = vpack.c.bf16 %v495_v56, %v486_v52  ;;  %v557_v52 = vld [vmem:[#allocation6 + $0x890] sm:$0xff] }
  0xf8   : > { %4674 = vmatpush1.bf16.msra.mxu0 %v4673_v7  ;;  %4770 = vmatpush1.bf16.msra.mxu1 %v4769_v12  ;;  %v4685_v46 = vpack.c.bf16 %v368_v16, %v359_v37  ;;  %v416_v7 = vld [vmem:[#allocation6 + $0x428] sm:$0xff]  ;;  %v422_v12 = vld [vmem:[#allocation6 + $0x458] sm:$0xff]  ;;  %v4703_v16 = vpack.c.bf16 %v459_v30, %v450_v27  ;;  %v521_v27 = vld [vmem:[#allocation6 + $0x770] sm:$0xff] }
  0xf9   : > { %4676 = vmatprep.subr.bf16.mxu0 %v4675_v8  ;;  %4772 = vmatprep.subr.bf16.mxu1 %v4771_v14  ;;  %v425_v8 = vld [vmem:[#allocation6 + $0x470] sm:$0xff]  ;;  %v4789_v14 = vpack.c.bf16 %v406_v5, %v397_v4  ;;  %v4697_v23 = vpack.c.bf16 %v422_v12, %v413_v11  ;;  %v540_v30 = vld [vmem:[#allocation6 + $0x808] sm:$0xff] }
  0xfa   : > { %v4791_v18 = vpack.c.bf16 %v425_v8, %v416_v7  ;;  %v513_v4 = vld [vmem:[#allocation6 + $0x730] sm:$0xff]  ;;  %v487_v7 = vld [vmem:[#allocation6 + $0x660] sm:$0xff]  ;;  %v496_v8 = vld [vmem:[#allocation6 + $0x6a8] sm:$0xff] }
  0xfb   : > { %v4715_v12 = vpack.c.bf16 %v513_v4, %v504_v2  ;;  %v576_v56 = vld [vmem:[#allocation6 + $0x928] sm:$0xff]  ;;  %v575_v2 = vld [vmem:[#allocation6 + $0x920] sm:$0xff] }
  0xfc   : > { %4678 = vmatpush1.bf16.msra.mxu0 %v4677_v21  ;;  %4774 = vmatpush1.bf16.msra.mxu1 %v4773_v26  ;;  %v434_v21 = vld [vmem:[#allocation6 + $0x4b8] sm:$0xff]  ;;  %v440_v26 = vld [vmem:[#allocation6 + $0x4e8] sm:$0xff] }
  0xfd   : > { %4680 = vmatprep.subr.bf16.mxu0 %v4679_v22  ;;  %4776 = vmatprep.subr.bf16.mxu1 %v4775_v28  ;;  %v443_v22 = vld [vmem:[#allocation6 + $0x500] sm:$0xff]  ;;  %v4793_v28 = vpack.c.bf16 %v424_v20, %v415_v19  ;;  %v4701_v37 = vpack.c.bf16 %v440_v26, %v431_v25 }
  0xfe   : > { %v4795_v32 = vpack.c.bf16 %v443_v22, %v434_v21  ;;  %v531_v19 = vld [vmem:[#allocation6 + $0x7c0] sm:$0xff]  ;;  %v505_v21 = vld [vmem:[#allocation6 + $0x6f0] sm:$0xff]  ;;  %v514_v22 = vld [vmem:[#allocation6 + $0x738] sm:$0xff] }
  0xff   : > { %v4719_v26 = vpack.c.bf16 %v531_v19, %v522_v17  ;;  %v593_v17 = vld [vmem:[#allocation6 + $0x9b0] sm:$0xff]  ;;  %v612_v19 = vld [vmem:[#allocation6 + $0xa48] sm:$0xff] }
 0x100   : > { %4682 = vmatpush1.bf16.msra.mxu0 %v4681_v35  ;;  %4778 = vmatpush1.bf16.msra.mxu1 %v4777_v39  ;;  %v452_v35 = vld [vmem:[#allocation6 + $0x548] sm:$0xff]  ;;  %v458_v39 = vld [vmem:[#allocation6 + $0x578] sm:$0xff] }
 0x101   : > { %4684 = vmatprep.subr.bf16.mxu0 %v4683_v36  ;;  %4780 = vmatprep.subr.bf16.mxu1 %v4779_v41  ;;  %v461_v36 = vld [vmem:[#allocation6 + $0x590] sm:$0xff]  ;;  %v4797_v41 = vpack.c.bf16 %v442_v34, %v433_v33  ;;  %v4705_v48 = vpack.c.bf16 %v458_v39, %v449_v38 }
 0x102   : > { %v4799_v43 = vpack.c.bf16 %v461_v36, %v452_v35  ;;  %v549_v33 = vld [vmem:[#allocation6 + $0x850] sm:$0xff]  ;;  %v523_v35 = vld [vmem:[#allocation6 + $0x780] sm:$0xff]  ;;  %v532_v36 = vld [vmem:[#allocation6 + $0x7c8] sm:$0xff] }
 0x103   : > { %v4723_v39 = vpack.c.bf16 %v549_v33, %v540_v30  ;;  %v611_v30 = vld [vmem:[#allocation6 + $0xa40] sm:$0xff]  ;;  %v630_v33 = vld [vmem:[#allocation6 + $0xad8] sm:$0xff] }
 0x104   : > { %4686 = vmatpush1.bf16.msra.mxu0 %v4685_v46  ;;  %4782 = vmatpush1.bf16.msra.mxu1 %v4781_v51  ;;  %v470_v46 = vld [vmem:[#allocation6 + $0x5d8] sm:$0xff]  ;;  %v476_v51 = vld [vmem:[#allocation6 + $0x608] sm:$0xff] }
 0x105   : > { %4688 = vmatprep.subr.bf16.mxu0 %v4687_v47  ;;  %4784 = vmatprep.subr.bf16.mxu1 %v4783_v54  ;;  %v479_v47 = vld [vmem:[#allocation6 + $0x620] sm:$0xff]  ;;  %v4801_v54 = vpack.c.bf16 %v460_v45, %v451_v44  ;;  %v4709_v62 = vpack.c.bf16 %v476_v51, %v467_v50 }
 0x106   : > { %v4803_v57 = vpack.c.bf16 %v479_v47, %v470_v46  ;;  %v567_v44 = vld [vmem:[#allocation6 + $0x8e0] sm:$0xff]  ;;  %v541_v46 = vld [vmem:[#allocation6 + $0x810] sm:$0xff]  ;;  %v550_v47 = vld [vmem:[#allocation6 + $0x858] sm:$0xff] }
 0x107   : > { %v4727_v51 = vpack.c.bf16 %v567_v44, %v558_v42  ;;  %v638_v42 = vld [vmem:[#allocation6 + $0xb18] sm:$0xff] }
 0x108   : > { %4690 = vmatpush1.bf16.msra.mxu0 %v4689_v60  ;;  %4786 = vmatpush1.bf16.msra.mxu1 %v4785_v1  ;;  %v488_v60 = vld [vmem:[#allocation6 + $0x668] sm:$0xff]  ;;  %v494_v1 = vld [vmem:[#allocation6 + $0x698] sm:$0xff] }
 0x109   : > { %4692 = vmatprep.subr.bf16.mxu0 %v4691_v61  ;;  %4788 = vmatprep.subr.bf16.mxu1 %v4787_v3  ;;  %v497_v61 = vld [vmem:[#allocation6 + $0x6b0] sm:$0xff]  ;;  %v4805_v3 = vpack.c.bf16 %v478_v59, %v469_v58  ;;  %v4713_v11 = vpack.c.bf16 %v494_v1, %v485_v0 }
 0x10a   : > { %v4807_v5 = vpack.c.bf16 %v497_v61, %v488_v60  ;;  %v585_v58 = vld [vmem:[#allocation6 + $0x970] sm:$0xff]  ;;  %v559_v60 = vld [vmem:[#allocation6 + $0x8a0] sm:$0xff]  ;;  %v568_v61 = vld [vmem:[#allocation6 + $0x8e8] sm:$0xff] }
 0x10b   : > { %v4731_v1 = vpack.c.bf16 %v585_v58, %v576_v56  ;;  %v4825_v4 = vpack.c.bf16 %v568_v61, %v559_v60  ;;  %v666_v56 = vld [vmem:[#allocation6 + $0xbf8] sm:$0xff] }
 0x10c   : > { %4694 = vmatpush1.bf16.msra.mxu0 %v4693_v9  ;;  %4790 = vmatpush1.bf16.msra.mxu1 %v4789_v14  ;;  %v506_v9 = vld [vmem:[#allocation6 + $0x6f8] sm:$0xff]  ;;  %v512_v14 = vld [vmem:[#allocation6 + $0x728] sm:$0xff] }
 0x10d   : > { %4696 = vmatprep.subr.bf16.mxu0 %v4695_v10  ;;  %4792 = vmatprep.subr.bf16.mxu1 %v4791_v18  ;;  %v515_v10 = vld [vmem:[#allocation6 + $0x740] sm:$0xff]  ;;  %v4809_v18 = vpack.c.bf16 %v496_v8, %v487_v7  ;;  %v4717_v25 = vpack.c.bf16 %v512_v14, %v503_v13  ;;  %v605_v13 = vld [vmem:[#allocation6 + $0xa10] sm:$0xff]  ;;  %v658_v60 = vld [vmem:[#allocation6 + $0xbb8] sm:$0xff] }
 0x10e   : > { %v4811_v20 = vpack.c.bf16 %v515_v10, %v506_v9  ;;  %v603_v7 = vld [vmem:[#allocation6 + $0xa00] sm:$0xff]  ;;  %v577_v9 = vld [vmem:[#allocation6 + $0x930] sm:$0xff]  ;;  %v586_v10 = vld [vmem:[#allocation6 + $0x978] sm:$0xff] }
 0x110   : > { %4698 = vmatpush1.bf16.msra.mxu0 %v4697_v23  ;;  %4794 = vmatpush1.bf16.msra.mxu1 %v4793_v28  ;;  %v524_v23 = vld [vmem:[#allocation6 + $0x788] sm:$0xff]  ;;  %v530_v28 = vld [vmem:[#allocation6 + $0x7b8] sm:$0xff] }
 0x111   : > { %4700 = vmatprep.subr.bf16.mxu0 %v4699_v24  ;;  %4796 = vmatprep.subr.bf16.mxu1 %v4795_v32  ;;  %v533_v24 = vld [vmem:[#allocation6 + $0x7d0] sm:$0xff]  ;;  %v4813_v32 = vpack.c.bf16 %v514_v22, %v505_v21  ;;  %v4721_v38 = vpack.c.bf16 %v530_v28, %v521_v27  ;;  %v4829_v21 = vpack.c.bf16 %v586_v10, %v577_v9  ;;  %v623_v27 = vld [vmem:[#allocation6 + $0xaa0] sm:$0xff]  ;;  %v676_v9 = vld [vmem:[#allocation6 + $0xc48] sm:$0xff] }
 0x112   : > { %v4815_v34 = vpack.c.bf16 %v533_v24, %v524_v23  ;;  %v595_v23 = vld [vmem:[#allocation6 + $0x9c0] sm:$0xff]  ;;  %v604_v24 = vld [vmem:[#allocation6 + $0xa08] sm:$0xff] }
 0x114   : > { %4702 = vmatpush1.bf16.msra.mxu0 %v4701_v37  ;;  %4798 = vmatpush1.bf16.msra.mxu1 %v4797_v41  ;;  %v542_v37 = vld [vmem:[#allocation6 + $0x818] sm:$0xff]  ;;  %v548_v41 = vld [vmem:[#allocation6 + $0x848] sm:$0xff] }
 0x115   : > { %4704 = vmatprep.subr.bf16.mxu0 %v4703_v16  ;;  %4800 = vmatprep.subr.bf16.mxu1 %v4799_v43  ;;  %v551_v16 = vld [vmem:[#allocation6 + $0x860] sm:$0xff]  ;;  %v4817_v43 = vpack.c.bf16 %v532_v36, %v523_v35  ;;  %v4725_v50 = vpack.c.bf16 %v548_v41, %v539_v40  ;;  %v4833_v35 = vpack.c.bf16 %v604_v24, %v595_v23  ;;  %v641_v40 = vld [vmem:[#allocation6 + $0xb30] sm:$0xff]  ;;  %v694_v23 = vld [vmem:[#allocation6 + $0xcd8] sm:$0xff] }
 0x116   : > { %v4819_v45 = vpack.c.bf16 %v551_v16, %v542_v37  ;;  %v613_v37 = vld [vmem:[#allocation6 + $0xa50] sm:$0xff]  ;;  %v622_v16 = vld [vmem:[#allocation6 + $0xa98] sm:$0xff] }
 0x117   : > { %v629_v41 = vld [vmem:[#allocation6 + $0xad0] sm:$0xff]  ;;  %v4837_v44 = vpack.c.bf16 %v622_v16, %v613_v37  ;;  %v712_v37 = vld [vmem:[#allocation6 + $0xd68] sm:$0xff] }
 0x118   : > { %4706 = vmatpush1.bf16.msra.mxu0 %v4705_v48  ;;  %4802 = vmatpush1.bf16.msra.mxu1 %v4801_v54  ;;  %v560_v48 = vld [vmem:[#allocation6 + $0x8a8] sm:$0xff]  ;;  %v566_v54 = vld [vmem:[#allocation6 + $0x8d8] sm:$0xff] }
 0x119   : > { %4708 = vmatprep.subr.bf16.mxu0 %v4707_v49  ;;  %4804 = vmatprep.subr.bf16.mxu1 %v4803_v57  ;;  %v569_v49 = vld [vmem:[#allocation6 + $0x8f0] sm:$0xff]  ;;  %v4821_v57 = vpack.c.bf16 %v550_v47, %v541_v46  ;;  %v4729_v0 = vpack.c.bf16 %v566_v54, %v557_v52  ;;  %v631_v46 = vld [vmem:[#allocation6 + $0xae0] sm:$0xff]  ;;  %v640_v47 = vld [vmem:[#allocation6 + $0xb28] sm:$0xff] }
 0x11a   : > { %v4823_v59 = vpack.c.bf16 %v569_v49, %v560_v48  ;;  %v4745_v48 = vpack.c.bf16 %v638_v42, %v629_v41  ;;  %v650_v49 = vld [vmem:[#allocation6 + $0xb78] sm:$0xff]  ;;  %v647_v52 = vld [vmem:[#allocation6 + $0xb60] sm:$0xff]  ;;  %v656_v54 = vld [vmem:[#allocation6 + $0xba8] sm:$0xff] }
 0x11b   : > { %v4749_v61 = vpack.c.bf16 %v656_v54, %v647_v52  ;;  %v300_v41 = vld [vmem:[#allocation6 + $0x88] sm:$0xff]  ;;  %v453_v42 = vld [vmem:[#allocation6 + $0x550] sm:$0xff] }
 0x11c   : > { %4710 = vmatpush1.bf16.msra.mxu0 %v4709_v62  ;;  %4806 = vmatpush1.bf16.msra.mxu1 %v4805_v3  ;;  %v578_v62 = vld [vmem:[#allocation6 + $0x938] sm:$0xff]  ;;  %v584_v3 = vld [vmem:[#allocation6 + $0x968] sm:$0xff] }
 0x11d   : > { %4712 = vmatprep.subr.bf16.mxu0 %v4711_v63  ;;  %4808 = vmatprep.subr.bf16.mxu1 %v4807_v5  ;;  %v587_v63 = vld [vmem:[#allocation6 + $0x980] sm:$0xff]  ;;  %v594_v5 = vld [vmem:[#allocation6 + $0x9b8] sm:$0xff]  ;;  %v480_v52 = vld [vmem:[#allocation6 + $0x628] sm:$0xff] }
 0x11e   : > { %v4827_v8 = vpack.c.bf16 %v587_v63, %v578_v62  ;;  %v4735_v14 = vpack.c.bf16 %v603_v7, %v594_v5  ;;  %v668_v62 = vld [vmem:[#allocation6 + $0xc08] sm:$0xff]  ;;  %v677_v63 = vld [vmem:[#allocation6 + $0xc50] sm:$0xff] }
 0x11f   : > { %v4847_v7 = vpack.c.bf16 %v677_v63, %v668_v62  ;;  %v498_v62 = vld [vmem:[#allocation6 + $0x6b8] sm:$0xff] }
 0x120   : > { %4714 = vmatpush1.bf16.msra.mxu0 %v4713_v11  ;;  %4810 = vmatpush1.bf16.msra.mxu1 %v4809_v18  ;;  %v4733_v11 = vpack.c.bf16 %v584_v3, %v575_v2  ;;  %v602_v18 = vld [vmem:[#allocation6 + $0x9f8] sm:$0xff]  ;;  %v684_v3 = vld [vmem:[#allocation6 + $0xc88] sm:$0xff] }
 0x121   : > { %4716 = vmatprep.subr.bf16.mxu0 %v4715_v12  ;;  %4812 = vmatprep.subr.bf16.mxu1 %v4811_v20  ;;  %v596_v12 = vld [vmem:[#allocation6 + $0x9c8] sm:$0xff]  ;;  %v621_v20 = vld [vmem:[#allocation6 + $0xa90] sm:$0xff]  ;;  %v674_v2 = vld [vmem:[#allocation6 + $0xc38] sm:$0xff] }
 0x122   : > { %v4831_v22 = vpack.c.bf16 %v605_v13, %v596_v12  ;;  %v4739_v28 = vpack.c.bf16 %v621_v20, %v612_v19  ;;  %v695_v12 = vld [vmem:[#allocation6 + $0xce0] sm:$0xff] }
 0x123   : > { %v711_v19 = vld [vmem:[#allocation6 + $0xd60] sm:$0xff] }
 0x124   : > { %4718 = vmatpush1.bf16.msra.mxu0 %v4717_v25  ;;  %4814 = vmatpush1.bf16.msra.mxu1 %v4813_v32  ;;  %v4737_v25 = vpack.c.bf16 %v602_v18, %v593_v17  ;;  %v620_v32 = vld [vmem:[#allocation6 + $0xa88] sm:$0xff]  ;;  %v702_v18 = vld [vmem:[#allocation6 + $0xd18] sm:$0xff] }
 0x125   : > { %4720 = vmatprep.subr.bf16.mxu0 %v4719_v26  ;;  %4816 = vmatprep.subr.bf16.mxu1 %v4815_v34  ;;  %v614_v26 = vld [vmem:[#allocation6 + $0xa58] sm:$0xff]  ;;  %v639_v34 = vld [vmem:[#allocation6 + $0xb20] sm:$0xff]  ;;  %v692_v17 = vld [vmem:[#allocation6 + $0xcc8] sm:$0xff] }
 0x126   : > { %v4835_v36 = vpack.c.bf16 %v623_v27, %v614_v26  ;;  %v713_v26 = vld [vmem:[#allocation6 + $0xd70] sm:$0xff]  ;;  %v4759_v27 = vpack.c.bf16 %v711_v19, %v702_v18  ;;  %v372_v18 = vld [vmem:[#allocation6 + $0x2c8] sm:$0xff] }
 0x127   : > { %v525_v19 = vld [vmem:[#allocation6 + $0x790] sm:$0xff] }
 0x128   : > { %4722 = vmatpush1.bf16.msra.mxu0 %v4721_v38  ;;  %4818 = vmatpush1.bf16.msra.mxu1 %v4817_v43  ;;  %v4741_v38 = vpack.c.bf16 %v620_v32, %v611_v30  ;;  %v648_v43 = vld [vmem:[#allocation6 + $0xb68] sm:$0xff]  ;;  %v710_v30 = vld [vmem:[#allocation6 + $0xd58] sm:$0xff]  ;;  %v435_v32 = vld [vmem:[#allocation6 + $0x4c0] sm:$0xff] }
 0x129   : > { %4724 = vmatprep.subr.bf16.mxu0 %v4723_v39  ;;  %4820 = vmatprep.subr.bf16.mxu1 %v4819_v45  ;;  %v632_v39 = vld [vmem:[#allocation6 + $0xae8] sm:$0xff] }
 0x12a   : > { %v4839_v45 = vpack.c.bf16 %v641_v40, %v632_v39  ;;  %v588_v39 = vld [vmem:[#allocation6 + $0x988] sm:$0xff] }
 0x12c   : > { %4726 = vmatpush1.bf16.msra.mxu0 %v4725_v50  ;;  %4822 = vmatpush1.bf16.msra.mxu1 %v4821_v57  ;;  %v659_v50 = vld [vmem:[#allocation6 + $0xbc0] sm:$0xff]  ;;  %v4841_v57 = vpack.c.bf16 %v640_v47, %v631_v46  ;;  %v597_v46 = vld [vmem:[#allocation6 + $0x9d0] sm:$0xff]  ;;  %v606_v47 = vld [vmem:[#allocation6 + $0xa18] sm:$0xff] }
 0x12d   : > { %4728 = vmatprep.subr.bf16.mxu0 %v4727_v51  ;;  %4824 = vmatprep.subr.bf16.mxu1 %v4823_v59  ;;  %v4843_v58 = vpack.c.bf16 %v659_v50, %v650_v49  ;;  %v649_v59 = vld [vmem:[#allocation6 + $0xb70] sm:$0xff]  ;;  %v318_v50 = vld [vmem:[#allocation6 + $0x118] sm:$0xff]  ;;  %v4895_v54 = vpack.c.bf16 %v606_v47, %v597_v46 }
 0x12e   : > { %v4845_v5 = vpack.c.bf16 %v658_v60, %v649_v59  ;;  %v309_v49 = vld [vmem:[#allocation6 + $0xd0] sm:$0xff]  ;;  %v327_v59 = vld [vmem:[#allocation6 + $0x160] sm:$0xff]  ;;  %v336_v60 = vld [vmem:[#allocation6 + $0x1a8] sm:$0xff] }
 0x12f   : > { %v5405_v46 = vld [vmem:[%s5868_s6] sm:$0xff] }
 0x130   : > { %4730 = vmatpush1.bf16.msra.mxu0 %v4729_v0  ;;  %4826 = vmatpush1.bf16.msra.mxu1 %v4825_v4  ;;  %v693_v4 = vld [vmem:[#allocation6 + $0xcd0] sm:$0xff] }
 0x131   : > { %4732 = vmatprep.subr.bf16.mxu0 %v4731_v1  ;;  %4828 = vmatprep.subr.bf16.mxu1 %v4827_v8  ;;  %v665_v1 = vld [vmem:[#allocation6 + $0xbf0] sm:$0xff]  ;;  %v667_v8 = vld [vmem:[#allocation6 + $0xc00] sm:$0xff]  ;;  %v4755_v13 = vpack.c.bf16 %v693_v4, %v684_v3  ;;  %v5404_v3 = vld [vmem:[%s5868_s6 + $0x8] sm:$0xff] }
 0x132   : > { %v4753_v10 = vpack.c.bf16 %v674_v2, %v665_v1  ;;  %v4849_v20 = vpack.c.bf16 %v676_v9, %v667_v8  ;;  %v633_v1 = vld [vmem:[#allocation6 + $0xaf0] sm:$0xff]  ;;  %v642_v2 = vld [vmem:[#allocation6 + $0xb38] sm:$0xff]  ;;  %v507_v8 = vld [vmem:[#allocation6 + $0x700] sm:$0xff] }
 0x133   : > { %1088 = vmatmul.mubr.f32.vlgmr.msra.gmra.mrb[4].mxu0 %v5888_v15  ;;  %1242 = vmatmul.mubr.f32.vlgmr.msra.gmra.mrb[4].mxu1 %v5888_v15  ;;  %v4743_v15 = vpack.c.bf16 %v639_v34, %v630_v33  ;;  %v444_v33 = vld [vmem:[#allocation6 + $0x508] sm:$0xff]  ;;  %v5406_v47 = vld [vmem:[%s5868_s6 + $0x20] sm:$0xff] }
 0x134   : > { %4734 = vmatpush1.bf16.msra.mxu0 %v4733_v11  ;;  %1093 = vmatprep.mubr.f32.mxu0 %v5892_v29  ;;  %v686_v11 = vld [vmem:[#allocation6 + $0xc98] sm:$0xff]  ;;  %v4859_v40 = vpack.c.bf16 %v444_v33, %v435_v32  ;;  %v516_v9 = vld [vmem:[#allocation6 + $0x748] sm:$0xff]  ;;  %v687_v33 = vld [vmem:[#allocation6 + $0xca0] sm:$0xff] }
 0x135   : > { %4736 = vmatprep.subr.bf16.mxu0 %v4735_v14  ;;  %4830 = vmatpush1.bf16.msra.mxu1 %v4829_v21  ;;  %v683_v14 = vld [vmem:[#allocation6 + $0xc80] sm:$0xff]  ;;  %v4851_v21 = vpack.c.bf16 %v695_v12, %v686_v11 }
 0x136   : > { %1247 = vmatprep.mubr.f32.mxu1 %v5892_v29  ;;  %4832 = vmatprep.subr.bf16.mxu1 %v4831_v22  ;;  %v657_v29 = vld [vmem:[#allocation6 + $0xbb0] sm:$0xff]  ;;  %v4757_v24 = vpack.c.bf16 %v692_v17, %v683_v14  ;;  %v651_v12 = vld [vmem:[#allocation6 + $0xb80] sm:$0xff]  ;;  %v4875_v14 = vpack.c.bf16 %v516_v9, %v507_v8 }
 0x137   : > { %1094 = vmatmul.mubr.f32.gmra.mrb[6].mxu0 %v5896_v31  ;;  %1248 = vmatmul.mubr.f32.gmra.mrb[6].mxu1 %v5896_v31  ;;  %v4747_v51 = vpack.c.bf16 %v657_v29, %v648_v43  ;;  %v675_v31 = vld [vmem:[#allocation6 + $0xc40] sm:$0xff]  ;;  %v685_v22 = vld [vmem:[#allocation6 + $0xc90] sm:$0xff]  ;;  %v462_v43 = vld [vmem:[#allocation6 + $0x598] sm:$0xff] }
 0x138   : > { %4738 = vmatpush1.bf16.msra.mxu0 %v4737_v25  ;;  %1164 = vmatprep.mubr.f32.mxu0 %v5622_v53  ;;  %v4751_v0 = vpack.c.bf16 %v675_v31, %v666_v56  ;;  %v704_v25 = vld [vmem:[#allocation6 + $0xd28] sm:$0xff]  ;;  %v4853_v34 = vpack.c.bf16 %v694_v23, %v685_v22  ;;  %v4865_v56 = vpack.c.bf16 %v318_v50, %v309_v49  ;;  %v615_v31 = vld [vmem:[#allocation6 + $0xa60] sm:$0xff]  ;;  %v669_v23 = vld [vmem:[#allocation6 + $0xc10] sm:$0xff] }
 0x139   : > { %4740 = vmatprep.subr.bf16.mxu0 %v4739_v28  ;;  %4834 = vmatpush1.bf16.msra.mxu1 %v4833_v35  ;;  %v701_v28 = vld [vmem:[#allocation6 + $0xd10] sm:$0xff]  ;;  %v4855_v35 = vpack.c.bf16 %v713_v26, %v704_v25  ;;  %v363_v17 = vld [vmem:[#allocation6 + $0x280] sm:$0xff]  ;;  %v390_v26 = vld [vmem:[#allocation6 + $0x358] sm:$0xff] }
 0x13a   : > { %1318 = vmatprep.mubr.f32.mxu1 %v5622_v53  ;;  %4836 = vmatprep.subr.bf16.mxu1 %v4835_v36  ;;  %v703_v36 = vld [vmem:[#allocation6 + $0xd20] sm:$0xff]  ;;  %v4761_v16 = vpack.c.bf16 %v710_v30, %v701_v28  ;;  %v4877_v22 = vpack.c.bf16 %v372_v18, %v363_v17  ;;  %v381_v25 = vld [vmem:[#allocation6 + $0x310] sm:$0xff]  ;;  %v552_v28 = vld [vmem:[#allocation6 + $0x868] sm:$0xff] }
 0x13b   : > { %v4857_v29 = vpack.c.bf16 %v712_v37, %v703_v36  ;;  %v4881_v32 = vpack.c.bf16 %v390_v26, %v381_v25  ;;  %v399_v36 = vld [vmem:[#allocation6 + $0x3a0] sm:$0xff]  ;;  %v408_v37 = vld [vmem:[#allocation6 + $0x3e8] sm:$0xff]  ;;  %v1521_v26 = vlaneseq }
 0x13c   : > { %4742 = vmatpush1.bf16.msra.mxu0 %v4741_v38  ;;  %v579_v38 = vld [vmem:[#allocation6 + $0x940] sm:$0xff] }
 0x13d   : > { %4744 = vmatprep.subr.bf16.mxu0 %v4743_v15  ;;  %4838 = vmatpush1.bf16.msra.mxu1 %v4837_v44  ;;  %v291_v15 = vld [vmem:[#allocation6 + $0x40] sm:$0xff]  ;;  %v4891_v44 = vpack.c.bf16 %v588_v39, %v579_v38  ;;  %v570_v38 = vld [vmem:[#allocation6 + $0x8f8] sm:$0xff] }
 0x13e   : > { %4840 = vmatprep.subr.bf16.mxu1 %v4839_v45  ;;  %v4861_v45 = vpack.c.bf16 %v300_v41, %v291_v15  ;;  %v705_v15 = vld [vmem:[#allocation6 + $0xd30] sm:$0xff]  ;;  %v714_v41 = vld [vmem:[#allocation6 + $0xd78] sm:$0xff] }
 0x140   : > { %4746 = vmatpush1.bf16.msra.mxu0 %v4745_v48  ;;  %v4863_v48 = vpack.c.bf16 %v462_v43, %v453_v42  ;;  %v417_v43 = vld [vmem:[#allocation6 + $0x430] sm:$0xff] }
 0x141   : > { %4748 = vmatprep.subr.bf16.mxu0 %v4747_v51  ;;  %4842 = vmatpush1.bf16.msra.mxu1 %v4841_v57  ;;  %v471_v51 = vld [vmem:[#allocation6 + $0x5e0] sm:$0xff]  ;;  %v624_v57 = vld [vmem:[#allocation6 + $0xaa8] sm:$0xff] }
 0x142   : > { %4844 = vmatprep.subr.bf16.mxu1 %v4843_v58  ;;  %v4867_v58 = vpack.c.bf16 %v480_v52, %v471_v51  ;;  %v4899_v63 = vpack.c.bf16 %v624_v57, %v615_v31 }
 0x144   : > { %4750 = vmatpush1.bf16.msra.mxu0 %v4749_v61  ;;  %v489_v61 = vld [vmem:[#allocation6 + $0x670] sm:$0xff] }
 0x145   : > { %4752 = vmatprep.subr.bf16.mxu0 %v4751_v0  ;;  %4846 = vmatpush1.bf16.msra.mxu1 %v4845_v5  ;;  %v4869_v0 = vpack.c.bf16 %v336_v60, %v327_v59  ;;  %v4871_v4 = vpack.c.bf16 %v498_v62, %v489_v61  ;;  %v345_v5 = vld [vmem:[#allocation6 + $0x1f0] sm:$0xff] }
 0x146   : > { %4848 = vmatprep.subr.bf16.mxu1 %v4847_v7  ;;  %v354_v7 = vld [vmem:[#allocation6 + $0x238] sm:$0xff] }
 0x147   : > { %v4873_v11 = vpack.c.bf16 %v354_v7, %v345_v5 }
 0x148   : > { %4754 = vmatpush1.bf16.msra.mxu0 %v4753_v10  ;;  %v4903_v10 = vpack.c.bf16 %v642_v2, %v633_v1 }
 0x149   : > { %4756 = vmatprep.subr.bf16.mxu0 %v4755_v13  ;;  %4850 = vmatpush1.bf16.msra.mxu1 %v4849_v20  ;;  %v660_v13 = vld [vmem:[#allocation6 + $0xbc8] sm:$0xff]  ;;  %v534_v20 = vld [vmem:[#allocation6 + $0x7d8] sm:$0xff] }
 0x14a   : > { %4852 = vmatprep.subr.bf16.mxu1 %v4851_v21  ;;  %v4907_v21 = vpack.c.bf16 %v660_v13, %v651_v12 }
 0x14c   : > { %4758 = vmatpush1.bf16.msra.mxu0 %v4757_v24  ;;  %v678_v24 = vld [vmem:[#allocation6 + $0xc58] sm:$0xff] }
 0x14d   : > { %4760 = vmatprep.subr.bf16.mxu0 %v4759_v27  ;;  %4854 = vmatpush1.bf16.msra.mxu1 %v4853_v34  ;;  %v543_v27 = vld [vmem:[#allocation6 + $0x820] sm:$0xff]  ;;  %v4911_v30 = vpack.c.bf16 %v678_v24, %v669_v23  ;;  %v696_v34 = vld [vmem:[#allocation6 + $0xce8] sm:$0xff] }
 0x14e   : > { %4856 = vmatprep.subr.bf16.mxu1 %v4855_v35  ;;  %v4883_v35 = vpack.c.bf16 %v552_v28, %v543_v27  ;;  %v4915_v39 = vpack.c.bf16 %v696_v34, %v687_v33  ;;  %v6011_v27 = vshrl.u32 %v1521_v26, 7  ;;  %v1528_v28 = vand.u32 127, %v1521_v26 }
 0x150   : > { %4762 = vmatpush1.bf16.msra.mxu0 %v4761_v16  ;;  %v561_v16 = vld [vmem:[#allocation6 + $0x8b0] sm:$0xff]  ;;  %vm6015_vm2 = vcmp.le.s32.totalorder %v1528_v28, %v6011_v27 }
 0x151   : > { %4860 = vmatprep.subr.bf16.mxu0 %v4859_v40  ;;  %4858 = vmatpush1.bf16.msra.mxu1 %v4857_v29  ;;  %v4885_v40 = vpack.c.bf16 %v408_v37, %v399_v36  ;;  %v4887_v42 = vpack.c.bf16 %v570_v38, %v561_v16  ;;  %v426_v29 = vld [vmem:[#allocation6 + $0x478] sm:$0xff] }
 0x152   : > { %4892 = vmatprep.subr.bf16.mxu1 %v4891_v44 }
 0x153   : > { %1165 = vmatmul.mubr.f32.vlgmr.msra.gmra.mrb[4].mxu0 %v5905_v55 }
 0x154   : > { %1170 = vmatprep.mubr.f32.mxu0 %v5622_v53  ;;  %4862 = vmatpush3.bf16.msra.mxu0 %v4861_v45  ;;  %v4889_v45 = vpack.c.bf16 %v426_v29, %v417_v43 }
 0x155   : > { %4864 = vmatprep.subr.bf16.mxu0 %v4863_v48  ;;  %1319 = vmatmul.mubr.f32.vlgmr.msra.gmra.mrb[4].mxu1 %v5905_v55  ;;  %v5407_v48 = vld [vmem:[%s5868_s6 + $0x18] sm:$0xff] }
 0x156   : > { %4894 = vmatpush3.bf16.msra.mxu1 %v4891_v44  ;;  %1324 = vmatprep.mubr.f32.mxu1 %v5622_v53  ;;  %v4919_v44 = vpack.c.bf16 %v714_v41, %v705_v15 }
 0x157   : > { %1171 = vmatmul.mubr.f32.gmra.mrb[6].mxu0 %v5912_v6  ;;  %4896 = vmatprep.subr.bf16.mxu1 %v4895_v54 }
 0x158   : > { %4866 = vmatpush3.bf16.msra.mxu0 %v4865_v56  ;;  %1395 = vmatprep.mubr.f32.mxu0 %v5404_v3 }
 0x159   : > { %4868 = vmatprep.subr.bf16.mxu0 %v4867_v58  ;;  %1325 = vmatmul.mubr.f32.gmra.mrb[6].mxu1 %v5912_v6 }
 0x15a   : > { %4898 = vmatpush3.bf16.msra.mxu1 %v4895_v54  ;;  %4274 = vmatprep.mubr.f32.mxu1 %v5905_v55  ;;  %v4879_v55 = vpack.c.bf16 %v534_v20, %v525_v19 }
 0x15b   : > { %4900 = vmatprep.subr.bf16.mxu1 %v4899_v63 }
 0x15c   : > { %4870 = vmatpush3.bf16.msra.mxu0 %v4869_v0 }
 0x15d   : > { %4872 = vmatprep.subr.bf16.mxu0 %v4871_v4 }
 0x15e   : > { %4902 = vmatpush3.bf16.msra.mxu1 %v4899_v63 }
 0x15f   : > { %4904 = vmatprep.subr.bf16.mxu1 %v4903_v10 }
 0x160   : > { %4874 = vmatpush3.bf16.msra.mxu0 %v4873_v11 }
 0x161   : > { %4876 = vmatprep.subr.bf16.mxu0 %v4875_v14 }
 0x162   : > { %4906 = vmatpush3.bf16.msra.mxu1 %v4903_v10 }
 0x163   : > { %4908 = vmatprep.subr.bf16.mxu1 %v4907_v21 }
 0x164   : > { %4878 = vmatpush3.bf16.msra.mxu0 %v4877_v22 }
 0x165   : > { %4880 = vmatprep.subr.bf16.mxu0 %v4879_v55 }
 0x166   : > { %4910 = vmatpush3.bf16.msra.mxu1 %v4907_v21 }
 0x167   : > { %4912 = vmatprep.subr.bf16.mxu1 %v4911_v30 }
 0x168   : > { %4882 = vmatpush3.bf16.msra.mxu0 %v4881_v32 }
 0x169   : > { %4884 = vmatprep.subr.bf16.mxu0 %v4883_v35 }
 0x16a   : > { %4914 = vmatpush3.bf16.msra.mxu1 %v4911_v30  ;;  %v1523_v30 = vadd.s32 8, %v6011_v27 }
 0x16b   : > { %4916 = vmatprep.subr.bf16.mxu1 %v4915_v39 }
 0x16c   : > { %4886 = vmatpush3.bf16.msra.mxu0 %v4885_v40  ;;  %vm6019_vm4 = vcmp.le.s32.totalorder %v1528_v28, %v1523_v30 }
 0x16d   : > { %4888 = vmatprep.subr.bf16.mxu0 %v4887_v42 }
 0x16e   : > { %4918 = vmatpush3.bf16.msra.mxu1 %v4915_v39 }
 0x16f   : > { %4920 = vmatprep.subr.bf16.mxu1 %v4919_v44 }
 0x170   : > { %4890 = vmatpush3.bf16.msra.mxu0 %v4889_v45 }
 0x172   : > { %4922 = vmatpush3.bf16.msra.mxu1 %v4919_v44 }
 0x173   : > { %1396 = vmatmul.mubr.f32.vlgmr.msra.gmra.mrb[8].mxu0 %v5405_v46 }
 0x174   : > { %1400 = vmatprep.mubr.f32.mxu0 %v5406_v47 }
 0x175   : > { %4275 = vmatmul.mubr.f32.vlgmr.msra.gmra.mrb[8].mxu1 %v5912_v6 }
 0x177   : > { %1401 = vmatmul.mubr.f32.gmra.mrb[10].mxu0 %v5407_v48 }
 0x1c5   : > { %v858_v49 = vpop.f32.mrb[0].mxu0  ;;  %v5938_v50 = vpop.f32.mrb[0].mxu1 }
 0x1c6   : > { %1749 = vrot.lane.b32.xlu1 %v858_v49, %s5623_s23  ;;  %v5941_v51 = vpop.f32.mrb[1].mxu0  ;;  %4281 = vmatprep.mubr.msk.f32.mxu0 %vm1531_vm0, %v858_v49  ;;  %v1014_v52 = vpop.f32.mrb[1].mxu1 }
 0x1c9   : > { %v5944_v54 = vpop.f32.mrb[2].mxu0  ;;  %v5946_v56 = vpop.f32.mrb[2].mxu1 }
 0x1ca   : > { %v5948_v31 = vpop.f32.mrb[3].mxu0  ;;  %v1020_v6 = vpop.f32.mrb[3].mxu1 }
 0x1cb   : > { %v5326_v58 = vpack.i.bf16 %v1020_v6, %v1014_v52  ;;  %v4923_v59 = vpack.c.bf16 %v1020_v6, %v1014_v52 }
 0x1cd   : > { %4925 = vmatprep.subr.msk.bf16.mxu0 %vm5952_vm1, %v4923_v59 }
 0x1ce   : > { %4928 = vmatpush3.bf16.xpose.msk.msra.mxu0 %vm5952_vm1, %v4923_v59 }
 0x1d5   : > { %4282 = vmatmul.mubr.msk.f32.vlgmr.msra.gmra.mrb[12].mxu0 %vm1531_vm0, %v5944_v54 }
 0x1d6   : > { %2048 = vmatprep.mubr.f32.mxu0 %v5622_v53 }
 0x226   : > { %v5963_v60 = vpop.f32.mrb[4].mxu0 }
 0x227   : > { %v5965_v61 = vpop.f32.mrb[5].mxu0 }
 0x228   : > { %v5967_v62 = vpop.f32.mrb[4].mxu1 }
 0x229   : > { %v5969_v63 = vpop.f32.mrb[5].mxu1 }
 0x22a   : > { %v5971_v0 = vpop.f32.mrb[6].mxu0 }
 0x22b   : > { %v5336_v1 = vpack.i.bf16 %v5971_v0, %v5963_v60  ;;  %v5977_v2 = vpack.c.bf16 %v5971_v0, %v5963_v60  ;;  %v5979_v3 = vpop.f32.mrb[7].mxu0 }
 0x22c   : > { %v5346_v4 = vpack.i.bf16 %v5979_v3, %v5965_v61  ;;  %v5985_v5 = vpack.c.bf16 %v5979_v3, %v5965_v61  ;;  %v5987_v7 = vpop.f32.mrb[6].mxu1  ;;  %v2887_v61 = vld [vmem:[#allocation8 + $0x278] sm:$0xff]  ;;  %v2890_v3 = vld [vmem:[#allocation8 + $0x290] sm:$0xff] }
 0x22d   : > { %v5331_v8 = vpack.i.bf16 %v5987_v7, %v5967_v62  ;;  %v4929_v9 = vpack.c.bf16 %v5987_v7, %v5967_v62  ;;  %v5993_v10 = vpop.f32.mrb[7].mxu1 }
 0x22e   : > { %v5341_v11 = vpack.i.bf16 %v5993_v10, %v5969_v63  ;;  %v5999_v12 = vpack.c.bf16 %v5993_v10, %v5969_v63  ;;  %v2880_v10 = vld [vmem:[#allocation8 + $0x240] sm:$0xff] }
 0x22f   : > { %4930 = vmatprep.subr.bf16.mxu1 %v4929_v9 }
 0x230   : > { %4932 = vmatpush3.bf16.msra.mxu1 %v4929_v9 }
 0x238   : > { %v1750_v6 = vpop.permute.xlu1 %1749 }
 0x246   : > { %v4110_v13 = vpop.f32.mrb[8].mxu0 }
 0x247   : > { %v4111_v14 = vpop.f32.mrb[9].mxu0 }
 0x248   : > { %v4112_v17 = vadd.f32 %v4111_v14, %v4110_v13  ;;  %v4276_v18 = vpop.f32.mrb[8].mxu1 }
 0x249   : > { %v1472_v19 = vpop.f32.mrb[9].mxu1 }
 0x24a   : > { %v4113_v20 = vpop.f32.mrb[10].mxu0  ;;  %v6001_v21 = vadd.f32 %v4112_v17, %v1472_v19 }
 0x24b   : > { %v4114_v22 = vpop.f32.mrb[11].mxu0 }
 0x24c   : > { %v4115_v23 = vadd.f32 %v4114_v22, %v4113_v20 }
 0x24e   : > { %v6003_v24 = vadd.f32 %v4276_v18, %v4115_v23 }
 0x250   : > { %v5351_v55 = vpack.i.bf16 %v6003_v24, %v6001_v21  ;;  %v6009_v25 = vpack.c.bf16 %v6003_v24, %v6001_v21 }
 0x2a8   : > { %v4283_v33 = vpop.f32.mrb[12].mxu0 }
 0x2a9   : > { %v1610_v35 = vpop.f32.mrb[13].mxu0  ;;  %v1620_v16 = vsel %vm6019_vm4, %v4283_v33, -inf }
 0x2aa   : > { %v1619_v36 = vsel %vm6015_vm2, %v1610_v35, -inf  ;;  %v1625_v38 = vsel %vm1621_vm3, %v1620_v16, -inf }
 0x2ab   : > { %v1622_v37 = vsel %vm1621_vm3, %v1619_v36, -inf }
 0x2ac   : > { %1623 = vmax.xlane.f32.xlu0 %v1622_v37 }
 0x2b0   : > { %1626 = vmax.xlane.f32.xlu0 %v1625_v38 }
 0x2c6   : > { %5327 = vrot.lane.b32.xlu0 %v5326_v58, %s5623_s23 }
 0x339   : > { %v1624_v39 = vpop.xlane.xlu0 %1623 }
 0x33a   : > { %v1628_v40 = vsub.f32 %v1619_v36, %v1624_v39 }
 0x33c   : > { %v1630_v42 = vmul.f32 1.442695, %v1628_v40 }
 0x33d   : > { %v1627_v15 = vpop.xlane.xlu0 %1626 }
 0x33e   : > { %v1629_v41 = vsub.f32 %v1620_v16, %v1627_v15 }
 0x340   : > { %v1632_v43 = vmul.f32 1.442695, %v1629_v41  ;;  %v1958_v41 = vld [vmem:[#allocation8 + $0xe0] sm:$0xff] }
 0x341   : > { %v5328_v29 = vpop.permute.xlu0 %5327 }
 0x342   : > { %5356 = vpow2.f32 %v1632_v43  ;;  %v5330_v44 = vunpack.i.h.bf16 %v5328_v29  ;;  %v5329_v45 = vunpack.i.l.bf16 %v5328_v29  ;;  %v1957_v29 = vld [vmem:[#allocation8 + $0xd8] sm:$0xff] }
 0x343   : > { %5358 = vpow2.f32 %v1630_v42  ;;  %v1954_v42 = vld [vmem:[#allocation8 + $0xc0] sm:$0xff] }
 0x344   : > { %v4933_v46 = vpack.c.bf16 %v5330_v44, %v5329_v45  ;;  %v1956_v44 = vld [vmem:[#allocation8 + $0xd0] sm:$0xff]  ;;  %v1959_v45 = vld [vmem:[#allocation8 + $0xe8] sm:$0xff] }
 0x346   : > { %4935 = vmatprep.subr.msk.bf16.mxu1 %vm5952_vm1, %v4933_v46 }
 0x34c   : > { %v5357_v47 = vpop.eup %5356 }
 0x34d   : > { %v1637_v48 = vsel %vm1621_vm3, %v5357_v47, 0.0  ;;  %v5359_v49 = vpop.eup %5358 }
 0x34e   : > { %1638 = vadd.xlane.f32.xlu1 %v1637_v48  ;;  %v1634_v52 = vsel %vm1621_vm3, %v5359_v49, 0.0  ;;  %v1961_v48 = vld [vmem:[#allocation8 + $0xf8] sm:$0xff] }
 0x352   : > { %1635 = vadd.xlane.f32.xlu1 %v1634_v52  ;;  %v1960_v52 = vld [vmem:[#allocation8 + $0xf0] sm:$0xff] }
 0x363   : > { %1751 = vrot.lane.b32.xlu1 %v5944_v54, %s5623_s23 }
 0x3db   : > { %v1639_v58 = vpop.xlane.xlu1 %1638 }
 0x3dc   : > { %5360 = vrcp.f32 %v1639_v58  ;;  %v1963_v58 = vld [vmem:[#allocation8 + $0x108] sm:$0xff] }
 0x3df   : > { %v1636_v59 = vpop.xlane.xlu1 %1635 }
 0x3e0   : > { %5362 = vrcp.f32 %v1636_v59  ;;  %v4949_v59 = vpack.c.bf16 %v1963_v58, %v1960_v52  ;;  %v1735_v52 = vld [vmem:[#allocation8 + $0x50] sm:$0xff]  ;;  %v1733_v58 = vld [vmem:[#allocation8 + $0x40] sm:$0xff] }
 0x3e3   : > { %v1752_v18 = vpop.permute.xlu1 %1751 }
 0x3e6   : > { %v5361_v9 = vpop.eup %5360 }
 0x3e7   : > { %v1643_v17 = vmul.f32 %v5361_v9, %v5357_v47  ;;  %v4959_v47 = vpack.c.bf16 %v1959_v45, %v1956_v44  ;;  %v1967_v9 = vld [vmem:[#allocation8 + $0x128] sm:$0xff] }
 0x3e8   : > { %v1730_v45 = vld [vmem:[#allocation8 + $0x28] sm:$0xff] }
 0x3ea   : > { %v5363_v13 = vpop.eup %5362 }
 0x3eb   : > { %v1642_v14 = vmul.f32 %v5363_v13, %v5359_v49  ;;  %v1964_v49 = vld [vmem:[#allocation8 + $0x110] sm:$0xff]  ;;  %v1970_v13 = vld [vmem:[#allocation8 + $0x140] sm:$0xff] }
 0x3ed   : > { %4288 = vmatprep.mubr.msk.f32.mxu1 %vm1621_vm3, %v1642_v14  ;;  %v1966_v14 = vld [vmem:[#allocation8 + $0x120] sm:$0xff] }
 0x3ee   : > { %4289 = vmatmul.mubr.msk.f32.vlgmr.msra.gmra.mrb[10].mxu1 %vm1621_vm3, %v1643_v17  ;;  %v4951_v17 = vpack.c.bf16 %v1970_v13, %v1967_v9  ;;  %v1731_v13 = vld [vmem:[#allocation8 + $0x30] sm:$0xff] }
 0x3ef   : > { %4938 = vmatpush3.bf16.xpose.msk.msra.mxu1 %vm5952_vm1, %v4933_v46  ;;  %4295 = vmatprep.mubr.msk.f32.mxu1 %vm1531_vm0, %v1750_v6  ;;  %v4945_v46 = vpack.c.bf16 %v1957_v29, %v1954_v42  ;;  %v4947_v6 = vpack.c.bf16 %v1964_v49, %v1961_v48  ;;  %v1977_v42 = vld [vmem:[#allocation8 + $0x178] sm:$0xff]  ;;  %v1729_v29 = vld [vmem:[#allocation8 + $0x20] sm:$0xff] }
 0x3f0   : > { %v1725_v48 = vld [vmem:[#allocation8] sm:$0xff]  ;;  %v1732_v49 = vld [vmem:[#allocation8 + $0x38] sm:$0xff] }
 0x3f6   : > { %4296 = vmatmul.mubr.msk.f32.vlgmr.msra.gmra.mrb[12].mxu1 %vm1531_vm0, %v1752_v18  ;;  %v1969_v18 = vld [vmem:[#allocation8 + $0x138] sm:$0xff] }
 0x4c1   : > { %v6042_v54 = vpop.f32.mrb[10].mxu1 }
 0x4c2   : > { %v6044_v19 = vpop.f32.mrb[11].mxu1 }
 0x4c9   : > { %v4297_v20 = vpop.f32.mrb[12].mxu1 }
 0x4ca   : > { %v1841_v22 = vsel %vm6019_vm4, %v4297_v20, -inf  ;;  %v1831_v23 = vpop.f32.mrb[13].mxu1  ;;  %v4953_v20 = vpack.c.bf16 %v1969_v18, %v1966_v14  ;;  %v1734_v14 = vld [vmem:[#allocation8 + $0x48] sm:$0xff]  ;;  %v4979_v18 = vpack.c.bf16 %v1735_v52, %v1732_v49  ;;  %v2489_v52 = vld [vmem:[#allocation8 + $0x190] sm:$0xff] }
 0x4cb   : > { %v1840_v26 = vsel %vm6015_vm2, %v1831_v23, -inf  ;;  %v1845_v28 = vsel %vm1621_vm3, %v1841_v22, -inf  ;;  %v1976_v23 = vld [vmem:[#allocation8 + $0x170] sm:$0xff] }
 0x4cc   : > { %1846 = vmax.xlane.f32.xlu0 %v1845_v28  ;;  %v1842_v30 = vsel %vm1621_vm3, %v1840_v26, -inf }
 0x4cd   : > { %1843 = vmax.xlane.f32.xlu1 %v1842_v30  ;;  %v1975_v30 = vld [vmem:[#allocation8 + $0x168] sm:$0xff] }
 0x4de   : > { %5332 = vrot.lane.b32.xlu1 %v5331_v8, %s5623_s23  ;;  %v1955_v8 = vld [vmem:[#allocation8 + $0xc8] sm:$0xff] }
 0x4df   : > { %v4943_v43 = vpack.c.bf16 %v1958_v41, %v1955_v8  ;;  %v1974_v41 = vld [vmem:[#allocation8 + $0x160] sm:$0xff] }
 0x4e1   : > { %4944 = vmatprep.subr.bf16.mxu0 %v4943_v43  ;;  %v4971_v43 = vpack.c.bf16 %v1977_v42, %v1974_v41 }
 0x4e2   : > { %5337 = vrot.lane.b32.xlu1 %v5336_v1, %s5623_s23  ;;  %4946 = vmatpush1.bf16.msra.mxu0 %v4945_v46 }
 0x4e3   : > { %4948 = vmatprep.subr.bf16.mxu0 %v4947_v6 }
 0x4e6   : > { %2677 = vrot.lane.b32.xlu1 %v5948_v31, %s5623_s23  ;;  %4950 = vmatpush1.bf16.msra.mxu0 %v4949_v59  ;;  %v1736_v59 = vld [vmem:[#allocation8 + $0x58] sm:$0xff] }
 0x4e7   : > { %4952 = vmatprep.subr.bf16.mxu0 %v4951_v17 }
 0x4ea   : > { %4954 = vmatpush1.bf16.msra.mxu0 %v4953_v20  ;;  %v1738_v20 = vld [vmem:[#allocation8 + $0x68] sm:$0xff] }
 0x559   : > { %v1847_v33 = vpop.xlane.xlu0 %1846 }
 0x55a   : > { %v1849_v35 = vsub.f32 %v1841_v22, %v1847_v33  ;;  %v1844_v36 = vpop.xlane.xlu1 %1843  ;;  %v1973_v22 = vld [vmem:[#allocation8 + $0x158] sm:$0xff] }
 0x55b   : > { %v1848_v37 = vsub.f32 %v1840_v26, %v1844_v36  ;;  %v1972_v26 = vld [vmem:[#allocation8 + $0x150] sm:$0xff]  ;;  %v4955_v28 = vpack.c.bf16 %v1976_v23, %v1973_v22  ;;  %v1741_v22 = vld [vmem:[#allocation8 + $0x80] sm:$0xff]  ;;  %v4995_v23 = vpack.c.bf16 %v1736_v59, %v1733_v58  ;;  %v2488_v59 = vld [vmem:[#allocation8 + $0x188] sm:$0xff] }
 0x55c   : > { %v1852_v16 = vmul.f32 1.442695, %v1849_v35  ;;  %v4957_v33 = vpack.c.bf16 %v1975_v30, %v1972_v26  ;;  %v1739_v26 = vld [vmem:[#allocation8 + $0x70] sm:$0xff]  ;;  %v4981_v30 = vpack.c.bf16 %v1734_v14, %v1731_v13  ;;  %v2487_v13 = vld [vmem:[#allocation8 + $0x180] sm:$0xff] }
 0x55d   : > { %v1850_v38 = vmul.f32 1.442695, %v1848_v37  ;;  %4956 = vmatprep.subr.bf16.mxu0 %v4955_v28  ;;  %v1742_v28 = vld [vmem:[#allocation8 + $0x88] sm:$0xff] }
 0x55e   : > { %v5333_v39 = vpop.permute.xlu1 %5332  ;;  %4958 = vmatpush1.bf16.msra.mxu0 %v4957_v33  ;;  %v4983_v33 = vpack.c.bf16 %v1741_v22, %v1738_v20  ;;  %v2497_v20 = vld [vmem:[#allocation8 + $0x1d0] sm:$0xff] }
 0x55f   : > { %5364 = vpow2.f32 %v1850_v38  ;;  %v5335_v40 = vunpack.i.h.bf16 %v5333_v39  ;;  %v5334_v15 = vunpack.i.l.bf16 %v5333_v39  ;;  %v1962_v38 = vld [vmem:[#allocation8 + $0x100] sm:$0xff]  ;;  %v1965_v39 = vld [vmem:[#allocation8 + $0x118] sm:$0xff] }
 0x560   : > { %5366 = vpow2.f32 %v1852_v16 }
 0x561   : > { %v4939_v62 = vpack.c.bf16 %v5335_v40, %v5334_v15 }
 0x563   : > { %4940 = vmatprep.subr.bf16.mxu1 %v4939_v62 }
 0x564   : > { %4942 = vmatpush3.bf16.msra.mxu1 %v4939_v62  ;;  %v4963_v62 = vpack.c.bf16 %v1965_v39, %v1962_v38  ;;  %v1747_v38 = vld [vmem:[#allocation8 + $0xb0] sm:$0xff]  ;;  %v1745_v39 = vld [vmem:[#allocation8 + $0xa0] sm:$0xff] }
 0x565   : > { %4960 = vmatprep.subr.bf16.mxu1 %v4959_v47 }
 0x569   : > { %v5365_v7 = vpop.eup %5364 }
 0x56a   : > { %v1854_v60 = vsel %vm1621_vm3, %v5365_v7, 0.0  ;;  %v5367_v0 = vpop.eup %5366 }
 0x56b   : > { %1855 = vadd.xlane.f32.xlu0 %v1854_v60  ;;  %v1857_v1 = vsel %vm1621_vm3, %v5367_v0, 0.0  ;;  %v1968_v60 = vld [vmem:[#allocation8 + $0x130] sm:$0xff] }
 0x56f   : > { %1858 = vadd.xlane.f32.xlu0 %v1857_v1  ;;  %v1971_v1 = vld [vmem:[#allocation8 + $0x148] sm:$0xff] }
 0x570   : > { %v4967_v8 = vpack.c.bf16 %v1971_v1, %v1968_v60  ;;  %v1743_v60 = vld [vmem:[#allocation8 + $0x90] sm:$0xff]  ;;  %v1746_v1 = vld [vmem:[#allocation8 + $0xa8] sm:$0xff] }
 0x571   : > { %v4989_v41 = vpack.c.bf16 %v1746_v1, %v1743_v60 }
 0x5f8   : > { %v1856_v35 = vpop.xlane.xlu0 %1855 }
 0x5f9   : > { %5368 = vrcp.f32 %v1856_v35  ;;  %v1737_v35 = vld [vmem:[#allocation8 + $0x60] sm:$0xff] }
 0x5fc   : > { %v1859_v36 = vpop.xlane.xlu0 %1858 }
 0x5fd   : > { %5370 = vrcp.f32 %v1859_v36  ;;  %v1740_v36 = vld [vmem:[#allocation8 + $0x78] sm:$0xff] }
 0x603   : > { %v5369_v37 = vpop.eup %5368 }
 0x604   : > { %v1862_v16 = vmul.f32 %v5369_v37, %v5365_v7  ;;  %v1726_v7 = vld [vmem:[#allocation8 + $0x8] sm:$0xff]  ;;  %v4999_v37 = vpack.c.bf16 %v1742_v28, %v1739_v26  ;;  %v2493_v26 = vld [vmem:[#allocation8 + $0x1b0] sm:$0xff] }
 0x605   : > { %v4975_v44 = vpack.c.bf16 %v1729_v29, %v1726_v7  ;;  %v2496_v28 = vld [vmem:[#allocation8 + $0x1c8] sm:$0xff] }
 0x606   : > { %4302 = vmatprep.mubr.msk.f32.mxu1 %vm1621_vm3, %v1862_v16  ;;  %v1744_v16 = vld [vmem:[#allocation8 + $0x98] sm:$0xff] }
 0x607   : > { %v5371_v40 = vpop.eup %5370  ;;  %4976 = vmatprep.subr.bf16.mxu0 %v4975_v44 }
 0x608   : > { %v1863_v15 = vmul.f32 %v5371_v40, %v5367_v0  ;;  %v1727_v0 = vld [vmem:[#allocation8 + $0x10] sm:$0xff]  ;;  %v1748_v40 = vld [vmem:[#allocation8 + $0xb8] sm:$0xff] }
 0x609   : > { %v4991_v46 = vpack.c.bf16 %v1730_v45, %v1727_v0 }
 0x60a   : > { %4303 = vmatmul.mubr.msk.f32.vlgmr.msra.gmra.mrb[14].mxu1 %vm1621_vm3, %v1863_v15  ;;  %v4985_v15 = vpack.c.bf16 %v1740_v36, %v1737_v35  ;;  %v2499_v36 = vld [vmem:[#allocation8 + $0x1e0] sm:$0xff] }
 0x60b   : > { %4962 = vmatpush3.bf16.msra.mxu1 %v4959_v47  ;;  %v1728_v47 = vld [vmem:[#allocation8 + $0x18] sm:$0xff] }
 0x60c   : > { %4964 = vmatprep.subr.bf16.mxu1 %v4963_v62  ;;  %v4977_v6 = vpack.c.bf16 %v1728_v47, %v1725_v48 }
 0x60f   : > { %4966 = vmatpush3.bf16.msra.mxu1 %v4963_v62  ;;  %v4987_v62 = vpack.c.bf16 %v1747_v38, %v1744_v16  ;;  %v2506_v16 = vld [vmem:[#allocation8 + $0x218] sm:$0xff]  ;;  %v2509_v38 = vld [vmem:[#allocation8 + $0x230] sm:$0xff] }
 0x610   : > { %4968 = vmatprep.subr.bf16.mxu1 %v4967_v8 }
 0x613   : > { %4970 = vmatpush3.bf16.msra.mxu1 %v4967_v8  ;;  %v5003_v8 = vpack.c.bf16 %v1748_v40, %v1745_v39  ;;  %v5029_v40 = vpack.c.bf16 %v2509_v38, %v2506_v16 }
 0x614   : > { %4972 = vmatprep.subr.bf16.mxu1 %v4971_v43 }
 0x617   : > { %4974 = vmatpush3.bf16.msra.mxu1 %v4971_v43 }
 0x618   : > { %4992 = vmatprep.subr.bf16.mxu1 %v4991_v46 }
 0x6dd   : > { %v4304_v9 = vpop.f32.mrb[14].mxu1 }
 0x6de   : > { %v1944_v17 = vpop.f32.mrb[15].mxu1 }
 0x6df   : > { %4027 = vmatmul.mubr.msk.f32.vlgmr.msra.gmra.mrb[14].mxu0 %vm1531_vm0, %v1944_v17  ;;  %4321 = vmatprep.mubr.msk.f32.mxu1 %vm1531_vm0, %v1944_v17  ;;  %v2490_v17 = vld [vmem:[#allocation8 + $0x198] sm:$0xff] }
 0x6e0   : > { %4978 = vmatpush1.bf16.msra.mxu0 %v4977_v6  ;;  %4322 = vmatmul.mubr.msk.f32.vlgmr.msra.gmra.mrb[16].mxu1 %vm1531_vm0, %v4304_v9  ;;  %v2492_v6 = vld [vmem:[#allocation8 + $0x1a8] sm:$0xff]  ;;  %v5019_v22 = vpack.c.bf16 %v2490_v17, %v2487_v13  ;;  %v2891_v17 = vld [vmem:[#allocation8 + $0x298] sm:$0xff] }
 0x6e1   : > { %4994 = vmatpush3.bf16.msra.mxu1 %v4991_v46  ;;  %4340 = vmatprep.mubr.msk.f32.mxu1 %vm1531_vm0, %v6044_v19  ;;  %v5033_v58 = vpack.c.bf16 %v2492_v6, %v2489_v52  ;;  %v2885_v6 = vld [vmem:[#allocation8 + $0x268] sm:$0xff] }
 0x6e2   : > { %2054 = vmatprep.mubr.f32.mxu0 %v5622_v53  ;;  %4980 = vmatprep.subr.bf16.mxu0 %v4979_v18  ;;  %v2494_v18 = vld [vmem:[#allocation8 + $0x1b8] sm:$0xff] }
 0x6e3   : > { %4028 = vmatmul.mubr.msk.f32.gmra.mrb[16].mxu0 %vm1531_vm0, %v4304_v9  ;;  %4996 = vmatprep.subr.bf16.mxu1 %v4995_v23  ;;  %v2491_v9 = vld [vmem:[#allocation8 + $0x1a0] sm:$0xff] }
 0x6e4   : > { %4982 = vmatpush1.bf16.msra.mxu0 %v4981_v30  ;;  %2206 = vmatprep.mubr.f32.mxu0 %v5622_v53  ;;  %v5017_v14 = vpack.c.bf16 %v2491_v9, %v2488_v59  ;;  %v2500_v30 = vld [vmem:[#allocation8 + $0x1e8] sm:$0xff] }
 0x6e5   : > { %4998 = vmatpush3.bf16.msra.mxu1 %v4995_v23  ;;  %4984 = vmatprep.subr.bf16.mxu0 %v4983_v33  ;;  %v5021_v23 = vpack.c.bf16 %v2497_v20, %v2494_v18  ;;  %v2503_v33 = vld [vmem:[#allocation8 + $0x200] sm:$0xff] }
 0x6e6   : > { %5000 = vmatprep.subr.bf16.mxu1 %v4999_v37  ;;  %v5025_v35 = vpack.c.bf16 %v2503_v33, %v2500_v30  ;;  %v2903_v30 = vld [vmem:[#allocation8 + $0x2f8] sm:$0xff] }
 0x6e8   : > { %4986 = vmatpush1.bf16.msra.mxu0 %v4985_v15  ;;  %v2505_v15 = vld [vmem:[#allocation8 + $0x210] sm:$0xff] }
 0x6e9   : > { %5002 = vmatpush3.bf16.msra.mxu1 %v4999_v37  ;;  %4988 = vmatprep.subr.bf16.mxu0 %v4987_v62  ;;  %v2502_v37 = vld [vmem:[#allocation8 + $0x1f8] sm:$0xff]  ;;  %v2508_v62 = vld [vmem:[#allocation8 + $0x228] sm:$0xff] }
 0x6ea   : > { %5004 = vmatprep.subr.bf16.mxu1 %v5003_v8  ;;  %v5027_v39 = vpack.c.bf16 %v2502_v37, %v2499_v36  ;;  %v5031_v60 = vpack.c.bf16 %v2508_v62, %v2505_v15 }
 0x6ec   : > { %4990 = vmatpush1.bf16.msra.mxu0 %v4989_v41 }
 0x6ed   : > { %5006 = vmatpush3.bf16.msra.mxu1 %v5003_v8  ;;  %5009 = vmatprep.subr.msk.bf16.mxu0 %vm5952_vm1, %v5977_v2 }
 0x6ee   : > { %5014 = vmatprep.subr.bf16.mxu1 %v5999_v12 }
 0x6ef   : > { %4031 = vmatmul.mubr.msk.f32.vlgmr.msra.gmra.mrb[14].mxu0 %vm1531_vm0, %v6044_v19 }
 0x6f0   : > { %4341 = vmatmul.mubr.msk.f32.vlgmr.msra.gmra.mrb[16].mxu1 %vm1531_vm0, %v6042_v54  ;;  %2212 = vmatprep.mubr.f32.mxu0 %v5622_v53 }
 0x6f1   : > { %5016 = vmatpush3.bf16.msra.mxu1 %v5999_v12 }
 0x6f2   : > { %5034 = vmatprep.subr.bf16.mxu1 %v5033_v58 }
 0x6f3   : > { %4032 = vmatmul.mubr.msk.f32.gmra.mrb[16].mxu0 %vm1531_vm0, %v6042_v54 }
 0x6f4   : > { %4347 = vmatprep.mubr.msk.f32.mxu0 %vm1531_vm0, %v5941_v51 }
 0x6f5   : > { %5012 = vmatpush3.bf16.xpose.msk.msra.mxu0 %vm5952_vm1, %v5977_v2 }
 0x6f6   : > { %5018 = vmatprep.subr.bf16.mxu0 %v5017_v14  ;;  %v2888_v14 = vld [vmem:[#allocation8 + $0x280] sm:$0xff] }
 0x6f7   : > { %v5079_v18 = vpack.c.bf16 %v2891_v17, %v2888_v14  ;;  %v2895_v14 = vld [vmem:[#allocation8 + $0x2b8] sm:$0xff] }
 0x6f8   : > { %v2899_v17 = vld [vmem:[#allocation8 + $0x2d8] sm:$0xff] }
 0x6fc   : > { %4348 = vmatmul.mubr.msk.f32.vlgmr.msra.gmra.mrb[18].mxu0 %vm1531_vm0, %v5948_v31 }
 0x6fd   : > { %2581 = vmatprep.mubr.f32.mxu0 %v5622_v53  ;;  %5020 = vmatpush1.bf16.msra.mxu0 %v5019_v22  ;;  %v2894_v22 = vld [vmem:[#allocation8 + $0x2b0] sm:$0xff] }
 0x6fe   : > { %5022 = vmatprep.subr.bf16.mxu0 %v5021_v23  ;;  %v2897_v23 = vld [vmem:[#allocation8 + $0x2c8] sm:$0xff] }
 0x7cf   : > { %v4349_v19 = vpop.f32.mrb[18].mxu0 }
 0x7d0   : > { %v2372_v42 = vpop.f32.mrb[19].mxu0  ;;  %v2382_v54 = vsel %vm6019_vm4, %v4349_v19, -inf }
 0x7d1   : > { %v2381_v12 = vsel %vm6015_vm2, %v2372_v42, -inf  ;;  %v2386_v7 = vsel %vm1621_vm3, %v2382_v54, -inf  ;;  %v2495_v42 = vld [vmem:[#allocation8 + $0x1c0] sm:$0xff] }
 0x7d2   : > { %v2383_v43 = vsel %vm1621_vm3, %v2381_v12, -inf }
 0x7d3   : > { %2384 = vmax.xlane.f32.xlu0 %v2383_v43 }
 0x7d7   : > { %2387 = vmax.xlane.f32.xlu0 %v2386_v7 }
 0x860   : > { %v2385_v2 = vpop.xlane.xlu0 %2384 }
 0x861   : > { %v2389_v29 = vsub.f32 %v2381_v12, %v2385_v2  ;;  %v2498_v12 = vld [vmem:[#allocation8 + $0x1d8] sm:$0xff]  ;;  %v2501_v2 = vld [vmem:[#allocation8 + $0x1f0] sm:$0xff] }
 0x862   : > { %v5037_v7 = vpack.c.bf16 %v2498_v12, %v2495_v42 }
 0x863   : > { %v2391_v44 = vmul.f32 1.442695, %v2389_v29  ;;  %v2504_v29 = vld [vmem:[#allocation8 + $0x208] sm:$0xff] }
 0x864   : > { %v2388_v31 = vpop.xlane.xlu0 %2387 }
 0x865   : > { %5372 = vpow2.f32 %v2391_v44  ;;  %v2390_v0 = vsub.f32 %v2382_v54, %v2388_v31  ;;  %v5041_v44 = vpack.c.bf16 %v2504_v29, %v2501_v2  ;;  %v2507_v31 = vld [vmem:[#allocation8 + $0x220] sm:$0xff] }
 0x866   : > { %v2884_v2 = vld [vmem:[#allocation8 + $0x260] sm:$0xff] }
 0x867   : > { %v2393_v45 = vmul.f32 1.442695, %v2390_v0  ;;  %v2510_v0 = vld [vmem:[#allocation8 + $0x238] sm:$0xff] }
 0x869   : > { %5374 = vpow2.f32 %v2393_v45  ;;  %v5338_v45 = vpop.permute.xlu1 %5337 }
 0x86d   : > { %v2678_v20 = vpop.permute.xlu1 %2677 }
 0x86f   : > { %v5373_v46 = vpop.eup %5372 }
 0x870   : > { %v2395_v48 = vsel %vm1621_vm3, %v5373_v46, 0.0 }
 0x871   : > { %2396 = vadd.xlane.f32.xlu0 %v2395_v48  ;;  %v5340_v48 = vunpack.i.h.bf16 %v5338_v45 }
 0x873   : > { %v5375_v47 = vpop.eup %5374 }
 0x874   : > { %v2398_v49 = vsel %vm1621_vm3, %v5375_v47, 0.0 }
 0x875   : > { %2399 = vadd.xlane.f32.xlu0 %v2398_v49  ;;  %v5339_v49 = vunpack.i.l.bf16 %v5338_v45 }
 0x877   : > { %v5049_v52 = vpack.c.bf16 %v5340_v48, %v5339_v49  ;;  %v5063_v49 = vpack.c.bf16 %v2890_v3, %v2887_v61  ;;  %v3262_v3 = vld [vmem:[#allocation8 + $0x308] sm:$0xff] }
 0x88b   : > { %2675 = vrot.lane.b32.xlu0 %v5941_v51, %s5623_s23  ;;  %v5023_v51 = vpack.c.bf16 %v2496_v28, %v2493_v26  ;;  %v5083_v26 = vpack.c.bf16 %v2897_v23, %v2894_v22  ;;  %v2900_v28 = vld [vmem:[#allocation8 + $0x2e0] sm:$0xff]  ;;  %v2898_v23 = vld [vmem:[#allocation8 + $0x2d0] sm:$0xff] }
 0x88c   : > { %v5087_v33 = vpack.c.bf16 %v2903_v30, %v2900_v28  ;;  %v3263_v30 = vld [vmem:[#allocation8 + $0x310] sm:$0xff] }
 0x88d   : > { %5024 = vmatpush1.bf16.msra.mxu0 %v5023_v51 }
 0x88e   : > { %5026 = vmatprep.subr.bf16.mxu0 %v5025_v35 }
 0x891   : > { %5028 = vmatpush1.bf16.msra.mxu0 %v5027_v39 }
 0x892   : > { %5030 = vmatprep.subr.bf16.mxu0 %v5029_v40 }
 0x895   : > { %5032 = vmatpush1.bf16.msra.mxu0 %v5031_v60 }
 0x8fe   : > { %v2397_v1 = vpop.xlane.xlu0 %2396 }
 0x8ff   : > { %5376 = vrcp.f32 %v2397_v1 }
 0x902   : > { %v2400_v8 = vpop.xlane.xlu0 %2399 }
 0x903   : > { %5378 = vrcp.f32 %v2400_v8 }
 0x906   : > { %v2676_v13 = vpop.permute.xlu0 %2675 }
 0x909   : > { %v5377_v41 = vpop.eup %5376 }
 0x90a   : > { %v2403_v19 = vmul.f32 %v5377_v41, %v5373_v46  ;;  %v5045_v46 = vpack.c.bf16 %v2510_v0, %v2507_v31 }
 0x90c   : > { %4354 = vmatprep.mubr.msk.f32.mxu1 %vm1621_vm3, %v2403_v19 }
 0x90d   : > { %v5379_v43 = vpop.eup %5378 }
 0x90e   : > { %v2404_v54 = vmul.f32 %v5379_v43, %v5375_v47  ;;  %v2882_v47 = vld [vmem:[#allocation8 + $0x250] sm:$0xff] }
 0x90f   : > { %v5075_v9 = vpack.c.bf16 %v2885_v6, %v2882_v47  ;;  %v2889_v47 = vld [vmem:[#allocation8 + $0x288] sm:$0xff] }
 0x910   : > { %4355 = vmatmul.mubr.msk.f32.vlgmr.msra.gmra.mrb[18].mxu1 %vm1621_vm3, %v2404_v54  ;;  %v2893_v6 = vld [vmem:[#allocation8 + $0x2a8] sm:$0xff] }
 0x911   : > { %5036 = vmatpush3.bf16.msra.mxu1 %v5033_v58 }
 0x912   : > { %5038 = vmatprep.subr.bf16.mxu1 %v5037_v7 }
 0x915   : > { %5040 = vmatpush3.bf16.msra.mxu1 %v5037_v7  ;;  %v2881_v7 = vld [vmem:[#allocation8 + $0x248] sm:$0xff] }
 0x916   : > { %5042 = vmatprep.subr.bf16.mxu1 %v5041_v44  ;;  %v5059_v63 = vpack.c.bf16 %v2884_v2, %v2881_v7 }
 0x919   : > { %5044 = vmatpush3.bf16.msra.mxu1 %v5041_v44 }
 0x91a   : > { %5046 = vmatprep.subr.bf16.mxu1 %v5045_v46 }
 0x91d   : > { %5048 = vmatpush3.bf16.msra.mxu1 %v5045_v46 }
 0x91e   : > { %5051 = vmatprep.subr.msk.bf16.mxu1 %vm5952_vm1, %v5049_v52 }
 0x9e3   : > { %v4356_v58 = vpop.f32.mrb[18].mxu1 }
 0x9e4   : > { %v2477_v59 = vpop.f32.mrb[19].mxu1 }
 0x9e5   : > { %4041 = vmatmul.mubr.msk.f32.vlgmr.msra.gmra.mrb[14].mxu0 %vm1531_vm0, %v2477_v59  ;;  %4373 = vmatprep.mubr.msk.f32.mxu1 %vm1531_vm0, %v2477_v59 }
 0x9e6   : > { %4374 = vmatmul.mubr.msk.f32.vlgmr.msra.gmra.mrb[16].mxu1 %vm1531_vm0, %v4356_v58  ;;  %2587 = vmatprep.mubr.f32.mxu0 %v5622_v53 }
 0x9e7   : > { %5054 = vmatpush3.bf16.xpose.msk.msra.mxu1 %vm5952_vm1, %v5049_v52  ;;  %4380 = vmatprep.mubr.msk.f32.mxu1 %vm1531_vm0, %v2676_v13  ;;  %v2886_v52 = vld [vmem:[#allocation8 + $0x270] sm:$0xff]  ;;  %v2892_v13 = vld [vmem:[#allocation8 + $0x2a0] sm:$0xff] }
 0x9e8   : > { %5076 = vmatprep.subr.bf16.mxu1 %v5075_v9  ;;  %v5065_v59 = vpack.c.bf16 %v2889_v47, %v2886_v52  ;;  %v3261_v47 = vld [vmem:[#allocation8 + $0x300] sm:$0xff] }
 0x9e9   : > { %4042 = vmatmul.mubr.msk.f32.gmra.mrb[16].mxu0 %vm1531_vm0, %v4356_v58  ;;  %v2896_v58 = vld [vmem:[#allocation8 + $0x2c0] sm:$0xff] }
 0x9ee   : > { %4381 = vmatmul.mubr.msk.f32.vlgmr.msra.gmra.mrb[20].mxu1 %vm1531_vm0, %v2678_v20  ;;  %v5069_v20 = vpack.c.bf16 %v2895_v14, %v2892_v13 }
 0x9ef   : > { %5078 = vmatpush3.bf16.msra.mxu1 %v5075_v9  ;;  %v5067_v9 = vpack.c.bf16 %v2896_v58, %v2893_v6  ;;  %v3264_v6 = vld [vmem:[#allocation8 + $0x318] sm:$0xff] }
 0x9f0   : > { %5080 = vmatprep.subr.bf16.mxu1 %v5079_v18  ;;  %v3268_v58 = vld [vmem:[#allocation8 + $0x338] sm:$0xff]  ;;  %v5103_v13 = vpack.c.bf16 %v3264_v6, %v3261_v47 }
 0x9f3   : > { %5082 = vmatpush3.bf16.msra.mxu1 %v5079_v18  ;;  %v2902_v18 = vld [vmem:[#allocation8 + $0x2f0] sm:$0xff] }
 0x9f4   : > { %5084 = vmatprep.subr.bf16.mxu1 %v5083_v26  ;;  %v5071_v22 = vpack.c.bf16 %v2902_v18, %v2899_v17  ;;  %v3267_v17 = vld [vmem:[#allocation8 + $0x330] sm:$0xff]  ;;  %v3270_v18 = vld [vmem:[#allocation8 + $0x348] sm:$0xff] }
 0x9f7   : > { %5086 = vmatpush3.bf16.msra.mxu1 %v5083_v26  ;;  %v2901_v26 = vld [vmem:[#allocation8 + $0x2e8] sm:$0xff] }
 0x9f8   : > { %5088 = vmatprep.subr.bf16.mxu1 %v5087_v33  ;;  %v5073_v28 = vpack.c.bf16 %v2901_v26, %v2898_v23  ;;  %v5107_v23 = vpack.c.bf16 %v3270_v18, %v3267_v17 }
 0x9fb   : > { %5090 = vmatpush3.bf16.msra.mxu1 %v5087_v33  ;;  %v3266_v33 = vld [vmem:[#allocation8 + $0x328] sm:$0xff] }
 0x9fc   : > { %5093 = vmatprep.subr.msk.bf16.mxu1 %vm5952_vm1, %v5985_v5 }
 0xac1   : > { %v4382_v51 = vpop.f32.mrb[20].mxu1 }
 0xac2   : > { %v2767_v35 = vsel %vm6019_vm4, %v4382_v51, -inf  ;;  %v2757_v36 = vpop.f32.mrb[21].mxu1 }
 0xac3   : > { %v2766_v37 = vsel %vm6015_vm2, %v2757_v36, -inf  ;;  %v2771_v16 = vsel %vm1621_vm3, %v2767_v35, -inf  ;;  %v5117_v36 = vpack.c.bf16 %v3266_v33, %v3263_v30  ;;  %v3276_v30 = vld [vmem:[#allocation8 + $0x378] sm:$0xff] }
 0xac4   : > { %2772 = vmax.xlane.f32.xlu0 %v2771_v16  ;;  %v2768_v38 = vsel %vm1621_vm3, %v2766_v37, -inf  ;;  %v3272_v16 = vld [vmem:[#allocation8 + $0x358] sm:$0xff] }
 0xac5   : > { %2769 = vmax.xlane.f32.xlu1 %v2768_v38  ;;  %v3280_v33 = vld [vmem:[#allocation8 + $0x398] sm:$0xff] }
 0xb51   : > { %v2773_v39 = vpop.xlane.xlu0 %2772 }
 0xb52   : > { %v2775_v40 = vsub.f32 %v2767_v35, %v2773_v39  ;;  %v2770_v15 = vpop.xlane.xlu1 %2769  ;;  %v3275_v39 = vld [vmem:[#allocation8 + $0x370] sm:$0xff] }
 0xb53   : > { %v2774_v62 = vsub.f32 %v2766_v37, %v2770_v15  ;;  %v3269_v37 = vld [vmem:[#allocation8 + $0x340] sm:$0xff]  ;;  %v3284_v15 = vld [vmem:[#allocation8 + $0x3b8] sm:$0xff] }
 0xb54   : > { %v2778_v60 = vmul.f32 1.442695, %v2775_v40  ;;  %v5121_v38 = vpack.c.bf16 %v3272_v16, %v3269_v37  ;;  %v3278_v40 = vld [vmem:[#allocation8 + $0x388] sm:$0xff]  ;;  %v3279_v37 = vld [vmem:[#allocation8 + $0x390] sm:$0xff] }
 0xb55   : > { %v2776_v1 = vmul.f32 1.442695, %v2774_v62  ;;  %v3282_v16 = vld [vmem:[#allocation8 + $0x3a8] sm:$0xff] }
 0xb56   : > { %5380 = vpow2.f32 %v2778_v60 }
 0xb57   : > { %5382 = vpow2.f32 %v2776_v1 }
 0xb60   : > { %v5381_v8 = vpop.eup %5380 }
 0xb61   : > { %v2783_v41 = vsel %vm1621_vm3, %v5381_v8, 0.0  ;;  %v5383_v19 = vpop.eup %5382 }
 0xb62   : > { %2784 = vadd.xlane.f32.xlu1 %v2783_v41  ;;  %v2780_v42 = vsel %vm1621_vm3, %v5383_v19, 0.0 }
 0xb66   : > { %2781 = vadd.xlane.f32.xlu1 %v2780_v42 }
 0xb77   : > { %5342 = vrot.lane.b32.xlu1 %v5341_v11, %s5623_s23  ;;  %v2883_v11 = vld [vmem:[#allocation8 + $0x258] sm:$0xff] }
 0xb78   : > { %v5061_v46 = vpack.c.bf16 %v2883_v11, %v2880_v10 }
 0xb7b   : > { %5347 = vrot.lane.b32.xlu1 %v5346_v4, %s5623_s23 }
 0xb7f   : > { %3451 = vrot.lane.b32.xlu1 %v5946_v56, %s5623_s23 }
 0xbef   : > { %v2785_v12 = vpop.xlane.xlu1 %2784 }
 0xbf0   : > { %5384 = vrcp.f32 %v2785_v12 }
 0xbf3   : > { %v2782_v43 = vpop.xlane.xlu1 %2781 }
 0xbf4   : > { %5386 = vrcp.f32 %v2782_v43 }
 0xbf7   : > { %v5343_v54 = vpop.permute.xlu1 %5342 }
 0xbf8   : > { %v5345_v29 = vunpack.i.h.bf16 %v5343_v54  ;;  %v5344_v44 = vunpack.i.l.bf16 %v5343_v54 }
 0xbfa   : > { %v5055_v31 = vpack.c.bf16 %v5345_v29, %v5344_v44  ;;  %v5385_v0 = vpop.eup %5384 }
 0xbfb   : > { %v2789_v48 = vmul.f32 %v5385_v0, %v5381_v8  ;;  %v5348_v62 = vpop.permute.xlu1 %5347 }
 0xbfc   : > { %5056 = vmatprep.subr.bf16.mxu0 %v5055_v31  ;;  %v5350_v1 = vunpack.i.h.bf16 %v5348_v62  ;;  %v5349_v8 = vunpack.i.l.bf16 %v5348_v62 }
 0xbfd   : > { %5058 = vmatpush3.bf16.msra.mxu0 %v5055_v31 }
 0xbfe   : > { %v5387_v4 = vpop.eup %5386  ;;  %5060 = vmatprep.subr.bf16.mxu0 %v5059_v63  ;;  %v6155_v41 = vpack.c.bf16 %v5350_v1, %v5349_v8 }
 0xbff   : > { %v2788_v45 = vmul.f32 %v5387_v4, %v5383_v19  ;;  %v3265_v4 = vld [vmem:[#allocation8 + $0x320] sm:$0xff] }
 0xc01   : > { %4387 = vmatprep.mubr.msk.f32.mxu0 %vm1621_vm3, %v2788_v45  ;;  %v5101_v45 = vpack.c.bf16 %v3265_v4, %v3262_v3  ;;  %v3674_v3 = vld [vmem:[#allocation8 + $0x460] sm:$0xff]  ;;  %v3677_v4 = vld [vmem:[#allocation8 + $0x478] sm:$0xff] }
 0xc02   : > { %4388 = vmatmul.mubr.msk.f32.vlgmr.msra.gmra.mrb[20].mxu0 %vm1621_vm3, %v2789_v48 }
 0xc03   : > { %5062 = vmatpush1.bf16.msra.mxu0 %v5061_v46  ;;  %2974 = vmatprep.mubr.f32.mxu0 %v5622_v53 }
 0xc04   : > { %5064 = vmatprep.subr.bf16.mxu0 %v5063_v49 }
 0xc07   : > { %5066 = vmatpush1.bf16.msra.mxu0 %v5065_v59  ;;  %v3271_v59 = vld [vmem:[#allocation8 + $0x350] sm:$0xff] }
 0xc08   : > { %5068 = vmatprep.subr.bf16.mxu0 %v5067_v9 }
 0xc0b   : > { %5070 = vmatpush1.bf16.msra.mxu0 %v5069_v20  ;;  %v3274_v20 = vld [vmem:[#allocation8 + $0x368] sm:$0xff] }
 0xc0c   : > { %5072 = vmatprep.subr.bf16.mxu0 %v5071_v22  ;;  %v3277_v22 = vld [vmem:[#allocation8 + $0x380] sm:$0xff] }
 0xc0d   : > { %v5109_v26 = vpack.c.bf16 %v3277_v22, %v3274_v20 }
 0xc0f   : > { %5074 = vmatpush1.bf16.msra.mxu0 %v5073_v28  ;;  %v3273_v28 = vld [vmem:[#allocation8 + $0x360] sm:$0xff] }
 0xc10   : > { %5098 = vmatprep.subr.bf16.mxu0 %v6009_v25 }
 0xcd5   : > { %v4389_v51 = vpop.f32.mrb[20].mxu0 }
 0xcd6   : > { %v2870_v35 = vpop.f32.mrb[21].mxu0 }
 0xcd7   : > { %4051 = vmatmul.mubr.msk.f32.vlgmr.msra.gmra.mrb[14].mxu0 %vm1531_vm0, %v2870_v35  ;;  %4406 = vmatprep.mubr.msk.f32.mxu1 %vm1531_vm0, %v2870_v35  ;;  %v5111_v35 = vpack.c.bf16 %v3276_v30, %v3273_v28  ;;  %v3667_v28 = vld [vmem:[#allocation8 + $0x428] sm:$0xff]  ;;  %v3670_v30 = vld [vmem:[#allocation8 + $0x440] sm:$0xff] }
 0xcd8   : > { %5100 = vmatpush3.bf16.msra.mxu0 %v6009_v25  ;;  %4407 = vmatmul.mubr.msk.f32.vlgmr.msra.gmra.mrb[16].mxu1 %vm1531_vm0, %v4389_v51  ;;  %v5125_v25 = vpack.c.bf16 %v3278_v40, %v3275_v39 }
 0xcd9   : > { %5096 = vmatpush3.bf16.xpose.msk.msra.mxu1 %vm5952_vm1, %v5985_v5  ;;  %4413 = vmatprep.mubr.msk.f32.mxu1 %vm1531_vm0, %v5938_v50  ;;  %v3281_v5 = vld [vmem:[#allocation8 + $0x3a0] sm:$0xff] }
 0xcda   : > { %2980 = vmatprep.mubr.f32.mxu0 %v5622_v53  ;;  %5118 = vmatprep.subr.bf16.mxu1 %v5117_v36  ;;  %v5129_v60 = vpack.c.bf16 %v3284_v15, %v3281_v5  ;;  %v3452_v5 = vpop.permute.xlu1 %3451 }
 0xcdb   : > { %4052 = vmatmul.mubr.msk.f32.gmra.mrb[16].mxu0 %vm1531_vm0, %v4389_v51  ;;  %5102 = vmatprep.subr.bf16.mxu0 %v5101_v45  ;;  %v3283_v51 = vld [vmem:[#allocation8 + $0x3b0] sm:$0xff]  ;;  %v5171_v45 = vpack.c.bf16 %v3677_v4, %v3674_v3 }
 0xce0   : > { %4414 = vmatmul.mubr.msk.f32.vlgmr.msra.gmra.mrb[22].mxu1 %vm1531_vm0, %v5946_v56 }
 0xce1   : > { %5120 = vmatpush3.bf16.msra.mxu1 %v5117_v36  ;;  %v5113_v36 = vpack.c.bf16 %v3283_v51, %v3280_v33  ;;  %v5151_v51 = vpack.c.bf16 %v3670_v30, %v3667_v28 }
 0xce2   : > { %5122 = vmatprep.subr.bf16.mxu1 %v5121_v38 }
 0xce5   : > { %5124 = vmatpush3.bf16.msra.mxu1 %v5121_v38  ;;  %v5115_v38 = vpack.c.bf16 %v3282_v16, %v3279_v37  ;;  %v3673_v37 = vld [vmem:[#allocation8 + $0x458] sm:$0xff]  ;;  %v3676_v16 = vld [vmem:[#allocation8 + $0x470] sm:$0xff] }
 0xce6   : > { %5126 = vmatprep.subr.bf16.mxu1 %v5125_v25 }
 0xce9   : > { %5128 = vmatpush3.bf16.msra.mxu1 %v5125_v25 }
 0xcea   : > { %5130 = vmatprep.subr.bf16.mxu1 %v5129_v60 }
 0xced   : > { %5132 = vmatpush3.bf16.msra.mxu1 %v5129_v60 }
 0xcee   : > { %5135 = vmatprep.subr.msk.bf16.mxu1 %vm5952_vm1, %v6155_v41 }
 0xdb3   : > { %v4415_v56 = vpop.f32.mrb[22].mxu1 }
 0xdb4   : > { %v3146_v19 = vpop.f32.mrb[23].mxu1  ;;  %v3156_v43 = vsel %vm6019_vm4, %v4415_v56, -inf }
 0xdb5   : > { %v3155_v42 = vsel %vm6015_vm2, %v3146_v19, -inf  ;;  %v3160_v54 = vsel %vm1621_vm3, %v3156_v43, -inf }
 0xdb6   : > { %v3157_v12 = vsel %vm1621_vm3, %v3155_v42, -inf }
 0xdb7   : > { %3158 = vmax.xlane.f32.xlu0 %v3157_v12 }
 0xdbb   : > { %3161 = vmax.xlane.f32.xlu0 %v3160_v54 }
 0xe44   : > { %v3159_v7 = vpop.xlane.xlu0 %3158 }
 0xe45   : > { %v3163_v2 = vsub.f32 %v3155_v42, %v3159_v7 }
 0xe47   : > { %v3165_v29 = vmul.f32 1.442695, %v3163_v2  ;;  %v3656_v2 = vld [vmem:[#allocation8 + $0x3d0] sm:$0xff] }
 0xe48   : > { %v3162_v44 = vpop.xlane.xlu0 %3161 }
 0xe49   : > { %5388 = vpow2.f32 %v3165_v29  ;;  %v3164_v31 = vsub.f32 %v3156_v43, %v3162_v44  ;;  %v3659_v29 = vld [vmem:[#allocation8 + $0x3e8] sm:$0xff] }
 0xe4a   : > { %v5159_v44 = vpack.c.bf16 %v3659_v29, %v3656_v2 }
 0xe4b   : > { %v3167_v63 = vmul.f32 1.442695, %v3164_v31  ;;  %v3662_v31 = vld [vmem:[#allocation8 + $0x400] sm:$0xff] }
 0xe4d   : > { %5390 = vpow2.f32 %v3167_v63  ;;  %v3665_v63 = vld [vmem:[#allocation8 + $0x418] sm:$0xff] }
 0xe53   : > { %v5389_v10 = vpop.eup %5388 }
 0xe54   : > { %v3169_v11 = vsel %vm1621_vm3, %v5389_v10, 0.0 }
 0xe55   : > { %3170 = vadd.xlane.f32.xlu0 %v3169_v11  ;;  %v3668_v11 = vld [vmem:[#allocation8 + $0x430] sm:$0xff] }
 0xe57   : > { %v5391_v0 = vpop.eup %5390 }
 0xe58   : > { %v3172_v61 = vsel %vm1621_vm3, %v5391_v0, 0.0 }
 0xe59   : > { %3173 = vadd.xlane.f32.xlu0 %v3172_v61 }
 0xe6f   : > { %3449 = vrot.lane.b32.xlu0 %v5938_v50, %s5623_s23  ;;  %v5105_v50 = vpack.c.bf16 %v3271_v59, %v3268_v58  ;;  %v3654_v58 = vld [vmem:[#allocation8 + $0x3c0] sm:$0xff]  ;;  %v3657_v59 = vld [vmem:[#allocation8 + $0x3d8] sm:$0xff] }
 0xe70   : > { %v5145_v18 = vpack.c.bf16 %v3657_v59, %v3654_v58 }
 0xee2   : > { %v3171_v46 = vpop.xlane.xlu0 %3170 }
 0xee3   : > { %5392 = vrcp.f32 %v3171_v46  ;;  %v3655_v46 = vld [vmem:[#allocation8 + $0x3c8] sm:$0xff] }
 0xee6   : > { %v3174_v48 = vpop.xlane.xlu0 %3173 }
 0xee7   : > { %5394 = vrcp.f32 %v3174_v48  ;;  %v3658_v48 = vld [vmem:[#allocation8 + $0x3e0] sm:$0xff] }
 0xee8   : > { %v5143_v6 = vpack.c.bf16 %v3658_v48, %v3655_v46 }
 0xeea   : > { %v3450_v25 = vpop.permute.xlu0 %3449 }
 0xeed   : > { %v5393_v49 = vpop.eup %5392 }
 0xeee   : > { %v3177_v52 = vmul.f32 %v5393_v49, %v5389_v10  ;;  %v5163_v10 = vpack.c.bf16 %v3665_v63, %v3662_v31 }
 0xef0   : > { %4420 = vmatprep.mubr.msk.f32.mxu0 %vm1621_vm3, %v3177_v52 }
 0xef1   : > { %v5395_v9 = vpop.eup %5394 }
 0xef2   : > { %v3178_v14 = vmul.f32 %v5395_v9, %v5391_v0  ;;  %v3671_v0 = vld [vmem:[#allocation8 + $0x448] sm:$0xff] }
 0xef3   : > { %v5167_v61 = vpack.c.bf16 %v3671_v0, %v3668_v11 }
 0xef4   : > { %4421 = vmatmul.mubr.msk.f32.vlgmr.msra.gmra.mrb[22].mxu0 %vm1621_vm3, %v3178_v14  ;;  %v3664_v14 = vld [vmem:[#allocation8 + $0x410] sm:$0xff] }
 0xef5   : > { %5104 = vmatpush1.bf16.msra.mxu0 %v5103_v13  ;;  %3355 = vmatprep.mubr.f32.mxu0 %v5622_v53  ;;  %v3661_v13 = vld [vmem:[#allocation8 + $0x3f8] sm:$0xff] }
 0xef6   : > { %5106 = vmatprep.subr.bf16.mxu0 %v5105_v50  ;;  %v5147_v22 = vpack.c.bf16 %v3664_v14, %v3661_v13 }
 0xef9   : > { %5108 = vmatpush1.bf16.msra.mxu0 %v5107_v23  ;;  %v3660_v23 = vld [vmem:[#allocation8 + $0x3f0] sm:$0xff] }
 0xefa   : > { %5110 = vmatprep.subr.bf16.mxu0 %v5109_v26  ;;  %v3663_v26 = vld [vmem:[#allocation8 + $0x408] sm:$0xff] }
 0xefb   : > { %v5149_v33 = vpack.c.bf16 %v3663_v26, %v3660_v23 }
 0xefd   : > { %5112 = vmatpush1.bf16.msra.mxu0 %v5111_v35  ;;  %v3666_v35 = vld [vmem:[#allocation8 + $0x420] sm:$0xff] }
 0xefe   : > { %5114 = vmatprep.subr.bf16.mxu0 %v5113_v36  ;;  %v3669_v36 = vld [vmem:[#allocation8 + $0x438] sm:$0xff] }
 0xf01   : > { %5116 = vmatpush1.bf16.msra.mxu0 %v5115_v38  ;;  %v5153_v38 = vpack.c.bf16 %v3669_v36, %v3666_v35 }
 0xfc7   : > { %v4422_v39 = vpop.f32.mrb[22].mxu0 }
 0xfc8   : > { %v3251_v40 = vpop.f32.mrb[23].mxu0 }
 0xfc9   : > { %4061 = vmatmul.mubr.msk.f32.vlgmr.msra.gmra.mrb[14].mxu0 %vm1531_vm0, %v3251_v40  ;;  %4439 = vmatprep.mubr.msk.f32.mxu1 %vm1531_vm0, %v3251_v40  ;;  %v3672_v40 = vld [vmem:[#allocation8 + $0x450] sm:$0xff] }
 0xfca   : > { %4440 = vmatmul.mubr.msk.f32.vlgmr.msra.gmra.mrb[16].mxu1 %vm1531_vm0, %v4422_v39  ;;  %3361 = vmatprep.mubr.f32.mxu0 %v5622_v53 }
 0xfcb   : > { %5138 = vmatpush3.bf16.xpose.msk.msra.mxu1 %vm5952_vm1, %v6155_v41  ;;  %4446 = vmatprep.mubr.msk.f32.mxu1 %vm1531_vm0, %v3450_v25  ;;  %v3675_v25 = vld [vmem:[#allocation8 + $0x468] sm:$0xff] }
 0xfcc   : > { %5160 = vmatprep.subr.bf16.mxu1 %v5159_v44 }
 0xfcd   : > { %4062 = vmatmul.mubr.msk.f32.gmra.mrb[16].mxu0 %vm1531_vm0, %v4422_v39  ;;  %v5155_v39 = vpack.c.bf16 %v3676_v16, %v3673_v37 }
 0xfd2   : > { %4447 = vmatmul.mubr.msk.f32.vlgmr.msra.gmra.mrb[24].mxu1 %vm1531_vm0, %v3452_v5  ;;  %v5157_v5 = vpack.c.bf16 %v3675_v25, %v3672_v40 }
 0xfd3   : > { %5162 = vmatpush3.bf16.msra.mxu1 %v5159_v44 }
 0xfd4   : > { %5164 = vmatprep.subr.bf16.mxu1 %v5163_v10 }
 0xfd7   : > { %5166 = vmatpush3.bf16.msra.mxu1 %v5163_v10 }
 0xfd8   : > { %5168 = vmatprep.subr.bf16.mxu1 %v5167_v61 }
 0xfdb   : > { %5170 = vmatpush3.bf16.msra.mxu1 %v5167_v61 }
 0xfdc   : > { %5172 = vmatprep.subr.bf16.mxu1 %v5171_v45 }
 0xfdf   : > { %5174 = vmatpush3.bf16.msra.mxu1 %v5171_v45 }
0x10a5   : > { %v4448_v15 = vpop.f32.mrb[24].mxu1 }
0x10a6   : > { %v3541_v62 = vsel %vm6019_vm4, %v4448_v15, -inf  ;;  %v3531_v60 = vpop.f32.mrb[25].mxu1 }
0x10a7   : > { %v3540_v1 = vsel %vm6015_vm2, %v3531_v60, -inf  ;;  %v3545_v8 = vsel %vm1621_vm3, %v3541_v62, -inf  ;;  %v3846_v60 = vsub.s32 0, %v6011_v27 }
0x10a8   : > { %3546 = vmax.xlane.f32.xlu0 %v3545_v8  ;;  %v3542_v57 = vsel %vm1621_vm3, %v3540_v1, -inf  ;;  %v3850_v8 = vsub.s32 1, %v6011_v27 }
0x10a9   : > { %3543 = vmax.xlane.f32.xlu1 %v3542_v57  ;;  %v3854_v57 = vsub.s32 2, %v6011_v27 }
0x1135   : > { %v3547_v41 = vpop.xlane.xlu0 %3546 }
0x1136   : > { %v3549_v56 = vsub.f32 %v3541_v62, %v3547_v41  ;;  %v3544_v19 = vpop.xlane.xlu1 %3543 }
0x1137   : > { %v3548_v42 = vsub.f32 %v3540_v1, %v3544_v19  ;;  %v3842_v1 = vld [vmem:[#allocation9] sm:$0x7] }
0x1138   : > { %v3552_v12 = vmul.f32 1.442695, %v3549_v56  ;;  %v3847_v41 = vrot.slane %v3842_v1, %v3846_v60  ;;  %v3851_v56 = vrot.slane %v3842_v1, %v3850_v8  ;;  %v3855_v19 = vrot.slane %v3842_v1, %v3854_v57 }
0x1139   : > { %v3550_v43 = vmul.f32 1.442695, %v3548_v42 }
0x113a   : > { %5396 = vpow2.f32 %v3552_v12 }
0x113b   : > { %5398 = vpow2.f32 %v3550_v43 }
0x1144   : > { %v5397_v34 = vpop.eup %5396 }
0x1145   : > { %v3557_v54 = vsel %vm1621_vm3, %v5397_v34, 0.0  ;;  %v5399_v7 = vpop.eup %5398 }
0x1146   : > { %3558 = vadd.xlane.f32.xlu1 %v3557_v54  ;;  %v3554_v32 = vsel %vm1621_vm3, %v5399_v7, 0.0 }
0x114a   : > { %3555 = vadd.xlane.f32.xlu1 %v3554_v32 }
0x115b   : > { %5352 = vrot.lane.b32.xlu1 %v5351_v55, %s5623_s23 }
0x11d3   : > { %v3559_v21 = vpop.xlane.xlu1 %3558 }
0x11d4   : > { %5400 = vrcp.f32 %v3559_v21 }
0x11d7   : > { %v3556_v24 = vpop.xlane.xlu1 %3555 }
0x11d8   : > { %5402 = vrcp.f32 %v3556_v24 }
0x11db   : > { %v5353_v55 = vpop.permute.xlu1 %5352 }
0x11dc   : > { %v5355_v49 = vunpack.i.h.bf16 %v5353_v55  ;;  %v5354_v52 = vunpack.i.l.bf16 %v5353_v55 }
0x11de   : > { %v5139_v47 = vpack.c.bf16 %v5355_v49, %v5354_v52  ;;  %v5401_v9 = vpop.eup %5400 }
0x11df   : > { %v3563_v20 = vmul.f32 %v5401_v9, %v5397_v34 }
0x11e0   : > { %5140 = vmatprep.subr.bf16.mxu0 %v5139_v47 }
0x11e1   : > { %5142 = vmatpush3.bf16.msra.mxu0 %v5139_v47 }
0x11e2   : > { %v5403_v50 = vpop.eup %5402  ;;  %5144 = vmatprep.subr.bf16.mxu0 %v5143_v6 }
0x11e3   : > { %v3562_v17 = vmul.f32 %v5403_v50, %v5399_v7 }
0x11e5   : > { %4453 = vmatprep.mubr.msk.f32.mxu0 %vm1621_vm3, %v3562_v17 }
0x11e6   : > { %4454 = vmatmul.mubr.msk.f32.vlgmr.msra.gmra.mrb[24].mxu0 %vm1621_vm3, %v3563_v20 }
0x11e7   : > { %5146 = vmatpush1.bf16.msra.mxu0 %v5145_v18  ;;  %3748 = vmatprep.mubr.f32.mxu0 %v5622_v53 }
0x11e8   : > { %5148 = vmatprep.subr.bf16.mxu0 %v5147_v22 }
0x11eb   : > { %5150 = vmatpush1.bf16.msra.mxu0 %v5149_v33 }
0x11ec   : > { %5152 = vmatprep.subr.bf16.mxu0 %v5151_v51 }
0x11ef   : > { %5154 = vmatpush1.bf16.msra.mxu0 %v5153_v38 }
0x11f0   : > { %5156 = vmatprep.subr.bf16.mxu0 %v5155_v39 }
0x11f3   : > { %5158 = vmatpush1.bf16.msra.mxu0 %v5157_v5 }
0x12b9   : > { %v4455_v15 = vpop.f32.mrb[24].mxu0 }
0x12ba   : > { %v3644_v62 = vpop.f32.mrb[25].mxu0 }
0x12bb   : > { %4071 = vmatmul.mubr.msk.f32.vlgmr.msra.gmra.mrb[14].mxu0 %vm1531_vm0, %v3644_v62  ;;  %4472 = vmatprep.mubr.msk.f32.mxu1 %vm1531_vm0, %v3644_v62 }
0x12bc   : > { %4473 = vmatmul.mubr.msk.f32.vlgmr.msra.gmra.mrb[16].mxu1 %vm1531_vm0, %v4455_v15  ;;  %3754 = vmatprep.mubr.f32.mxu0 %v5622_v53 }
0x12bf   : > { %4072 = vmatmul.mubr.msk.f32.gmra.mrb[16].mxu0 %vm1531_vm0, %v4455_v15 }
0x138e   : > { %v3750_v42 = vpop.f32.mrb[14].mxu0 }
0x138f   : > { %v3859_v12 = vadd.f32 %v3847_v41, %v3750_v42  ;;  %v3752_v43 = vpop.f32.mrb[15].mxu0  ;;  %v4474_v34 = vpop.f32.mrb[16].mxu1 }
0x1390   : > { %v3860_v53 = vadd.f32 %v3851_v56, %v3752_v43  ;;  %v3864_v54 = vadd.f32 %v4474_v34, %v3855_v19  ;;  %v3827_v7 = vpop.f32.mrb[17].mxu1 }
0x1391   : > { %3865 = vst [vmem:[%s271_s25] sm:$0xff] %v3859_v12  ;;  %v3861_v32 = vadd.f32 %v3855_v19, %v3827_v7 }
0x1392   : > { %3866 = vst [vmem:[%s271_s25 + $0x8] sm:$0xff] %v3860_v53  ;;  %3870 = vst [vmem:[%s271_s25 + $0x28] sm:$0xff] %v3864_v54  ;;  %v3756_v27 = vpop.f32.mrb[16].mxu0 }
0x1393   : > { %3867 = vst [vmem:[%s271_s25 + $0x10] sm:$0xff] %v3861_v32  ;;  %v3862_v2 = vadd.f32 %v3847_v41, %v3756_v27  ;;  %v3758_v29 = vpop.f32.mrb[17].mxu0 }
0x1394   : > { %v3863_v44 = vadd.f32 %v3851_v56, %v3758_v29 }
0x1395   : > { %3868 = vst [vmem:[%s271_s25 + $0x18] sm:$0xff] %v3862_v2 }
0x1396   : > { %3869 = vst [vmem:[%s271_s25 + $0x20] sm:$0xff] %v3863_v44 }
0x1397   : > { %5535 = shalt.err (!%p5532_p0)
}
0x1398   : > { %s5536_s10 = scalar_lea.hbm %s6214_s29, 768  ;;  %s5540_s21 = scalar_lea.hbm %s6267_s4, 1536 }
0x1399   : > { %p5537_p4 = scmp.ne.s32.totalorder %s6214_s29, %s5536_s10  ;;  %p5541_p12 = scmp.lt.u32.totalorder %s6214_s29, %s6267_s4 }
0x139a   : > { %p5542_p1 = scmp.lt.u32.totalorder %s5540_s21, %s5536_s10  ;;  %p5544_p13 = scmp.lt.u32.totalorder %s5536_s10, %s6214_s29 }
0x139b   : > { %p5538_p8 = pnand %p5537_p4, %p5805_p3 }
0x139c   : > { %p5543_p11 = por %p5542_p1, %p5541_p12 }
0x139d   : > { %p5539_p2 = pneg %p5538_p8 }
0x139e   : > { %p5545_p6 = por %p5544_p13, %p5543_p11 }
0x13a0   : > { %p5546_p10 = pnand %p5545_p6, %p5539_p2 }
0x13a2   : > { %5549 = shalt.err (!%p5546_p10)
}
0x13a3   : > { %s5625_s25 = smov 384   ;;  %s5626_s22 = smov 24  }
0x13a4   : > { %5239 = dma.vmem_to_hbm [thread:$0]  (%p5805_p3), %s6209_s27, 768, %s6214_s29, %s3872_s7, %s5625_s25, %s5625_s25, %s5626_s22  }
0x13a5 PF: > { %s3903_s28 = sand.u32 1, %s5592_s15   ;;  %p6293_p5 = scmp.ne.s32.totalorder %s6276_s26, 0 }
0x13a6   : > { %p6294_p7 = scmp.ge.s32.totalorder %s5612_s20, 2  ;;  %s3904_s18 = scalar_lea.sflag [#allocation5], %s3903_s28 }
0x13a8   : > { %p5256_p9 = pnand %p6294_p7, %p6293_p5 }
0x13aa   : > { %5587 = dma.done.wait (!%p5256_p9), %s3904_s18, 768  }
0x13ab   : > { %5589 = vsyncadd (!%p5256_p9), %s3904_s18, 4294966528  ;;  %s22_s20 = sadd.s32 1, %s5612_s20   ;;  %s6295_s15 = smov %s5596_s16 }
0x13ac   : > { %p19_p0 = scmp.ge.s32.totalorder %s22_s20, 4   ;;  %s6296_s16 = smov %s5600_s17 }
0x13ad   : > { %s6297_s17 = smov %s5814_s9  ;;  %s6298_s18 = smov %s5608_s19 }
0x13ae   : > { %s6299_s19 = smov %s6301_s1  ;;  %21 = sbr.rel (!%p19_p0) target bundleno = 10 (0xa), region = 103 }
0x13b5   :  { %3909 = vsyncpa [#allocation4], 1 }
0x13b6   :  { %3911 = vsyncpa [#allocation4 + $0x1], 1 }
0x13b7   :  { %3912 = vsyncpa [#allocation7], 1 }
0x13b8   :  { %3913 = vsyncpa [#allocation10], 1 }
0x13b9   :  { %3914 = vsyncpa [#allocation5], 1 }
0x13ba   :  { %3916 = vsyncpa [#allocation5 + $0x1], 1 }

</bundles_post_ra>
